<compile_context>
chip_gen: v7x
topology: tpu7x:2x2x1
jax: 0.10.0
libtpu: 0.0.40
codegen_flags: <defaults>
</compile_context>

<pallas_src>
import jax
import jax.numpy as jnp
import numpy as np
from jax import lax
from jax.experimental import pallas as pl
from jax.experimental.pallas import tpu as pltpu


_VMEM = pl.BlockSpec(memory_space=pltpu.MemorySpace.VMEM)


def _round_up(x, m):
    return ((x + m - 1) // m) * m


def _aligned(off, m):
    # pl.multiple_of only for traced offsets; static offsets are already known-aligned.
    return off if isinstance(off, int) else pl.multiple_of(off, m)


# ---------------------------------------------------------------------------
# Fused kernel: wavefront-skewed GRU stack + folded Linears + fc + log_softmax
# ---------------------------------------------------------------------------

def make_fused_kernel(L, T, BP, H, GP, OP, O, U=10):
    """BP = padded batch (multiple of 8), GP = 3H padded to 128 lanes,
    OP = fc output padded to 128 lanes, O = true output size.

    Ref layout (positional):
      x_ref                    (T*BP, D0)     time-major, batch-padded input
      per layer l: wi_ref      (Din_l, GP)    [r|z|n|0] (prev Linear folded in for l>0)
                   b_ref       (1, GP)        bi + [bh_r|bh_z|0|0] (+ folded prev Linear bias)
                   wh_ref      (H, GP)        [r|z|n|0]
                   bhn_ref     (1, GP)        [0|0|bh_n|0]   (added to gh, full width)
      fcw_ref                  (T, H, OP)     last Linear folded into fc blocks, lane-padded
      fcb_ref                  (1, O)
      out_ref                  (BP, O)
      gx0_scr                  (T*BP, GP)     precomputed layer-0 input gates (lane-dense)
    """

    def kernel(*refs):
        x_ref = refs[0]
        layer_refs = refs[1:1 + 4 * L]
        fcw_ref = refs[1 + 4 * L]
        fcb_ref = refs[2 + 4 * L]
        out_ref = refs[3 + 4 * L]
        gx0_scr = refs[4 + 4 * L]

        def lref(l, k):
            return layer_refs[4 * l + k]

        # --- layer-0 input gates for ALL timesteps: one big MXU call, lane-dense store ---
        gx0_scr[...] = (
            jnp.dot(x_ref[...], lref(0, 0)[...], preferred_element_type=jnp.float32)
            + lref(0, 1)[...])

        # --- loop-invariant weight loads / bias broadcasts hoisted into vregs ---
        wh_v = [lref(l, 2)[...] for l in range(L)]                               # (H, GP)
        bhn_b = [jnp.broadcast_to(lref(l, 3)[...], (BP, GP)) for l in range(L)]  # n-bias slot
        wi_nv = [lref(l, 0)[...] for l in range(1, L)]                           # (H, GP) folded
        bn_b = [jnp.broadcast_to(lref(l, 1)[...], (BP, GP)) for l in range(1, L)]

        def gru_cell(gx, h, l):
            gh = jnp.dot(h, wh_v[l], preferred_element_type=jnp.float32) + bhn_b[l]
            rz = jax.nn.sigmoid(gx[:, :2 * H] + gh[:, :2 * H])
            r = rz[:, :H]
            z = rz[:, H:]
            n = jnp.tanh(gx[:, 2 * H:3 * H] + r * gh[:, 2 * H:3 * H])
            return (1.0 - z) * n + z * h

        def wave(i, h_list, gx_carry, acc, active):
            """Wavefront i: layer l runs its timestep i-l (when active[l] is True)."""
            new_h = list(h_list)
            new_gx = list(gx_carry)
            # layer 0: gates come from the precomputed slab
            if active[0]:
                off = _aligned(i * BP, BP)
                gx0 = gx0_scr[pl.ds(off, BP), :]
                h0 = gru_cell(gx0, h_list[0], 0)
                new_h[0] = h0
                if L == 1:
                    acc = acc + jnp.dot(h0, fcw_ref[i], preferred_element_type=jnp.float32)
                else:
                    # layer-1 input gates for the NEXT wavefront (off the critical path)
                    new_gx[0] = (jnp.dot(h0, wi_nv[0], preferred_element_type=jnp.float32)
                                 + bn_b[0])
            # layers 1..L-1: their gates were computed last wavefront (carried in vregs)
            for l in range(1, L):
                if active[l]:
                    hl = gru_cell(gx_carry[l - 1], h_list[l], l)
                    new_h[l] = hl
                    if l < L - 1:
                        new_gx[l] = (jnp.dot(hl, wi_nv[l], preferred_element_type=jnp.float32)
                                     + bn_b[l])
                    else:
                        # fc fold-through: only feeds `acc`, not the recurrence
                        acc = acc + jnp.dot(hl, fcw_ref[i - l],
                                            preferred_element_type=jnp.float32)
            return new_h, new_gx, acc

        h_list = [jnp.zeros((BP, H), jnp.float32) for _ in range(L)]
        gx_carry = [jnp.zeros((BP, GP), jnp.float32) for _ in range(L - 1)]
        acc = jnp.zeros((BP, OP), jnp.float32)

        # ---- prologue: wavefronts 0..L-2 (upper layers not yet active) ----
        for i in range(L - 1):
            act = tuple(l <= i for l in range(L))
            h_list, gx_carry, acc = wave(i, h_list, gx_carry, acc, act)

        # ---- main loop: wavefronts L-1..T-1, all layers active, unrolled by U ----
        all_on = (True,) * L
        lo, hi = L - 1, T
        n_main = max(hi - lo, 0)
        n_iters = n_main // U

        def body(j, carry):
            h_l, gx_c, a = carry
            base = lo + j * U
            for u in range(U):                                  # modest manual unroll
                h_l, gx_c, a = wave(base + u, h_l, gx_c, a, all_on)
            return h_l, gx_c, a

        h_list, gx_carry, acc = lax.fori_loop(0, n_iters, body, (h_list, gx_carry, acc))
        for i in range(lo + n_iters * U, hi):                   # static remainder (none for T=151)
            h_list, gx_carry, acc = wave(i, h_list, gx_carry, acc, all_on)

        # ---- epilogue: wavefronts T..T+L-2 (lower layers already finished) ----
        for i in range(T, T + L - 1):
            act = tuple(l >= i - T + 1 for l in range(L))
            h_list, gx_carry, acc = wave(i, h_list, gx_carry, acc, act)

        # ---- fc bias + log_softmax (only the first O padded columns are real) ----
        ls = acc[:, :O] + fcb_ref[...]
        m = jnp.max(ls, axis=-1, keepdims=True)
        lse = jnp.log(jnp.sum(jnp.exp(ls - m), axis=-1, keepdims=True)) + m
        out_ref[...] = (ls - lse).astype(out_ref.dtype)

    return kernel


# ---------------------------------------------------------------------------
# Parameter preparation (gate concat + Linear folding + lane padding) -- done once.
# ---------------------------------------------------------------------------

def prepare_params(params, seq_len, lane=128):
    glin = params["gru_linear"]
    H = glin[0]["wh"].shape[-1]
    GP = _round_up(3 * H, lane)

    layers = []
    prev_lw = prev_lb = None
    for i, lp in enumerate(glin):
        wi, wh, bi, bh = lp["wi"], lp["wh"], lp["bi"], lp["bh"]
        wi_cat = jnp.concatenate([wi[0], wi[1], wi[2]], axis=1)                  # (Din, 3H)
        wh_cat = jnp.concatenate([wh[0], wh[1], wh[2]], axis=1)                  # (H, 3H)
        b_cat = jnp.concatenate([bi[0] + bh[0], bi[1] + bh[1], bi[2]], axis=1)   # (1, 3H)
        if i > 0:
            # fold previous layer's Linear (lw, lb) into this layer's input gates
            b_cat = prev_lb @ wi_cat + b_cat
            wi_cat = prev_lw @ wi_cat
        # n-gate hidden bias as a full gate-width row (zeros in r/z slots) -> added to gh
        bhn_vec = jnp.zeros((1, 3 * H), jnp.float32).at[:, 2 * H:].set(bh[2])
        pad = GP - 3 * H
        layers.append(dict(
            wi=jnp.pad(wi_cat, ((0, 0), (0, pad))),
            b=jnp.pad(b_cat, ((0, 0), (0, pad))),
            wh=jnp.pad(wh_cat, ((0, 0), (0, pad))),
            bhn=jnp.pad(bhn_vec, ((0, 0), (0, pad)))))
        prev_lw, prev_lb = lp["lw"], lp["lb"]

    # fold the last Linear into fc (block-wise over timesteps), lane-pad fc output
    fc_w, fc_b = params["fc_w"], params["fc_b"]           # (T*D, O), (1, O)
    D_out = prev_lw.shape[1]
    O = fc_w.shape[1]
    OP = _round_up(O, lane)
    fcw3 = fc_w.reshape(seq_len, D_out, O)                # block t = fc_w[t*D:(t+1)*D, :]
    fcw = jnp.einsum("hd,tdo->tho", prev_lw, fcw3)        # (T, H, O)
    fcb = fc_b + jnp.einsum("d,tdo->o", prev_lb[0], fcw3)[None, :]   # (1, O), unpadded
    fcw = jnp.pad(fcw, ((0, 0), (0, 0), (0, OP - O)))     # lane-dense per-step loads
    return {"layers": layers, "fcw": fcw, "fcb": fcb}


# ---------------------------------------------------------------------------
# Wrapper
# ---------------------------------------------------------------------------

def custom_model_forward(x, prepped):
    """x: (B, T, D) -> (B, 1, output_size), matching CustomModel.forward."""
    B, T, D = x.shape
    layers = prepped["layers"]
    L = len(layers)
    H = layers[0]["wh"].shape[0]
    GP = layers[0]["wh"].shape[1]
    OP = prepped["fcw"].shape[-1]
    O = prepped["fcb"].shape[-1]
    BP = _round_up(max(B, 1), 8)                          # pad batch to sublane multiple

    x_tm = jnp.transpose(x, (1, 0, 2))                    # (T, B, D) time-major
    if BP != B:
        x_tm = jnp.pad(x_tm, ((0, 0), (0, BP - B), (0, 0)))
    x_flat = x_tm.reshape(T * BP, D)

    args = [x_flat]
    for lp in layers:
        args.extend([lp["wi"], lp["b"], lp["wh"], lp["bhn"]])
    args.extend([prepped["fcw"], prepped["fcb"]])

    kernel = make_fused_kernel(L, T, BP, H, GP, OP, O, U=10)
    out = pl.pallas_call(
        kernel,
        out_shape=jax.ShapeDtypeStruct((BP, O), jnp.float32),
        in_specs=[_VMEM] * len(args),
        out_specs=_VMEM,
        scratch_shapes=[
            pltpu.VMEM((T * BP, GP), jnp.float32),        # precomputed layer-0 input gates
        ],
        compiler_params=pltpu.CompilerParams(vmem_limit_bytes=32 * 1024 * 1024),
    )(*args)
    return out[:B, None, :]                               # drop batch padding, unsqueeze(1)


# ---------------------------------------------------------------------------
# Deterministic synthetic parameters (shapes follow the module's __init__)
# ---------------------------------------------------------------------------

def init_params(key, input_size, output_size, rnn_size, projection, layers, seq_len):
    params = {"gru_linear": []}
    in_feat = input_size
    for i in range(layers):
        H = rnn_size
        k = 1.0 / np.sqrt(H)
        key, k1, k2, k3, k4, k5, k6 = jax.random.split(key, 7)
        wi = jax.random.uniform(k1, (3, in_feat, H), jnp.float32, -k, k)
        wh = jax.random.uniform(k2, (3, H, H), jnp.float32, -k, k)
        bi = jax.random.uniform(k3, (3, 1, H), jnp.float32, -k, k)
        bh = jax.random.uniform(k4, (3, 1, H), jnp.float32, -k, k)
        out_feat = input_size if i == layers - 1 else projection
        lw = jax.random.uniform(k5, (H, out_feat), jnp.float32, -k, k)
        lb = jax.random.uniform(k6, (1, out_feat), jnp.float32, -k, k)
        params["gru_linear"].append(dict(wi=wi, wh=wh, bi=bi, bh=bh, lw=lw, lb=lb))
        in_feat = out_feat
    key, kf1, kf2 = jax.random.split(key, 3)
    fin = seq_len * input_size                            # 151 * 40 in the module
    kf = 1.0 / np.sqrt(fin)
    params["fc_w"] = jax.random.uniform(kf1, (fin, output_size), jnp.float32, -kf, kf)
    params["fc_b"] = jax.random.uniform(kf2, (1, output_size), jnp.float32, -kf, kf)
    return params


# ---------------------------------------------------------------------------
# Pure-JAX reference (uses the RAW, un-folded parameters)
# ---------------------------------------------------------------------------

def _gru_ref(x_tm, wi, wh, bi, bh):
    T, B, _ = x_tm.shape
    H = wh.shape[-1]

    def step(h, x_t):
        r = jax.nn.sigmoid(x_t @ wi[0] + bi[0] + h @ wh[0] + bh[0])
        z = jax.nn.sigmoid(x_t @ wi[1] + bi[1] + h @ wh[1] + bh[1])
        n = jnp.tanh(x_t @ wi[2] + bi[2] + r * (h @ wh[2] + bh[2]))
        h_new = (1.0 - z) * n + z * h
        return h_new, h_new

    _, ys = lax.scan(step, jnp.zeros((B, H), jnp.float32), x_tm)
    return ys


def model_ref(x, params):
    B, T, D = x.shape
    h = jnp.transpose(x, (1, 0, 2))
    for lp in params["gru_linear"]:
        h = _gru_ref(h, lp["wi"], lp["wh"], lp["bi"], lp["bh"])
        h = h @ lp["lw"] + lp["lb"]
    h = jnp.transpose(h, (1, 0, 2)).reshape(B, -1)
    logits = h @ params["fc_w"] + params["fc_b"]
    return jax.nn.log_softmax(logits, axis=-1)[:, None, :]


# ---------------------------------------------------------------------------

if __name__ == "__main__":
    # fc = Linear(151*40, output_size) in the module fixes T=151, input_size=40.
    B, T, D = 2, 151, 40
    output_size, rnn_size, projection, layers = 10, 32, 16, 2

    x = jax.random.normal(jax.random.PRNGKey(0), (B, T, D), jnp.float32)
    params = init_params(jax.random.PRNGKey(1), D, output_size, rnn_size,
                         projection, layers, T)
    prepped = prepare_params(params, T)

    fwd = jax.jit(custom_model_forward)
    out = jax.block_until_ready(fwd(x, prepped))
    ref = jax.block_until_ready(model_ref(x, params))

    assert out.shape == (B, 1, output_size), out.shape
    np.testing.assert_allclose(np.asarray(out), np.asarray(ref), rtol=2e-3, atol=2e-3)
    print("KERNEL_OK")
</pallas_src>

<mosaic_0001>
module attributes {stable_mosaic.version = 11 : i64} {
  func.func @kernel(%arg0: memref<1208x40xf32, #tpu.memory_space<vmem>>, %arg1: memref<40x128xf32, #tpu.memory_space<vmem>>, %arg2: memref<1x128xf32, #tpu.memory_space<vmem>>, %arg3: memref<32x128xf32, #tpu.memory_space<vmem>>, %arg4: memref<1x128xf32, #tpu.memory_space<vmem>>, %arg5: memref<32x128xf32, #tpu.memory_space<vmem>>, %arg6: memref<1x128xf32, #tpu.memory_space<vmem>>, %arg7: memref<32x128xf32, #tpu.memory_space<vmem>>, %arg8: memref<1x128xf32, #tpu.memory_space<vmem>>, %arg9: memref<151x32x128xf32, #tpu.memory_space<vmem>>, %arg10: memref<1x10xf32, #tpu.memory_space<vmem>>, %arg11: memref<8x10xf32, #tpu.memory_space<vmem>>, %arg12: memref<1208x128xf32, #tpu.memory_space<vmem>>) attributes {dimension_semantics = [], scalar_prefetch = 0 : i64, scratch_operands = 1 : i64, tpu.core_type = #tpu.core_type<tc>} {
    %c0 = arith.constant 0 : index
    %c0_0 = arith.constant 0 : index
    %0 = vector.load %arg0[%c0, %c0_0] : memref<1208x40xf32, #tpu.memory_space<vmem>>, vector<1208x40xf32>
    %c0_1 = arith.constant 0 : index
    %c0_2 = arith.constant 0 : index
    %1 = vector.load %arg1[%c0_1, %c0_2] : memref<40x128xf32, #tpu.memory_space<vmem>>, vector<40x128xf32>
    %cst = arith.constant dense<0.000000e+00> : vector<1208x128xf32>
    %2 = tpu.matmul %0, %1, %cst {dimension_numbers = #tpu.dot_dimension_numbers<[1], [0], [0], [1], [0, 0, 1, 1], [], []>} : vector<1208x40xf32>, vector<40x128xf32>, vector<1208x128xf32> -> vector<1208x128xf32>
    %c0_3 = arith.constant 0 : index
    %c0_4 = arith.constant 0 : index
    %3 = vector.load %arg2[%c0_3, %c0_4] : memref<1x128xf32, #tpu.memory_space<vmem>>, vector<1x128xf32>
    %4 = vector.broadcast %3 : vector<1x128xf32> to vector<1208x128xf32>
    %5 = arith.addf %2, %4 : vector<1208x128xf32>
    %c0_5 = arith.constant 0 : index
    %c0_6 = arith.constant 0 : index
    %6 = vector.load %arg12[%c0_5, %c0_6] : memref<1208x128xf32, #tpu.memory_space<vmem>>, vector<1208x128xf32>
    tpu.vector_store %arg12[%c0_5, %c0_6], %5 {strides = array<i32>} : memref<1208x128xf32, #tpu.memory_space<vmem>>, vector<1208x128xf32>,
    %c0_7 = arith.constant 0 : index
    %c0_8 = arith.constant 0 : index
    %7 = vector.load %arg3[%c0_7, %c0_8] : memref<32x128xf32, #tpu.memory_space<vmem>>, vector<32x128xf32>
    %c0_9 = arith.constant 0 : index
    %c0_10 = arith.constant 0 : index
    %8 = vector.load %arg7[%c0_9, %c0_10] : memref<32x128xf32, #tpu.memory_space<vmem>>, vector<32x128xf32>
    %c0_11 = arith.constant 0 : index
    %c0_12 = arith.constant 0 : index
    %9 = vector.load %arg4[%c0_11, %c0_12] : memref<1x128xf32, #tpu.memory_space<vmem>>, vector<1x128xf32>
    %10 = vector.shape_cast %9 : vector<1x128xf32> to vector<1x128xf32>
    %11 = vector.broadcast %10 : vector<1x128xf32> to vector<8x128xf32>
    %c0_13 = arith.constant 0 : index
    %c0_14 = arith.constant 0 : index
    %12 = vector.load %arg8[%c0_13, %c0_14] : memref<1x128xf32, #tpu.memory_space<vmem>>, vector<1x128xf32>
    %13 = vector.shape_cast %12 : vector<1x128xf32> to vector<1x128xf32>
    %14 = vector.broadcast %13 : vector<1x128xf32> to vector<8x128xf32>
    %c0_15 = arith.constant 0 : index
    %c0_16 = arith.constant 0 : index
    %15 = vector.load %arg5[%c0_15, %c0_16] : memref<32x128xf32, #tpu.memory_space<vmem>>, vector<32x128xf32>
    %c0_17 = arith.constant 0 : index
    %c0_18 = arith.constant 0 : index
    %16 = vector.load %arg6[%c0_17, %c0_18] : memref<1x128xf32, #tpu.memory_space<vmem>>, vector<1x128xf32>
    %17 = vector.shape_cast %16 : vector<1x128xf32> to vector<1x128xf32>
    %18 = vector.broadcast %17 : vector<1x128xf32> to vector<8x128xf32>
    %cst_19 = arith.constant 0.000000e+00 : f32
    %19 = vector.broadcast %cst_19 : f32 to vector<8x32xf32>
    %cst_20 = arith.constant 0.000000e+00 : f32
    %20 = vector.broadcast %cst_20 : f32 to vector<8x32xf32>
    %cst_21 = arith.constant 0.000000e+00 : f32
    %21 = vector.broadcast %cst_21 : f32 to vector<8x128xf32>
    %c0_22 = arith.constant 0 : index
    %c0_23 = arith.constant 0 : index
    %22 = vector.load %arg12[%c0_22, %c0_23] : memref<1208x128xf32, #tpu.memory_space<vmem>>, vector<8x128xf32>
    %cst_24 = arith.constant dense<0.000000e+00> : vector<8x128xf32>
    %23 = tpu.matmul %19, %7, %cst_24 {dimension_numbers = #tpu.dot_dimension_numbers<[1], [0], [0], [1], [0, 0, 1, 1], [], []>} : vector<8x32xf32>, vector<32x128xf32>, vector<8x128xf32> -> vector<8x128xf32>
    %24 = arith.addf %23, %11 : vector<8x128xf32>
    %25 = vector.extract_strided_slice %22 {offsets = [0, 0], sizes = [8, 64], strides = [1, 1]} : vector<8x128xf32> to vector<8x64xf32>
    %26 = vector.extract_strided_slice %24 {offsets = [0, 0], sizes = [8, 64], strides = [1, 1]} : vector<8x128xf32> to vector<8x64xf32>
    %27 = arith.addf %25, %26 : vector<8x64xf32>
    %28 = arith.negf %27 : vector<8x64xf32>
    %29 = math.exp %28 : vector<8x64xf32>
    %cst_25 = arith.constant 1.000000e+00 : f32
    %30 = vector.broadcast %cst_25 : f32 to vector<8x64xf32>
    %31 = arith.addf %30, %29 : vector<8x64xf32>
    %32 = arith.divf %30, %31 : vector<8x64xf32>
    %33 = vector.extract_strided_slice %32 {offsets = [0, 0], sizes = [8, 32], strides = [1, 1]} : vector<8x64xf32> to vector<8x32xf32>
    %34 = vector.extract_strided_slice %32 {offsets = [0, 32], sizes = [8, 32], strides = [1, 1]} : vector<8x64xf32> to vector<8x32xf32>
    %35 = vector.extract_strided_slice %22 {offsets = [0, 64], sizes = [8, 32], strides = [1, 1]} : vector<8x128xf32> to vector<8x32xf32>
    %36 = vector.extract_strided_slice %24 {offsets = [0, 64], sizes = [8, 32], strides = [1, 1]} : vector<8x128xf32> to vector<8x32xf32>
    %37 = arith.mulf %33, %36 : vector<8x32xf32>
    %38 = arith.addf %35, %37 : vector<8x32xf32>
    %39 = math.tanh %38 : vector<8x32xf32>
    %cst_26 = arith.constant 1.000000e+00 : f32
    %40 = vector.broadcast %cst_26 : f32 to vector<8x32xf32>
    %41 = arith.subf %40, %34 : vector<8x32xf32>
    %42 = arith.mulf %41, %39 : vector<8x32xf32>
    %43 = arith.mulf %34, %19 : vector<8x32xf32>
    %44 = arith.addf %42, %43 : vector<8x32xf32>
    %cst_27 = arith.constant dense<0.000000e+00> : vector<8x128xf32>
    %45 = tpu.matmul %44, %15, %cst_27 {dimension_numbers = #tpu.dot_dimension_numbers<[1], [0], [0], [1], [0, 0, 1, 1], [], []>} : vector<8x32xf32>, vector<32x128xf32>, vector<8x128xf32> -> vector<8x128xf32>
    %46 = arith.addf %45, %18 : vector<8x128xf32>
    %c0_i32 = arith.constant 0 : i32
    %c15_i32 = arith.constant 15 : i32
    %47 = arith.addi %c0_i32, %c15_i32 : i32
    %c1_i32 = arith.constant 1 : i32
    %48:4 = scf.for %arg13 = %c0_i32 to %47 step %c1_i32 iter_args(%arg14 = %44, %arg15 = %20, %arg16 = %46, %arg17 = %21) -> (vector<8x32xf32>, vector<8x32xf32>, vector<8x128xf32>, vector<8x128xf32>)  : i32 {
      %c10_i32 = arith.constant 10 : i32
      %91 = arith.muli %arg13, %c10_i32 : i32
      %c1_i32_41 = arith.constant 1 : i32
      %92 = arith.addi %c1_i32_41, %91 : i32
      %c0_i32_42 = arith.constant 0 : i32
      %93 = arith.addi %92, %c0_i32_42 : i32
      %c8_i32 = arith.constant 8 : i32
      %94 = arith.muli %93, %c8_i32 : i32
      %95 = tpu.assume_multiple %94, 8 : i32
      %96 = arith.index_cast %95 : i32 to index
      %c0_43 = arith.constant 0 : index
      %97 = vector.load %arg12[%96, %c0_43] : memref<1208x128xf32, #tpu.memory_space<vmem>>, vector<8x128xf32>
      %cst_44 = arith.constant dense<0.000000e+00> : vector<8x128xf32>
      %98 = tpu.matmul %arg14, %7, %cst_44 {dimension_numbers = #tpu.dot_dimension_numbers<[1], [0], [0], [1], [0, 0, 1, 1], [], []>} : vector<8x32xf32>, vector<32x128xf32>, vector<8x128xf32> -> vector<8x128xf32>
      %99 = arith.addf %98, %11 : vector<8x128xf32>
      %100 = vector.extract_strided_slice %97 {offsets = [0, 0], sizes = [8, 64], strides = [1, 1]} : vector<8x128xf32> to vector<8x64xf32>
      %101 = vector.extract_strided_slice %99 {offsets = [0, 0], sizes = [8, 64], strides = [1, 1]} : vector<8x128xf32> to vector<8x64xf32>
      %102 = arith.addf %100, %101 : vector<8x64xf32>
      %103 = arith.negf %102 : vector<8x64xf32>
      %104 = math.exp %103 : vector<8x64xf32>
      %cst_45 = arith.constant 1.000000e+00 : f32
      %105 = vector.broadcast %cst_45 : f32 to vector<8x64xf32>
      %106 = arith.addf %105, %104 : vector<8x64xf32>
      %107 = arith.divf %105, %106 : vector<8x64xf32>
      %108 = vector.extract_strided_slice %107 {offsets = [0, 0], sizes = [8, 32], strides = [1, 1]} : vector<8x64xf32> to vector<8x32xf32>
      %109 = vector.extract_strided_slice %107 {offsets = [0, 32], sizes = [8, 32], strides = [1, 1]} : vector<8x64xf32> to vector<8x32xf32>
      %110 = vector.extract_strided_slice %97 {offsets = [0, 64], sizes = [8, 32], strides = [1, 1]} : vector<8x128xf32> to vector<8x32xf32>
      %111 = vector.extract_strided_slice %99 {offsets = [0, 64], sizes = [8, 32], strides = [1, 1]} : vector<8x128xf32> to vector<8x32xf32>
      %112 = arith.mulf %108, %111 : vector<8x32xf32>
      %113 = arith.addf %110, %112 : vector<8x32xf32>
      %114 = math.tanh %113 : vector<8x32xf32>
      %cst_46 = arith.constant 1.000000e+00 : f32
      %115 = vector.broadcast %cst_46 : f32 to vector<8x32xf32>
      %116 = arith.subf %115, %109 : vector<8x32xf32>
      %117 = arith.mulf %116, %114 : vector<8x32xf32>
      %118 = arith.mulf %109, %arg14 : vector<8x32xf32>
      %119 = arith.addf %117, %118 : vector<8x32xf32>
      %cst_47 = arith.constant dense<0.000000e+00> : vector<8x128xf32>
      %120 = tpu.matmul %119, %15, %cst_47 {dimension_numbers = #tpu.dot_dimension_numbers<[1], [0], [0], [1], [0, 0, 1, 1], [], []>} : vector<8x32xf32>, vector<32x128xf32>, vector<8x128xf32> -> vector<8x128xf32>
      %121 = arith.addf %120, %18 : vector<8x128xf32>
      %cst_48 = arith.constant dense<0.000000e+00> : vector<8x128xf32>
      %122 = tpu.matmul %arg15, %8, %cst_48 {dimension_numbers = #tpu.dot_dimension_numbers<[1], [0], [0], [1], [0, 0, 1, 1], [], []>} : vector<8x32xf32>, vector<32x128xf32>, vector<8x128xf32> -> vector<8x128xf32>
      %123 = arith.addf %122, %14 : vector<8x128xf32>
      %124 = vector.extract_strided_slice %arg16 {offsets = [0, 0], sizes = [8, 64], strides = [1, 1]} : vector<8x128xf32> to vector<8x64xf32>
      %125 = vector.extract_strided_slice %123 {offsets = [0, 0], sizes = [8, 64], strides = [1, 1]} : vector<8x128xf32> to vector<8x64xf32>
      %126 = arith.addf %124, %125 : vector<8x64xf32>
      %127 = arith.negf %126 : vector<8x64xf32>
      %128 = math.exp %127 : vector<8x64xf32>
      %cst_49 = arith.constant 1.000000e+00 : f32
      %129 = vector.broadcast %cst_49 : f32 to vector<8x64xf32>
      %130 = arith.addf %129, %128 : vector<8x64xf32>
      %131 = arith.divf %129, %130 : vector<8x64xf32>
      %132 = vector.extract_strided_slice %131 {offsets = [0, 0], sizes = [8, 32], strides = [1, 1]} : vector<8x64xf32> to vector<8x32xf32>
      %133 = vector.extract_strided_slice %131 {offsets = [0, 32], sizes = [8, 32], strides = [1, 1]} : vector<8x64xf32> to vector<8x32xf32>
      %134 = vector.extract_strided_slice %arg16 {offsets = [0, 64], sizes = [8, 32], strides = [1, 1]} : vector<8x128xf32> to vector<8x32xf32>
      %135 = vector.extract_strided_slice %123 {offsets = [0, 64], sizes = [8, 32], strides = [1, 1]} : vector<8x128xf32> to vector<8x32xf32>
      %136 = arith.mulf %132, %135 : vector<8x32xf32>
      %137 = arith.addf %134, %136 : vector<8x32xf32>
      %138 = math.tanh %137 : vector<8x32xf32>
      %cst_50 = arith.constant 1.000000e+00 : f32
      %139 = vector.broadcast %cst_50 : f32 to vector<8x32xf32>
      %140 = arith.subf %139, %133 : vector<8x32xf32>
      %141 = arith.mulf %140, %138 : vector<8x32xf32>
      %142 = arith.mulf %133, %arg15 : vector<8x32xf32>
      %143 = arith.addf %141, %142 : vector<8x32xf32>
      %c1_i32_51 = arith.constant 1 : i32
      %144 = arith.subi %93, %c1_i32_51 : i32
      %145 = arith.index_cast %144 : i32 to index
      %c0_52 = arith.constant 0 : index
      %c0_53 = arith.constant 0 : index
      %146 = vector.load %arg9[%145, %c0_52, %c0_53] : memref<151x32x128xf32, #tpu.memory_space<vmem>>, vector<1x32x128xf32>
      %147 = vector.shape_cast %146 : vector<1x32x128xf32> to vector<32x128xf32>
      %cst_54 = arith.constant dense<0.000000e+00> : vector<8x128xf32>
      %148 = tpu.matmul %143, %147, %cst_54 {dimension_numbers = #tpu.dot_dimension_numbers<[1], [0], [0], [1], [0, 0, 1, 1], [], []>} : vector<8x32xf32>, vector<32x128xf32>, vector<8x128xf32> -> vector<8x128xf32>
      %149 = arith.addf %arg17, %148 : vector<8x128xf32>
      %c1_i32_55 = arith.constant 1 : i32
      %150 = arith.addi %92, %c1_i32_55 : i32
      %c8_i32_56 = arith.constant 8 : i32
      %151 = arith.muli %150, %c8_i32_56 : i32
      %152 = tpu.assume_multiple %151, 8 : i32
      %153 = arith.index_cast %152 : i32 to index
      %c0_57 = arith.constant 0 : index
      %154 = vector.load %arg12[%153, %c0_57] : memref<1208x128xf32, #tpu.memory_space<vmem>>, vector<8x128xf32>
      %cst_58 = arith.constant dense<0.000000e+00> : vector<8x128xf32>
      %155 = tpu.matmul %119, %7, %cst_58 {dimension_numbers = #tpu.dot_dimension_numbers<[1], [0], [0], [1], [0, 0, 1, 1], [], []>} : vector<8x32xf32>, vector<32x128xf32>, vector<8x128xf32> -> vector<8x128xf32>
      %156 = arith.addf %155, %11 : vector<8x128xf32>
      %157 = vector.extract_strided_slice %154 {offsets = [0, 0], sizes = [8, 64], strides = [1, 1]} : vector<8x128xf32> to vector<8x64xf32>
      %158 = vector.extract_strided_slice %156 {offsets = [0, 0], sizes = [8, 64], strides = [1, 1]} : vector<8x128xf32> to vector<8x64xf32>
      %159 = arith.addf %157, %158 : vector<8x64xf32>
      %160 = arith.negf %159 : vector<8x64xf32>
      %161 = math.exp %160 : vector<8x64xf32>
      %cst_59 = arith.constant 1.000000e+00 : f32
      %162 = vector.broadcast %cst_59 : f32 to vector<8x64xf32>
      %163 = arith.addf %162, %161 : vector<8x64xf32>
      %164 = arith.divf %162, %163 : vector<8x64xf32>
      %165 = vector.extract_strided_slice %164 {offsets = [0, 0], sizes = [8, 32], strides = [1, 1]} : vector<8x64xf32> to vector<8x32xf32>
      %166 = vector.extract_strided_slice %164 {offsets = [0, 32], sizes = [8, 32], strides = [1, 1]} : vector<8x64xf32> to vector<8x32xf32>
      %167 = vector.extract_strided_slice %154 {offsets = [0, 64], sizes = [8, 32], strides = [1, 1]} : vector<8x128xf32> to vector<8x32xf32>
      %168 = vector.extract_strided_slice %156 {offsets = [0, 64], sizes = [8, 32], strides = [1, 1]} : vector<8x128xf32> to vector<8x32xf32>
      %169 = arith.mulf %165, %168 : vector<8x32xf32>
      %170 = arith.addf %167, %169 : vector<8x32xf32>
      %171 = math.tanh %170 : vector<8x32xf32>
      %cst_60 = arith.constant 1.000000e+00 : f32
      %172 = vector.broadcast %cst_60 : f32 to vector<8x32xf32>
      %173 = arith.subf %172, %166 : vector<8x32xf32>
      %174 = arith.mulf %173, %171 : vector<8x32xf32>
      %175 = arith.mulf %166, %119 : vector<8x32xf32>
      %176 = arith.addf %174, %175 : vector<8x32xf32>
      %cst_61 = arith.constant dense<0.000000e+00> : vector<8x128xf32>
      %177 = tpu.matmul %176, %15, %cst_61 {dimension_numbers = #tpu.dot_dimension_numbers<[1], [0], [0], [1], [0, 0, 1, 1], [], []>} : vector<8x32xf32>, vector<32x128xf32>, vector<8x128xf32> -> vector<8x128xf32>
      %178 = arith.addf %177, %18 : vector<8x128xf32>
      %cst_62 = arith.constant dense<0.000000e+00> : vector<8x128xf32>
      %179 = tpu.matmul %143, %8, %cst_62 {dimension_numbers = #tpu.dot_dimension_numbers<[1], [0], [0], [1], [0, 0, 1, 1], [], []>} : vector<8x32xf32>, vector<32x128xf32>, vector<8x128xf32> -> vector<8x128xf32>
      %180 = arith.addf %179, %14 : vector<8x128xf32>
      %181 = vector.extract_strided_slice %121 {offsets = [0, 0], sizes = [8, 64], strides = [1, 1]} : vector<8x128xf32> to vector<8x64xf32>
      %182 = vector.extract_strided_slice %180 {offsets = [0, 0], sizes = [8, 64], strides = [1, 1]} : vector<8x128xf32> to vector<8x64xf32>
      %183 = arith.addf %181, %182 : vector<8x64xf32>
      %184 = arith.negf %183 : vector<8x64xf32>
      %185 = math.exp %184 : vector<8x64xf32>
      %cst_63 = arith.constant 1.000000e+00 : f32
      %186 = vector.broadcast %cst_63 : f32 to vector<8x64xf32>
      %187 = arith.addf %186, %185 : vector<8x64xf32>
      %188 = arith.divf %186, %187 : vector<8x64xf32>
      %189 = vector.extract_strided_slice %188 {offsets = [0, 0], sizes = [8, 32], strides = [1, 1]} : vector<8x64xf32> to vector<8x32xf32>
      %190 = vector.extract_strided_slice %188 {offsets = [0, 32], sizes = [8, 32], strides = [1, 1]} : vector<8x64xf32> to vector<8x32xf32>
      %191 = vector.extract_strided_slice %121 {offsets = [0, 64], sizes = [8, 32], strides = [1, 1]} : vector<8x128xf32> to vector<8x32xf32>
      %192 = vector.extract_strided_slice %180 {offsets = [0, 64], sizes = [8, 32], strides = [1, 1]} : vector<8x128xf32> to vector<8x32xf32>
      %193 = arith.mulf %189, %192 : vector<8x32xf32>
      %194 = arith.addf %191, %193 : vector<8x32xf32>
      %195 = math.tanh %194 : vector<8x32xf32>
      %cst_64 = arith.constant 1.000000e+00 : f32
      %196 = vector.broadcast %cst_64 : f32 to vector<8x32xf32>
      %197 = arith.subf %196, %190 : vector<8x32xf32>
      %198 = arith.mulf %197, %195 : vector<8x32xf32>
      %199 = arith.mulf %190, %143 : vector<8x32xf32>
      %200 = arith.addf %198, %199 : vector<8x32xf32>
      %c1_i32_65 = arith.constant 1 : i32
      %201 = arith.subi %150, %c1_i32_65 : i32
      %202 = arith.index_cast %201 : i32 to index
      %c0_66 = arith.constant 0 : index
      %c0_67 = arith.constant 0 : index
      %203 = vector.load %arg9[%202, %c0_66, %c0_67] : memref<151x32x128xf32, #tpu.memory_space<vmem>>, vector<1x32x128xf32>
      %204 = vector.shape_cast %203 : vector<1x32x128xf32> to vector<32x128xf32>
      %cst_68 = arith.constant dense<0.000000e+00> : vector<8x128xf32>
      %205 = tpu.matmul %200, %204, %cst_68 {dimension_numbers = #tpu.dot_dimension_numbers<[1], [0], [0], [1], [0, 0, 1, 1], [], []>} : vector<8x32xf32>, vector<32x128xf32>, vector<8x128xf32> -> vector<8x128xf32>
      %206 = arith.addf %149, %205 : vector<8x128xf32>
      %c2_i32 = arith.constant 2 : i32
      %207 = arith.addi %92, %c2_i32 : i32
      %c8_i32_69 = arith.constant 8 : i32
      %208 = arith.muli %207, %c8_i32_69 : i32
      %209 = tpu.assume_multiple %208, 8 : i32
      %210 = arith.index_cast %209 : i32 to index
      %c0_70 = arith.constant 0 : index
      %211 = vector.load %arg12[%210, %c0_70] : memref<1208x128xf32, #tpu.memory_space<vmem>>, vector<8x128xf32>
      %cst_71 = arith.constant dense<0.000000e+00> : vector<8x128xf32>
      %212 = tpu.matmul %176, %7, %cst_71 {dimension_numbers = #tpu.dot_dimension_numbers<[1], [0], [0], [1], [0, 0, 1, 1], [], []>} : vector<8x32xf32>, vector<32x128xf32>, vector<8x128xf32> -> vector<8x128xf32>
      %213 = arith.addf %212, %11 : vector<8x128xf32>
      %214 = vector.extract_strided_slice %211 {offsets = [0, 0], sizes = [8, 64], strides = [1, 1]} : vector<8x128xf32> to vector<8x64xf32>
      %215 = vector.extract_strided_slice %213 {offsets = [0, 0], sizes = [8, 64], strides = [1, 1]} : vector<8x128xf32> to vector<8x64xf32>
      %216 = arith.addf %214, %215 : vector<8x64xf32>
      %217 = arith.negf %216 : vector<8x64xf32>
      %218 = math.exp %217 : vector<8x64xf32>
      %cst_72 = arith.constant 1.000000e+00 : f32
      %219 = vector.broadcast %cst_72 : f32 to vector<8x64xf32>
      %220 = arith.addf %219, %218 : vector<8x64xf32>
      %221 = arith.divf %219, %220 : vector<8x64xf32>
      %222 = vector.extract_strided_slice %221 {offsets = [0, 0], sizes = [8, 32], strides = [1, 1]} : vector<8x64xf32> to vector<8x32xf32>
      %223 = vector.extract_strided_slice %221 {offsets = [0, 32], sizes = [8, 32], strides = [1, 1]} : vector<8x64xf32> to vector<8x32xf32>
      %224 = vector.extract_strided_slice %211 {offsets = [0, 64], sizes = [8, 32], strides = [1, 1]} : vector<8x128xf32> to vector<8x32xf32>
      %225 = vector.extract_strided_slice %213 {offsets = [0, 64], sizes = [8, 32], strides = [1, 1]} : vector<8x128xf32> to vector<8x32xf32>
      %226 = arith.mulf %222, %225 : vector<8x32xf32>
      %227 = arith.addf %224, %226 : vector<8x32xf32>
      %228 = math.tanh %227 : vector<8x32xf32>
      %cst_73 = arith.constant 1.000000e+00 : f32
      %229 = vector.broadcast %cst_73 : f32 to vector<8x32xf32>
      %230 = arith.subf %229, %223 : vector<8x32xf32>
      %231 = arith.mulf %230, %228 : vector<8x32xf32>
      %232 = arith.mulf %223, %176 : vector<8x32xf32>
      %233 = arith.addf %231, %232 : vector<8x32xf32>
      %cst_74 = arith.constant dense<0.000000e+00> : vector<8x128xf32>
      %234 = tpu.matmul %233, %15, %cst_74 {dimension_numbers = #tpu.dot_dimension_numbers<[1], [0], [0], [1], [0, 0, 1, 1], [], []>} : vector<8x32xf32>, vector<32x128xf32>, vector<8x128xf32> -> vector<8x128xf32>
      %235 = arith.addf %234, %18 : vector<8x128xf32>
      %cst_75 = arith.constant dense<0.000000e+00> : vector<8x128xf32>
      %236 = tpu.matmul %200, %8, %cst_75 {dimension_numbers = #tpu.dot_dimension_numbers<[1], [0], [0], [1], [0, 0, 1, 1], [], []>} : vector<8x32xf32>, vector<32x128xf32>, vector<8x128xf32> -> vector<8x128xf32>
      %237 = arith.addf %236, %14 : vector<8x128xf32>
      %238 = vector.extract_strided_slice %178 {offsets = [0, 0], sizes = [8, 64], strides = [1, 1]} : vector<8x128xf32> to vector<8x64xf32>
      %239 = vector.extract_strided_slice %237 {offsets = [0, 0], sizes = [8, 64], strides = [1, 1]} : vector<8x128xf32> to vector<8x64xf32>
      %240 = arith.addf %238, %239 : vector<8x64xf32>
      %241 = arith.negf %240 : vector<8x64xf32>
      %242 = math.exp %241 : vector<8x64xf32>
      %cst_76 = arith.constant 1.000000e+00 : f32
      %243 = vector.broadcast %cst_76 : f32 to vector<8x64xf32>
      %244 = arith.addf %243, %242 : vector<8x64xf32>
      %245 = arith.divf %243, %244 : vector<8x64xf32>
      %246 = vector.extract_strided_slice %245 {offsets = [0, 0], sizes = [8, 32], strides = [1, 1]} : vector<8x64xf32> to vector<8x32xf32>
      %247 = vector.extract_strided_slice %245 {offsets = [0, 32], sizes = [8, 32], strides = [1, 1]} : vector<8x64xf32> to vector<8x32xf32>
      %248 = vector.extract_strided_slice %178 {offsets = [0, 64], sizes = [8, 32], strides = [1, 1]} : vector<8x128xf32> to vector<8x32xf32>
      %249 = vector.extract_strided_slice %237 {offsets = [0, 64], sizes = [8, 32], strides = [1, 1]} : vector<8x128xf32> to vector<8x32xf32>
      %250 = arith.mulf %246, %249 : vector<8x32xf32>
      %251 = arith.addf %248, %250 : vector<8x32xf32>
      %252 = math.tanh %251 : vector<8x32xf32>
      %cst_77 = arith.constant 1.000000e+00 : f32
      %253 = vector.broadcast %cst_77 : f32 to vector<8x32xf32>
      %254 = arith.subf %253, %247 : vector<8x32xf32>
      %255 = arith.mulf %254, %252 : vector<8x32xf32>
      %256 = arith.mulf %247, %200 : vector<8x32xf32>
      %257 = arith.addf %255, %256 : vector<8x32xf32>
      %c1_i32_78 = arith.constant 1 : i32
      %258 = arith.subi %207, %c1_i32_78 : i32
      %259 = arith.index_cast %258 : i32 to index
      %c0_79 = arith.constant 0 : index
      %c0_80 = arith.constant 0 : index
      %260 = vector.load %arg9[%259, %c0_79, %c0_80] : memref<151x32x128xf32, #tpu.memory_space<vmem>>, vector<1x32x128xf32>
      %261 = vector.shape_cast %260 : vector<1x32x128xf32> to vector<32x128xf32>
      %cst_81 = arith.constant dense<0.000000e+00> : vector<8x128xf32>
      %262 = tpu.matmul %257, %261, %cst_81 {dimension_numbers = #tpu.dot_dimension_numbers<[1], [0], [0], [1], [0, 0, 1, 1], [], []>} : vector<8x32xf32>, vector<32x128xf32>, vector<8x128xf32> -> vector<8x128xf32>
      %263 = arith.addf %206, %262 : vector<8x128xf32>
      %c3_i32 = arith.constant 3 : i32
      %264 = arith.addi %92, %c3_i32 : i32
      %c8_i32_82 = arith.constant 8 : i32
      %265 = arith.muli %264, %c8_i32_82 : i32
      %266 = tpu.assume_multiple %265, 8 : i32
      %267 = arith.index_cast %266 : i32 to index
      %c0_83 = arith.constant 0 : index
      %268 = vector.load %arg12[%267, %c0_83] : memref<1208x128xf32, #tpu.memory_space<vmem>>, vector<8x128xf32>
      %cst_84 = arith.constant dense<0.000000e+00> : vector<8x128xf32>
      %269 = tpu.matmul %233, %7, %cst_84 {dimension_numbers = #tpu.dot_dimension_numbers<[1], [0], [0], [1], [0, 0, 1, 1], [], []>} : vector<8x32xf32>, vector<32x128xf32>, vector<8x128xf32> -> vector<8x128xf32>
      %270 = arith.addf %269, %11 : vector<8x128xf32>
      %271 = vector.extract_strided_slice %268 {offsets = [0, 0], sizes = [8, 64], strides = [1, 1]} : vector<8x128xf32> to vector<8x64xf32>
      %272 = vector.extract_strided_slice %270 {offsets = [0, 0], sizes = [8, 64], strides = [1, 1]} : vector<8x128xf32> to vector<8x64xf32>
      %273 = arith.addf %271, %272 : vector<8x64xf32>
      %274 = arith.negf %273 : vector<8x64xf32>
      %275 = math.exp %274 : vector<8x64xf32>
      %cst_85 = arith.constant 1.000000e+00 : f32
      %276 = vector.broadcast %cst_85 : f32 to vector<8x64xf32>
      %277 = arith.addf %276, %275 : vector<8x64xf32>
      %278 = arith.divf %276, %277 : vector<8x64xf32>
      %279 = vector.extract_strided_slice %278 {offsets = [0, 0], sizes = [8, 32], strides = [1, 1]} : vector<8x64xf32> to vector<8x32xf32>
      %280 = vector.extract_strided_slice %278 {offsets = [0, 32], sizes = [8, 32], strides = [1, 1]} : vector<8x64xf32> to vector<8x32xf32>
      %281 = vector.extract_strided_slice %268 {offsets = [0, 64], sizes = [8, 32], strides = [1, 1]} : vector<8x128xf32> to vector<8x32xf32>
      %282 = vector.extract_strided_slice %270 {offsets = [0, 64], sizes = [8, 32], strides = [1, 1]} : vector<8x128xf32> to vector<8x32xf32>
      %283 = arith.mulf %279, %282 : vector<8x32xf32>
      %284 = arith.addf %281, %283 : vector<8x32xf32>
      %285 = math.tanh %284 : vector<8x32xf32>
      %cst_86 = arith.constant 1.000000e+00 : f32
      %286 = vector.broadcast %cst_86 : f32 to vector<8x32xf32>
      %287 = arith.subf %286, %280 : vector<8x32xf32>
      %288 = arith.mulf %287, %285 : vector<8x32xf32>
      %289 = arith.mulf %280, %233 : vector<8x32xf32>
      %290 = arith.addf %288, %289 : vector<8x32xf32>
      %cst_87 = arith.constant dense<0.000000e+00> : vector<8x128xf32>
      %291 = tpu.matmul %290, %15, %cst_87 {dimension_numbers = #tpu.dot_dimension_numbers<[1], [0], [0], [1], [0, 0, 1, 1], [], []>} : vector<8x32xf32>, vector<32x128xf32>, vector<8x128xf32> -> vector<8x128xf32>
      %292 = arith.addf %291, %18 : vector<8x128xf32>
      %cst_88 = arith.constant dense<0.000000e+00> : vector<8x128xf32>
      %293 = tpu.matmul %257, %8, %cst_88 {dimension_numbers = #tpu.dot_dimension_numbers<[1], [0], [0], [1], [0, 0, 1, 1], [], []>} : vector<8x32xf32>, vector<32x128xf32>, vector<8x128xf32> -> vector<8x128xf32>
      %294 = arith.addf %293, %14 : vector<8x128xf32>
      %295 = vector.extract_strided_slice %235 {offsets = [0, 0], sizes = [8, 64], strides = [1, 1]} : vector<8x128xf32> to vector<8x64xf32>
      %296 = vector.extract_strided_slice %294 {offsets = [0, 0], sizes = [8, 64], strides = [1, 1]} : vector<8x128xf32> to vector<8x64xf32>
      %297 = arith.addf %295, %296 : vector<8x64xf32>
      %298 = arith.negf %297 : vector<8x64xf32>
      %299 = math.exp %298 : vector<8x64xf32>
      %cst_89 = arith.constant 1.000000e+00 : f32
      %300 = vector.broadcast %cst_89 : f32 to vector<8x64xf32>
      %301 = arith.addf %300, %299 : vector<8x64xf32>
      %302 = arith.divf %300, %301 : vector<8x64xf32>
      %303 = vector.extract_strided_slice %302 {offsets = [0, 0], sizes = [8, 32], strides = [1, 1]} : vector<8x64xf32> to vector<8x32xf32>
      %304 = vector.extract_strided_slice %302 {offsets = [0, 32], sizes = [8, 32], strides = [1, 1]} : vector<8x64xf32> to vector<8x32xf32>
      %305 = vector.extract_strided_slice %235 {offsets = [0, 64], sizes = [8, 32], strides = [1, 1]} : vector<8x128xf32> to vector<8x32xf32>
      %306 = vector.extract_strided_slice %294 {offsets = [0, 64], sizes = [8, 32], strides = [1, 1]} : vector<8x128xf32> to vector<8x32xf32>
      %307 = arith.mulf %303, %306 : vector<8x32xf32>
      %308 = arith.addf %305, %307 : vector<8x32xf32>
      %309 = math.tanh %308 : vector<8x32xf32>
      %cst_90 = arith.constant 1.000000e+00 : f32
      %310 = vector.broadcast %cst_90 : f32 to vector<8x32xf32>
      %311 = arith.subf %310, %304 : vector<8x32xf32>
      %312 = arith.mulf %311, %309 : vector<8x32xf32>
      %313 = arith.mulf %304, %257 : vector<8x32xf32>
      %314 = arith.addf %312, %313 : vector<8x32xf32>
      %c1_i32_91 = arith.constant 1 : i32
      %315 = arith.subi %264, %c1_i32_91 : i32
      %316 = arith.index_cast %315 : i32 to index
      %c0_92 = arith.constant 0 : index
      %c0_93 = arith.constant 0 : index
      %317 = vector.load %arg9[%316, %c0_92, %c0_93] : memref<151x32x128xf32, #tpu.memory_space<vmem>>, vector<1x32x128xf32>
      %318 = vector.shape_cast %317 : vector<1x32x128xf32> to vector<32x128xf32>
      %cst_94 = arith.constant dense<0.000000e+00> : vector<8x128xf32>
      %319 = tpu.matmul %314, %318, %cst_94 {dimension_numbers = #tpu.dot_dimension_numbers<[1], [0], [0], [1], [0, 0, 1, 1], [], []>} : vector<8x32xf32>, vector<32x128xf32>, vector<8x128xf32> -> vector<8x128xf32>
      %320 = arith.addf %263, %319 : vector<8x128xf32>
      %c4_i32 = arith.constant 4 : i32
      %321 = arith.addi %92, %c4_i32 : i32
      %c8_i32_95 = arith.constant 8 : i32
      %322 = arith.muli %321, %c8_i32_95 : i32
      %323 = tpu.assume_multiple %322, 8 : i32
      %324 = arith.index_cast %323 : i32 to index
      %c0_96 = arith.constant 0 : index
      %325 = vector.load %arg12[%324, %c0_96] : memref<1208x128xf32, #tpu.memory_space<vmem>>, vector<8x128xf32>
      %cst_97 = arith.constant dense<0.000000e+00> : vector<8x128xf32>
      %326 = tpu.matmul %290, %7, %cst_97 {dimension_numbers = #tpu.dot_dimension_numbers<[1], [0], [0], [1], [0, 0, 1, 1], [], []>} : vector<8x32xf32>, vector<32x128xf32>, vector<8x128xf32> -> vector<8x128xf32>
      %327 = arith.addf %326, %11 : vector<8x128xf32>
      %328 = vector.extract_strided_slice %325 {offsets = [0, 0], sizes = [8, 64], strides = [1, 1]} : vector<8x128xf32> to vector<8x64xf32>
      %329 = vector.extract_strided_slice %327 {offsets = [0, 0], sizes = [8, 64], strides = [1, 1]} : vector<8x128xf32> to vector<8x64xf32>
      %330 = arith.addf %328, %329 : vector<8x64xf32>
      %331 = arith.negf %330 : vector<8x64xf32>
      %332 = math.exp %331 : vector<8x64xf32>
      %cst_98 = arith.constant 1.000000e+00 : f32
      %333 = vector.broadcast %cst_98 : f32 to vector<8x64xf32>
      %334 = arith.addf %333, %332 : vector<8x64xf32>
      %335 = arith.divf %333, %334 : vector<8x64xf32>
      %336 = vector.extract_strided_slice %335 {offsets = [0, 0], sizes = [8, 32], strides = [1, 1]} : vector<8x64xf32> to vector<8x32xf32>
      %337 = vector.extract_strided_slice %335 {offsets = [0, 32], sizes = [8, 32], strides = [1, 1]} : vector<8x64xf32> to vector<8x32xf32>
      %338 = vector.extract_strided_slice %325 {offsets = [0, 64], sizes = [8, 32], strides = [1, 1]} : vector<8x128xf32> to vector<8x32xf32>
      %339 = vector.extract_strided_slice %327 {offsets = [0, 64], sizes = [8, 32], strides = [1, 1]} : vector<8x128xf32> to vector<8x32xf32>
      %340 = arith.mulf %336, %339 : vector<8x32xf32>
      %341 = arith.addf %338, %340 : vector<8x32xf32>
      %342 = math.tanh %341 : vector<8x32xf32>
      %cst_99 = arith.constant 1.000000e+00 : f32
      %343 = vector.broadcast %cst_99 : f32 to vector<8x32xf32>
      %344 = arith.subf %343, %337 : vector<8x32xf32>
      %345 = arith.mulf %344, %342 : vector<8x32xf32>
      %346 = arith.mulf %337, %290 : vector<8x32xf32>
      %347 = arith.addf %345, %346 : vector<8x32xf32>
      %cst_100 = arith.constant dense<0.000000e+00> : vector<8x128xf32>
      %348 = tpu.matmul %347, %15, %cst_100 {dimension_numbers = #tpu.dot_dimension_numbers<[1], [0], [0], [1], [0, 0, 1, 1], [], []>} : vector<8x32xf32>, vector<32x128xf32>, vector<8x128xf32> -> vector<8x128xf32>
      %349 = arith.addf %348, %18 : vector<8x128xf32>
      %cst_101 = arith.constant dense<0.000000e+00> : vector<8x128xf32>
      %350 = tpu.matmul %314, %8, %cst_101 {dimension_numbers = #tpu.dot_dimension_numbers<[1], [0], [0], [1], [0, 0, 1, 1], [], []>} : vector<8x32xf32>, vector<32x128xf32>, vector<8x128xf32> -> vector<8x128xf32>
      %351 = arith.addf %350, %14 : vector<8x128xf32>
      %352 = vector.extract_strided_slice %292 {offsets = [0, 0], sizes = [8, 64], strides = [1, 1]} : vector<8x128xf32> to vector<8x64xf32>
      %353 = vector.extract_strided_slice %351 {offsets = [0, 0], sizes = [8, 64], strides = [1, 1]} : vector<8x128xf32> to vector<8x64xf32>
      %354 = arith.addf %352, %353 : vector<8x64xf32>
      %355 = arith.negf %354 : vector<8x64xf32>
      %356 = math.exp %355 : vector<8x64xf32>
      %cst_102 = arith.constant 1.000000e+00 : f32
      %357 = vector.broadcast %cst_102 : f32 to vector<8x64xf32>
      %358 = arith.addf %357, %356 : vector<8x64xf32>
      %359 = arith.divf %357, %358 : vector<8x64xf32>
      %360 = vector.extract_strided_slice %359 {offsets = [0, 0], sizes = [8, 32], strides = [1, 1]} : vector<8x64xf32> to vector<8x32xf32>
      %361 = vector.extract_strided_slice %359 {offsets = [0, 32], sizes = [8, 32], strides = [1, 1]} : vector<8x64xf32> to vector<8x32xf32>
      %362 = vector.extract_strided_slice %292 {offsets = [0, 64], sizes = [8, 32], strides = [1, 1]} : vector<8x128xf32> to vector<8x32xf32>
      %363 = vector.extract_strided_slice %351 {offsets = [0, 64], sizes = [8, 32], strides = [1, 1]} : vector<8x128xf32> to vector<8x32xf32>
      %364 = arith.mulf %360, %363 : vector<8x32xf32>
      %365 = arith.addf %362, %364 : vector<8x32xf32>
      %366 = math.tanh %365 : vector<8x32xf32>
      %cst_103 = arith.constant 1.000000e+00 : f32
      %367 = vector.broadcast %cst_103 : f32 to vector<8x32xf32>
      %368 = arith.subf %367, %361 : vector<8x32xf32>
      %369 = arith.mulf %368, %366 : vector<8x32xf32>
      %370 = arith.mulf %361, %314 : vector<8x32xf32>
      %371 = arith.addf %369, %370 : vector<8x32xf32>
      %c1_i32_104 = arith.constant 1 : i32
      %372 = arith.subi %321, %c1_i32_104 : i32
      %373 = arith.index_cast %372 : i32 to index
      %c0_105 = arith.constant 0 : index
      %c0_106 = arith.constant 0 : index
      %374 = vector.load %arg9[%373, %c0_105, %c0_106] : memref<151x32x128xf32, #tpu.memory_space<vmem>>, vector<1x32x128xf32>
      %375 = vector.shape_cast %374 : vector<1x32x128xf32> to vector<32x128xf32>
      %cst_107 = arith.constant dense<0.000000e+00> : vector<8x128xf32>
      %376 = tpu.matmul %371, %375, %cst_107 {dimension_numbers = #tpu.dot_dimension_numbers<[1], [0], [0], [1], [0, 0, 1, 1], [], []>} : vector<8x32xf32>, vector<32x128xf32>, vector<8x128xf32> -> vector<8x128xf32>
      %377 = arith.addf %320, %376 : vector<8x128xf32>
      %c5_i32 = arith.constant 5 : i32
      %378 = arith.addi %92, %c5_i32 : i32
      %c8_i32_108 = arith.constant 8 : i32
      %379 = arith.muli %378, %c8_i32_108 : i32
      %380 = tpu.assume_multiple %379, 8 : i32
      %381 = arith.index_cast %380 : i32 to index
      %c0_109 = arith.constant 0 : index
      %382 = vector.load %arg12[%381, %c0_109] : memref<1208x128xf32, #tpu.memory_space<vmem>>, vector<8x128xf32>
      %cst_110 = arith.constant dense<0.000000e+00> : vector<8x128xf32>
      %383 = tpu.matmul %347, %7, %cst_110 {dimension_numbers = #tpu.dot_dimension_numbers<[1], [0], [0], [1], [0, 0, 1, 1], [], []>} : vector<8x32xf32>, vector<32x128xf32>, vector<8x128xf32> -> vector<8x128xf32>
      %384 = arith.addf %383, %11 : vector<8x128xf32>
      %385 = vector.extract_strided_slice %382 {offsets = [0, 0], sizes = [8, 64], strides = [1, 1]} : vector<8x128xf32> to vector<8x64xf32>
      %386 = vector.extract_strided_slice %384 {offsets = [0, 0], sizes = [8, 64], strides = [1, 1]} : vector<8x128xf32> to vector<8x64xf32>
      %387 = arith.addf %385, %386 : vector<8x64xf32>
      %388 = arith.negf %387 : vector<8x64xf32>
      %389 = math.exp %388 : vector<8x64xf32>
      %cst_111 = arith.constant 1.000000e+00 : f32
      %390 = vector.broadcast %cst_111 : f32 to vector<8x64xf32>
      %391 = arith.addf %390, %389 : vector<8x64xf32>
      %392 = arith.divf %390, %391 : vector<8x64xf32>
      %393 = vector.extract_strided_slice %392 {offsets = [0, 0], sizes = [8, 32], strides = [1, 1]} : vector<8x64xf32> to vector<8x32xf32>
      %394 = vector.extract_strided_slice %392 {offsets = [0, 32], sizes = [8, 32], strides = [1, 1]} : vector<8x64xf32> to vector<8x32xf32>
      %395 = vector.extract_strided_slice %382 {offsets = [0, 64], sizes = [8, 32], strides = [1, 1]} : vector<8x128xf32> to vector<8x32xf32>
      %396 = vector.extract_strided_slice %384 {offsets = [0, 64], sizes = [8, 32], strides = [1, 1]} : vector<8x128xf32> to vector<8x32xf32>
      %397 = arith.mulf %393, %396 : vector<8x32xf32>
      %398 = arith.addf %395, %397 : vector<8x32xf32>
      %399 = math.tanh %398 : vector<8x32xf32>
      %cst_112 = arith.constant 1.000000e+00 : f32
      %400 = vector.broadcast %cst_112 : f32 to vector<8x32xf32>
      %401 = arith.subf %400, %394 : vector<8x32xf32>
      %402 = arith.mulf %401, %399 : vector<8x32xf32>
      %403 = arith.mulf %394, %347 : vector<8x32xf32>
      %404 = arith.addf %402, %403 : vector<8x32xf32>
      %cst_113 = arith.constant dense<0.000000e+00> : vector<8x128xf32>
      %405 = tpu.matmul %404, %15, %cst_113 {dimension_numbers = #tpu.dot_dimension_numbers<[1], [0], [0], [1], [0, 0, 1, 1], [], []>} : vector<8x32xf32>, vector<32x128xf32>, vector<8x128xf32> -> vector<8x128xf32>
      %406 = arith.addf %405, %18 : vector<8x128xf32>
      %cst_114 = arith.constant dense<0.000000e+00> : vector<8x128xf32>
      %407 = tpu.matmul %371, %8, %cst_114 {dimension_numbers = #tpu.dot_dimension_numbers<[1], [0], [0], [1], [0, 0, 1, 1], [], []>} : vector<8x32xf32>, vector<32x128xf32>, vector<8x128xf32> -> vector<8x128xf32>
      %408 = arith.addf %407, %14 : vector<8x128xf32>
      %409 = vector.extract_strided_slice %349 {offsets = [0, 0], sizes = [8, 64], strides = [1, 1]} : vector<8x128xf32> to vector<8x64xf32>
      %410 = vector.extract_strided_slice %408 {offsets = [0, 0], sizes = [8, 64], strides = [1, 1]} : vector<8x128xf32> to vector<8x64xf32>
      %411 = arith.addf %409, %410 : vector<8x64xf32>
      %412 = arith.negf %411 : vector<8x64xf32>
      %413 = math.exp %412 : vector<8x64xf32>
      %cst_115 = arith.constant 1.000000e+00 : f32
      %414 = vector.broadcast %cst_115 : f32 to vector<8x64xf32>
      %415 = arith.addf %414, %413 : vector<8x64xf32>
      %416 = arith.divf %414, %415 : vector<8x64xf32>
      %417 = vector.extract_strided_slice %416 {offsets = [0, 0], sizes = [8, 32], strides = [1, 1]} : vector<8x64xf32> to vector<8x32xf32>
      %418 = vector.extract_strided_slice %416 {offsets = [0, 32], sizes = [8, 32], strides = [1, 1]} : vector<8x64xf32> to vector<8x32xf32>
      %419 = vector.extract_strided_slice %349 {offsets = [0, 64], sizes = [8, 32], strides = [1, 1]} : vector<8x128xf32> to vector<8x32xf32>
      %420 = vector.extract_strided_slice %408 {offsets = [0, 64], sizes = [8, 32], strides = [1, 1]} : vector<8x128xf32> to vector<8x32xf32>
      %421 = arith.mulf %417, %420 : vector<8x32xf32>
      %422 = arith.addf %419, %421 : vector<8x32xf32>
      %423 = math.tanh %422 : vector<8x32xf32>
      %cst_116 = arith.constant 1.000000e+00 : f32
      %424 = vector.broadcast %cst_116 : f32 to vector<8x32xf32>
      %425 = arith.subf %424, %418 : vector<8x32xf32>
      %426 = arith.mulf %425, %423 : vector<8x32xf32>
      %427 = arith.mulf %418, %371 : vector<8x32xf32>
      %428 = arith.addf %426, %427 : vector<8x32xf32>
      %c1_i32_117 = arith.constant 1 : i32
      %429 = arith.subi %378, %c1_i32_117 : i32
      %430 = arith.index_cast %429 : i32 to index
      %c0_118 = arith.constant 0 : index
      %c0_119 = arith.constant 0 : index
      %431 = vector.load %arg9[%430, %c0_118, %c0_119] : memref<151x32x128xf32, #tpu.memory_space<vmem>>, vector<1x32x128xf32>
      %432 = vector.shape_cast %431 : vector<1x32x128xf32> to vector<32x128xf32>
      %cst_120 = arith.constant dense<0.000000e+00> : vector<8x128xf32>
      %433 = tpu.matmul %428, %432, %cst_120 {dimension_numbers = #tpu.dot_dimension_numbers<[1], [0], [0], [1], [0, 0, 1, 1], [], []>} : vector<8x32xf32>, vector<32x128xf32>, vector<8x128xf32> -> vector<8x128xf32>
      %434 = arith.addf %377, %433 : vector<8x128xf32>
      %c6_i32 = arith.constant 6 : i32
      %435 = arith.addi %92, %c6_i32 : i32
      %c8_i32_121 = arith.constant 8 : i32
      %436 = arith.muli %435, %c8_i32_121 : i32
      %437 = tpu.assume_multiple %436, 8 : i32
      %438 = arith.index_cast %437 : i32 to index
      %c0_122 = arith.constant 0 : index
      %439 = vector.load %arg12[%438, %c0_122] : memref<1208x128xf32, #tpu.memory_space<vmem>>, vector<8x128xf32>
      %cst_123 = arith.constant dense<0.000000e+00> : vector<8x128xf32>
      %440 = tpu.matmul %404, %7, %cst_123 {dimension_numbers = #tpu.dot_dimension_numbers<[1], [0], [0], [1], [0, 0, 1, 1], [], []>} : vector<8x32xf32>, vector<32x128xf32>, vector<8x128xf32> -> vector<8x128xf32>
      %441 = arith.addf %440, %11 : vector<8x128xf32>
      %442 = vector.extract_strided_slice %439 {offsets = [0, 0], sizes = [8, 64], strides = [1, 1]} : vector<8x128xf32> to vector<8x64xf32>
      %443 = vector.extract_strided_slice %441 {offsets = [0, 0], sizes = [8, 64], strides = [1, 1]} : vector<8x128xf32> to vector<8x64xf32>
      %444 = arith.addf %442, %443 : vector<8x64xf32>
      %445 = arith.negf %444 : vector<8x64xf32>
      %446 = math.exp %445 : vector<8x64xf32>
      %cst_124 = arith.constant 1.000000e+00 : f32
      %447 = vector.broadcast %cst_124 : f32 to vector<8x64xf32>
      %448 = arith.addf %447, %446 : vector<8x64xf32>
      %449 = arith.divf %447, %448 : vector<8x64xf32>
      %450 = vector.extract_strided_slice %449 {offsets = [0, 0], sizes = [8, 32], strides = [1, 1]} : vector<8x64xf32> to vector<8x32xf32>
      %451 = vector.extract_strided_slice %449 {offsets = [0, 32], sizes = [8, 32], strides = [1, 1]} : vector<8x64xf32> to vector<8x32xf32>
      %452 = vector.extract_strided_slice %439 {offsets = [0, 64], sizes = [8, 32], strides = [1, 1]} : vector<8x128xf32> to vector<8x32xf32>
      %453 = vector.extract_strided_slice %441 {offsets = [0, 64], sizes = [8, 32], strides = [1, 1]} : vector<8x128xf32> to vector<8x32xf32>
      %454 = arith.mulf %450, %453 : vector<8x32xf32>
      %455 = arith.addf %452, %454 : vector<8x32xf32>
      %456 = math.tanh %455 : vector<8x32xf32>
      %cst_125 = arith.constant 1.000000e+00 : f32
      %457 = vector.broadcast %cst_125 : f32 to vector<8x32xf32>
      %458 = arith.subf %457, %451 : vector<8x32xf32>
      %459 = arith.mulf %458, %456 : vector<8x32xf32>
      %460 = arith.mulf %451, %404 : vector<8x32xf32>
      %461 = arith.addf %459, %460 : vector<8x32xf32>
      %cst_126 = arith.constant dense<0.000000e+00> : vector<8x128xf32>
      %462 = tpu.matmul %461, %15, %cst_126 {dimension_numbers = #tpu.dot_dimension_numbers<[1], [0], [0], [1], [0, 0, 1, 1], [], []>} : vector<8x32xf32>, vector<32x128xf32>, vector<8x128xf32> -> vector<8x128xf32>
      %463 = arith.addf %462, %18 : vector<8x128xf32>
      %cst_127 = arith.constant dense<0.000000e+00> : vector<8x128xf32>
      %464 = tpu.matmul %428, %8, %cst_127 {dimension_numbers = #tpu.dot_dimension_numbers<[1], [0], [0], [1], [0, 0, 1, 1], [], []>} : vector<8x32xf32>, vector<32x128xf32>, vector<8x128xf32> -> vector<8x128xf32>
      %465 = arith.addf %464, %14 : vector<8x128xf32>
      %466 = vector.extract_strided_slice %406 {offsets = [0, 0], sizes = [8, 64], strides = [1, 1]} : vector<8x128xf32> to vector<8x64xf32>
      %467 = vector.extract_strided_slice %465 {offsets = [0, 0], sizes = [8, 64], strides = [1, 1]} : vector<8x128xf32> to vector<8x64xf32>
      %468 = arith.addf %466, %467 : vector<8x64xf32>
      %469 = arith.negf %468 : vector<8x64xf32>
      %470 = math.exp %469 : vector<8x64xf32>
      %cst_128 = arith.constant 1.000000e+00 : f32
      %471 = vector.broadcast %cst_128 : f32 to vector<8x64xf32>
      %472 = arith.addf %471, %470 : vector<8x64xf32>
      %473 = arith.divf %471, %472 : vector<8x64xf32>
      %474 = vector.extract_strided_slice %473 {offsets = [0, 0], sizes = [8, 32], strides = [1, 1]} : vector<8x64xf32> to vector<8x32xf32>
      %475 = vector.extract_strided_slice %473 {offsets = [0, 32], sizes = [8, 32], strides = [1, 1]} : vector<8x64xf32> to vector<8x32xf32>
      %476 = vector.extract_strided_slice %406 {offsets = [0, 64], sizes = [8, 32], strides = [1, 1]} : vector<8x128xf32> to vector<8x32xf32>
      %477 = vector.extract_strided_slice %465 {offsets = [0, 64], sizes = [8, 32], strides = [1, 1]} : vector<8x128xf32> to vector<8x32xf32>
      %478 = arith.mulf %474, %477 : vector<8x32xf32>
      %479 = arith.addf %476, %478 : vector<8x32xf32>
      %480 = math.tanh %479 : vector<8x32xf32>
      %cst_129 = arith.constant 1.000000e+00 : f32
      %481 = vector.broadcast %cst_129 : f32 to vector<8x32xf32>
      %482 = arith.subf %481, %475 : vector<8x32xf32>
      %483 = arith.mulf %482, %480 : vector<8x32xf32>
      %484 = arith.mulf %475, %428 : vector<8x32xf32>
      %485 = arith.addf %483, %484 : vector<8x32xf32>
      %c1_i32_130 = arith.constant 1 : i32
      %486 = arith.subi %435, %c1_i32_130 : i32
      %487 = arith.index_cast %486 : i32 to index
      %c0_131 = arith.constant 0 : index
      %c0_132 = arith.constant 0 : index
      %488 = vector.load %arg9[%487, %c0_131, %c0_132] : memref<151x32x128xf32, #tpu.memory_space<vmem>>, vector<1x32x128xf32>
      %489 = vector.shape_cast %488 : vector<1x32x128xf32> to vector<32x128xf32>
      %cst_133 = arith.constant dense<0.000000e+00> : vector<8x128xf32>
      %490 = tpu.matmul %485, %489, %cst_133 {dimension_numbers = #tpu.dot_dimension_numbers<[1], [0], [0], [1], [0, 0, 1, 1], [], []>} : vector<8x32xf32>, vector<32x128xf32>, vector<8x128xf32> -> vector<8x128xf32>
      %491 = arith.addf %434, %490 : vector<8x128xf32>
      %c7_i32 = arith.constant 7 : i32
      %492 = arith.addi %92, %c7_i32 : i32
      %c8_i32_134 = arith.constant 8 : i32
      %493 = arith.muli %492, %c8_i32_134 : i32
      %494 = tpu.assume_multiple %493, 8 : i32
      %495 = arith.index_cast %494 : i32 to index
      %c0_135 = arith.constant 0 : index
      %496 = vector.load %arg12[%495, %c0_135] : memref<1208x128xf32, #tpu.memory_space<vmem>>, vector<8x128xf32>
      %cst_136 = arith.constant dense<0.000000e+00> : vector<8x128xf32>
      %497 = tpu.matmul %461, %7, %cst_136 {dimension_numbers = #tpu.dot_dimension_numbers<[1], [0], [0], [1], [0, 0, 1, 1], [], []>} : vector<8x32xf32>, vector<32x128xf32>, vector<8x128xf32> -> vector<8x128xf32>
      %498 = arith.addf %497, %11 : vector<8x128xf32>
      %499 = vector.extract_strided_slice %496 {offsets = [0, 0], sizes = [8, 64], strides = [1, 1]} : vector<8x128xf32> to vector<8x64xf32>
      %500 = vector.extract_strided_slice %498 {offsets = [0, 0], sizes = [8, 64], strides = [1, 1]} : vector<8x128xf32> to vector<8x64xf32>
      %501 = arith.addf %499, %500 : vector<8x64xf32>
      %502 = arith.negf %501 : vector<8x64xf32>
      %503 = math.exp %502 : vector<8x64xf32>
      %cst_137 = arith.constant 1.000000e+00 : f32
      %504 = vector.broadcast %cst_137 : f32 to vector<8x64xf32>
      %505 = arith.addf %504, %503 : vector<8x64xf32>
      %506 = arith.divf %504, %505 : vector<8x64xf32>
      %507 = vector.extract_strided_slice %506 {offsets = [0, 0], sizes = [8, 32], strides = [1, 1]} : vector<8x64xf32> to vector<8x32xf32>
      %508 = vector.extract_strided_slice %506 {offsets = [0, 32], sizes = [8, 32], strides = [1, 1]} : vector<8x64xf32> to vector<8x32xf32>
      %509 = vector.extract_strided_slice %496 {offsets = [0, 64], sizes = [8, 32], strides = [1, 1]} : vector<8x128xf32> to vector<8x32xf32>
      %510 = vector.extract_strided_slice %498 {offsets = [0, 64], sizes = [8, 32], strides = [1, 1]} : vector<8x128xf32> to vector<8x32xf32>
      %511 = arith.mulf %507, %510 : vector<8x32xf32>
      %512 = arith.addf %509, %511 : vector<8x32xf32>
      %513 = math.tanh %512 : vector<8x32xf32>
      %cst_138 = arith.constant 1.000000e+00 : f32
      %514 = vector.broadcast %cst_138 : f32 to vector<8x32xf32>
      %515 = arith.subf %514, %508 : vector<8x32xf32>
      %516 = arith.mulf %515, %513 : vector<8x32xf32>
      %517 = arith.mulf %508, %461 : vector<8x32xf32>
      %518 = arith.addf %516, %517 : vector<8x32xf32>
      %cst_139 = arith.constant dense<0.000000e+00> : vector<8x128xf32>
      %519 = tpu.matmul %518, %15, %cst_139 {dimension_numbers = #tpu.dot_dimension_numbers<[1], [0], [0], [1], [0, 0, 1, 1], [], []>} : vector<8x32xf32>, vector<32x128xf32>, vector<8x128xf32> -> vector<8x128xf32>
      %520 = arith.addf %519, %18 : vector<8x128xf32>
      %cst_140 = arith.constant dense<0.000000e+00> : vector<8x128xf32>
      %521 = tpu.matmul %485, %8, %cst_140 {dimension_numbers = #tpu.dot_dimension_numbers<[1], [0], [0], [1], [0, 0, 1, 1], [], []>} : vector<8x32xf32>, vector<32x128xf32>, vector<8x128xf32> -> vector<8x128xf32>
      %522 = arith.addf %521, %14 : vector<8x128xf32>
      %523 = vector.extract_strided_slice %463 {offsets = [0, 0], sizes = [8, 64], strides = [1, 1]} : vector<8x128xf32> to vector<8x64xf32>
      %524 = vector.extract_strided_slice %522 {offsets = [0, 0], sizes = [8, 64], strides = [1, 1]} : vector<8x128xf32> to vector<8x64xf32>
      %525 = arith.addf %523, %524 : vector<8x64xf32>
      %526 = arith.negf %525 : vector<8x64xf32>
      %527 = math.exp %526 : vector<8x64xf32>
      %cst_141 = arith.constant 1.000000e+00 : f32
      %528 = vector.broadcast %cst_141 : f32 to vector<8x64xf32>
      %529 = arith.addf %528, %527 : vector<8x64xf32>
      %530 = arith.divf %528, %529 : vector<8x64xf32>
      %531 = vector.extract_strided_slice %530 {offsets = [0, 0], sizes = [8, 32], strides = [1, 1]} : vector<8x64xf32> to vector<8x32xf32>
      %532 = vector.extract_strided_slice %530 {offsets = [0, 32], sizes = [8, 32], strides = [1, 1]} : vector<8x64xf32> to vector<8x32xf32>
      %533 = vector.extract_strided_slice %463 {offsets = [0, 64], sizes = [8, 32], strides = [1, 1]} : vector<8x128xf32> to vector<8x32xf32>
      %534 = vector.extract_strided_slice %522 {offsets = [0, 64], sizes = [8, 32], strides = [1, 1]} : vector<8x128xf32> to vector<8x32xf32>
      %535 = arith.mulf %531, %534 : vector<8x32xf32>
      %536 = arith.addf %533, %535 : vector<8x32xf32>
      %537 = math.tanh %536 : vector<8x32xf32>
      %cst_142 = arith.constant 1.000000e+00 : f32
      %538 = vector.broadcast %cst_142 : f32 to vector<8x32xf32>
      %539 = arith.subf %538, %532 : vector<8x32xf32>
      %540 = arith.mulf %539, %537 : vector<8x32xf32>
      %541 = arith.mulf %532, %485 : vector<8x32xf32>
      %542 = arith.addf %540, %541 : vector<8x32xf32>
      %c1_i32_143 = arith.constant 1 : i32
      %543 = arith.subi %492, %c1_i32_143 : i32
      %544 = arith.index_cast %543 : i32 to index
      %c0_144 = arith.constant 0 : index
      %c0_145 = arith.constant 0 : index
      %545 = vector.load %arg9[%544, %c0_144, %c0_145] : memref<151x32x128xf32, #tpu.memory_space<vmem>>, vector<1x32x128xf32>
      %546 = vector.shape_cast %545 : vector<1x32x128xf32> to vector<32x128xf32>
      %cst_146 = arith.constant dense<0.000000e+00> : vector<8x128xf32>
      %547 = tpu.matmul %542, %546, %cst_146 {dimension_numbers = #tpu.dot_dimension_numbers<[1], [0], [0], [1], [0, 0, 1, 1], [], []>} : vector<8x32xf32>, vector<32x128xf32>, vector<8x128xf32> -> vector<8x128xf32>
      %548 = arith.addf %491, %547 : vector<8x128xf32>
      %c8_i32_147 = arith.constant 8 : i32
      %549 = arith.addi %92, %c8_i32_147 : i32
      %c8_i32_148 = arith.constant 8 : i32
      %550 = arith.muli %549, %c8_i32_148 : i32
      %551 = tpu.assume_multiple %550, 8 : i32
      %552 = arith.index_cast %551 : i32 to index
      %c0_149 = arith.constant 0 : index
      %553 = vector.load %arg12[%552, %c0_149] : memref<1208x128xf32, #tpu.memory_space<vmem>>, vector<8x128xf32>
      %cst_150 = arith.constant dense<0.000000e+00> : vector<8x128xf32>
      %554 = tpu.matmul %518, %7, %cst_150 {dimension_numbers = #tpu.dot_dimension_numbers<[1], [0], [0], [1], [0, 0, 1, 1], [], []>} : vector<8x32xf32>, vector<32x128xf32>, vector<8x128xf32> -> vector<8x128xf32>
      %555 = arith.addf %554, %11 : vector<8x128xf32>
      %556 = vector.extract_strided_slice %553 {offsets = [0, 0], sizes = [8, 64], strides = [1, 1]} : vector<8x128xf32> to vector<8x64xf32>
      %557 = vector.extract_strided_slice %555 {offsets = [0, 0], sizes = [8, 64], strides = [1, 1]} : vector<8x128xf32> to vector<8x64xf32>
      %558 = arith.addf %556, %557 : vector<8x64xf32>
      %559 = arith.negf %558 : vector<8x64xf32>
      %560 = math.exp %559 : vector<8x64xf32>
      %cst_151 = arith.constant 1.000000e+00 : f32
      %561 = vector.broadcast %cst_151 : f32 to vector<8x64xf32>
      %562 = arith.addf %561, %560 : vector<8x64xf32>
      %563 = arith.divf %561, %562 : vector<8x64xf32>
      %564 = vector.extract_strided_slice %563 {offsets = [0, 0], sizes = [8, 32], strides = [1, 1]} : vector<8x64xf32> to vector<8x32xf32>
      %565 = vector.extract_strided_slice %563 {offsets = [0, 32], sizes = [8, 32], strides = [1, 1]} : vector<8x64xf32> to vector<8x32xf32>
      %566 = vector.extract_strided_slice %553 {offsets = [0, 64], sizes = [8, 32], strides = [1, 1]} : vector<8x128xf32> to vector<8x32xf32>
      %567 = vector.extract_strided_slice %555 {offsets = [0, 64], sizes = [8, 32], strides = [1, 1]} : vector<8x128xf32> to vector<8x32xf32>
      %568 = arith.mulf %564, %567 : vector<8x32xf32>
      %569 = arith.addf %566, %568 : vector<8x32xf32>
      %570 = math.tanh %569 : vector<8x32xf32>
      %cst_152 = arith.constant 1.000000e+00 : f32
      %571 = vector.broadcast %cst_152 : f32 to vector<8x32xf32>
      %572 = arith.subf %571, %565 : vector<8x32xf32>
      %573 = arith.mulf %572, %570 : vector<8x32xf32>
      %574 = arith.mulf %565, %518 : vector<8x32xf32>
      %575 = arith.addf %573, %574 : vector<8x32xf32>
      %cst_153 = arith.constant dense<0.000000e+00> : vector<8x128xf32>
      %576 = tpu.matmul %575, %15, %cst_153 {dimension_numbers = #tpu.dot_dimension_numbers<[1], [0], [0], [1], [0, 0, 1, 1], [], []>} : vector<8x32xf32>, vector<32x128xf32>, vector<8x128xf32> -> vector<8x128xf32>
      %577 = arith.addf %576, %18 : vector<8x128xf32>
      %cst_154 = arith.constant dense<0.000000e+00> : vector<8x128xf32>
      %578 = tpu.matmul %542, %8, %cst_154 {dimension_numbers = #tpu.dot_dimension_numbers<[1], [0], [0], [1], [0, 0, 1, 1], [], []>} : vector<8x32xf32>, vector<32x128xf32>, vector<8x128xf32> -> vector<8x128xf32>
      %579 = arith.addf %578, %14 : vector<8x128xf32>
      %580 = vector.extract_strided_slice %520 {offsets = [0, 0], sizes = [8, 64], strides = [1, 1]} : vector<8x128xf32> to vector<8x64xf32>
      %581 = vector.extract_strided_slice %579 {offsets = [0, 0], sizes = [8, 64], strides = [1, 1]} : vector<8x128xf32> to vector<8x64xf32>
      %582 = arith.addf %580, %581 : vector<8x64xf32>
      %583 = arith.negf %582 : vector<8x64xf32>
      %584 = math.exp %583 : vector<8x64xf32>
      %cst_155 = arith.constant 1.000000e+00 : f32
      %585 = vector.broadcast %cst_155 : f32 to vector<8x64xf32>
      %586 = arith.addf %585, %584 : vector<8x64xf32>
      %587 = arith.divf %585, %586 : vector<8x64xf32>
      %588 = vector.extract_strided_slice %587 {offsets = [0, 0], sizes = [8, 32], strides = [1, 1]} : vector<8x64xf32> to vector<8x32xf32>
      %589 = vector.extract_strided_slice %587 {offsets = [0, 32], sizes = [8, 32], strides = [1, 1]} : vector<8x64xf32> to vector<8x32xf32>
      %590 = vector.extract_strided_slice %520 {offsets = [0, 64], sizes = [8, 32], strides = [1, 1]} : vector<8x128xf32> to vector<8x32xf32>
      %591 = vector.extract_strided_slice %579 {offsets = [0, 64], sizes = [8, 32], strides = [1, 1]} : vector<8x128xf32> to vector<8x32xf32>
      %592 = arith.mulf %588, %591 : vector<8x32xf32>
      %593 = arith.addf %590, %592 : vector<8x32xf32>
      %594 = math.tanh %593 : vector<8x32xf32>
      %cst_156 = arith.constant 1.000000e+00 : f32
      %595 = vector.broadcast %cst_156 : f32 to vector<8x32xf32>
      %596 = arith.subf %595, %589 : vector<8x32xf32>
      %597 = arith.mulf %596, %594 : vector<8x32xf32>
      %598 = arith.mulf %589, %542 : vector<8x32xf32>
      %599 = arith.addf %597, %598 : vector<8x32xf32>
      %c1_i32_157 = arith.constant 1 : i32
      %600 = arith.subi %549, %c1_i32_157 : i32
      %601 = arith.index_cast %600 : i32 to index
      %c0_158 = arith.constant 0 : index
      %c0_159 = arith.constant 0 : index
      %602 = vector.load %arg9[%601, %c0_158, %c0_159] : memref<151x32x128xf32, #tpu.memory_space<vmem>>, vector<1x32x128xf32>
      %603 = vector.shape_cast %602 : vector<1x32x128xf32> to vector<32x128xf32>
      %cst_160 = arith.constant dense<0.000000e+00> : vector<8x128xf32>
      %604 = tpu.matmul %599, %603, %cst_160 {dimension_numbers = #tpu.dot_dimension_numbers<[1], [0], [0], [1], [0, 0, 1, 1], [], []>} : vector<8x32xf32>, vector<32x128xf32>, vector<8x128xf32> -> vector<8x128xf32>
      %605 = arith.addf %548, %604 : vector<8x128xf32>
      %c9_i32 = arith.constant 9 : i32
      %606 = arith.addi %92, %c9_i32 : i32
      %c8_i32_161 = arith.constant 8 : i32
      %607 = arith.muli %606, %c8_i32_161 : i32
      %608 = tpu.assume_multiple %607, 8 : i32
      %609 = arith.index_cast %608 : i32 to index
      %c0_162 = arith.constant 0 : index
      %610 = vector.load %arg12[%609, %c0_162] : memref<1208x128xf32, #tpu.memory_space<vmem>>, vector<8x128xf32>
      %cst_163 = arith.constant dense<0.000000e+00> : vector<8x128xf32>
      %611 = tpu.matmul %575, %7, %cst_163 {dimension_numbers = #tpu.dot_dimension_numbers<[1], [0], [0], [1], [0, 0, 1, 1], [], []>} : vector<8x32xf32>, vector<32x128xf32>, vector<8x128xf32> -> vector<8x128xf32>
      %612 = arith.addf %611, %11 : vector<8x128xf32>
      %613 = vector.extract_strided_slice %610 {offsets = [0, 0], sizes = [8, 64], strides = [1, 1]} : vector<8x128xf32> to vector<8x64xf32>
      %614 = vector.extract_strided_slice %612 {offsets = [0, 0], sizes = [8, 64], strides = [1, 1]} : vector<8x128xf32> to vector<8x64xf32>
      %615 = arith.addf %613, %614 : vector<8x64xf32>
      %616 = arith.negf %615 : vector<8x64xf32>
      %617 = math.exp %616 : vector<8x64xf32>
      %cst_164 = arith.constant 1.000000e+00 : f32
      %618 = vector.broadcast %cst_164 : f32 to vector<8x64xf32>
      %619 = arith.addf %618, %617 : vector<8x64xf32>
      %620 = arith.divf %618, %619 : vector<8x64xf32>
      %621 = vector.extract_strided_slice %620 {offsets = [0, 0], sizes = [8, 32], strides = [1, 1]} : vector<8x64xf32> to vector<8x32xf32>
      %622 = vector.extract_strided_slice %620 {offsets = [0, 32], sizes = [8, 32], strides = [1, 1]} : vector<8x64xf32> to vector<8x32xf32>
      %623 = vector.extract_strided_slice %610 {offsets = [0, 64], sizes = [8, 32], strides = [1, 1]} : vector<8x128xf32> to vector<8x32xf32>
      %624 = vector.extract_strided_slice %612 {offsets = [0, 64], sizes = [8, 32], strides = [1, 1]} : vector<8x128xf32> to vector<8x32xf32>
      %625 = arith.mulf %621, %624 : vector<8x32xf32>
      %626 = arith.addf %623, %625 : vector<8x32xf32>
      %627 = math.tanh %626 : vector<8x32xf32>
      %cst_165 = arith.constant 1.000000e+00 : f32
      %628 = vector.broadcast %cst_165 : f32 to vector<8x32xf32>
      %629 = arith.subf %628, %622 : vector<8x32xf32>
      %630 = arith.mulf %629, %627 : vector<8x32xf32>
      %631 = arith.mulf %622, %575 : vector<8x32xf32>
      %632 = arith.addf %630, %631 : vector<8x32xf32>
      %cst_166 = arith.constant dense<0.000000e+00> : vector<8x128xf32>
      %633 = tpu.matmul %632, %15, %cst_166 {dimension_numbers = #tpu.dot_dimension_numbers<[1], [0], [0], [1], [0, 0, 1, 1], [], []>} : vector<8x32xf32>, vector<32x128xf32>, vector<8x128xf32> -> vector<8x128xf32>
      %634 = arith.addf %633, %18 : vector<8x128xf32>
      %cst_167 = arith.constant dense<0.000000e+00> : vector<8x128xf32>
      %635 = tpu.matmul %599, %8, %cst_167 {dimension_numbers = #tpu.dot_dimension_numbers<[1], [0], [0], [1], [0, 0, 1, 1], [], []>} : vector<8x32xf32>, vector<32x128xf32>, vector<8x128xf32> -> vector<8x128xf32>
      %636 = arith.addf %635, %14 : vector<8x128xf32>
      %637 = vector.extract_strided_slice %577 {offsets = [0, 0], sizes = [8, 64], strides = [1, 1]} : vector<8x128xf32> to vector<8x64xf32>
      %638 = vector.extract_strided_slice %636 {offsets = [0, 0], sizes = [8, 64], strides = [1, 1]} : vector<8x128xf32> to vector<8x64xf32>
      %639 = arith.addf %637, %638 : vector<8x64xf32>
      %640 = arith.negf %639 : vector<8x64xf32>
      %641 = math.exp %640 : vector<8x64xf32>
      %cst_168 = arith.constant 1.000000e+00 : f32
      %642 = vector.broadcast %cst_168 : f32 to vector<8x64xf32>
      %643 = arith.addf %642, %641 : vector<8x64xf32>
      %644 = arith.divf %642, %643 : vector<8x64xf32>
      %645 = vector.extract_strided_slice %644 {offsets = [0, 0], sizes = [8, 32], strides = [1, 1]} : vector<8x64xf32> to vector<8x32xf32>
      %646 = vector.extract_strided_slice %644 {offsets = [0, 32], sizes = [8, 32], strides = [1, 1]} : vector<8x64xf32> to vector<8x32xf32>
      %647 = vector.extract_strided_slice %577 {offsets = [0, 64], sizes = [8, 32], strides = [1, 1]} : vector<8x128xf32> to vector<8x32xf32>
      %648 = vector.extract_strided_slice %636 {offsets = [0, 64], sizes = [8, 32], strides = [1, 1]} : vector<8x128xf32> to vector<8x32xf32>
      %649 = arith.mulf %645, %648 : vector<8x32xf32>
      %650 = arith.addf %647, %649 : vector<8x32xf32>
      %651 = math.tanh %650 : vector<8x32xf32>
      %cst_169 = arith.constant 1.000000e+00 : f32
      %652 = vector.broadcast %cst_169 : f32 to vector<8x32xf32>
      %653 = arith.subf %652, %646 : vector<8x32xf32>
      %654 = arith.mulf %653, %651 : vector<8x32xf32>
      %655 = arith.mulf %646, %599 : vector<8x32xf32>
      %656 = arith.addf %654, %655 : vector<8x32xf32>
      %c1_i32_170 = arith.constant 1 : i32
      %657 = arith.subi %606, %c1_i32_170 : i32
      %658 = arith.index_cast %657 : i32 to index
      %c0_171 = arith.constant 0 : index
      %c0_172 = arith.constant 0 : index
      %659 = vector.load %arg9[%658, %c0_171, %c0_172] : memref<151x32x128xf32, #tpu.memory_space<vmem>>, vector<1x32x128xf32>
      %660 = vector.shape_cast %659 : vector<1x32x128xf32> to vector<32x128xf32>
      %cst_173 = arith.constant dense<0.000000e+00> : vector<8x128xf32>
      %661 = tpu.matmul %656, %660, %cst_173 {dimension_numbers = #tpu.dot_dimension_numbers<[1], [0], [0], [1], [0, 0, 1, 1], [], []>} : vector<8x32xf32>, vector<32x128xf32>, vector<8x128xf32> -> vector<8x128xf32>
      %662 = arith.addf %605, %661 : vector<8x128xf32>
      scf.yield %632, %656, %634, %662 : vector<8x32xf32>, vector<8x32xf32>, vector<8x128xf32>, vector<8x128xf32>
    }
    %c15_i32_28 = arith.constant 15 : i32
    %cst_29 = arith.constant dense<0.000000e+00> : vector<8x128xf32>
    %49 = tpu.matmul %48#1, %8, %cst_29 {dimension_numbers = #tpu.dot_dimension_numbers<[1], [0], [0], [1], [0, 0, 1, 1], [], []>} : vector<8x32xf32>, vector<32x128xf32>, vector<8x128xf32> -> vector<8x128xf32>
    %50 = arith.addf %49, %14 : vector<8x128xf32>
    %51 = vector.extract_strided_slice %48#2 {offsets = [0, 0], sizes = [8, 64], strides = [1, 1]} : vector<8x128xf32> to vector<8x64xf32>
    %52 = vector.extract_strided_slice %50 {offsets = [0, 0], sizes = [8, 64], strides = [1, 1]} : vector<8x128xf32> to vector<8x64xf32>
    %53 = arith.addf %51, %52 : vector<8x64xf32>
    %54 = arith.negf %53 : vector<8x64xf32>
    %55 = math.exp %54 : vector<8x64xf32>
    %cst_30 = arith.constant 1.000000e+00 : f32
    %56 = vector.broadcast %cst_30 : f32 to vector<8x64xf32>
    %57 = arith.addf %56, %55 : vector<8x64xf32>
    %58 = arith.divf %56, %57 : vector<8x64xf32>
    %59 = vector.extract_strided_slice %58 {offsets = [0, 0], sizes = [8, 32], strides = [1, 1]} : vector<8x64xf32> to vector<8x32xf32>
    %60 = vector.extract_strided_slice %58 {offsets = [0, 32], sizes = [8, 32], strides = [1, 1]} : vector<8x64xf32> to vector<8x32xf32>
    %61 = vector.extract_strided_slice %48#2 {offsets = [0, 64], sizes = [8, 32], strides = [1, 1]} : vector<8x128xf32> to vector<8x32xf32>
    %62 = vector.extract_strided_slice %50 {offsets = [0, 64], sizes = [8, 32], strides = [1, 1]} : vector<8x128xf32> to vector<8x32xf32>
    %63 = arith.mulf %59, %62 : vector<8x32xf32>
    %64 = arith.addf %61, %63 : vector<8x32xf32>
    %65 = math.tanh %64 : vector<8x32xf32>
    %cst_31 = arith.constant 1.000000e+00 : f32
    %66 = vector.broadcast %cst_31 : f32 to vector<8x32xf32>
    %67 = arith.subf %66, %60 : vector<8x32xf32>
    %68 = arith.mulf %67, %65 : vector<8x32xf32>
    %69 = arith.mulf %60, %48#1 : vector<8x32xf32>
    %70 = arith.addf %68, %69 : vector<8x32xf32>
    %c150 = arith.constant 150 : index
    %c0_32 = arith.constant 0 : index
    %c0_33 = arith.constant 0 : index
    %71 = vector.load %arg9[%c150, %c0_32, %c0_33] : memref<151x32x128xf32, #tpu.memory_space<vmem>>, vector<1x32x128xf32>
    %72 = vector.shape_cast %71 : vector<1x32x128xf32> to vector<32x128xf32>
    %cst_34 = arith.constant dense<0.000000e+00> : vector<8x128xf32>
    %73 = tpu.matmul %70, %72, %cst_34 {dimension_numbers = #tpu.dot_dimension_numbers<[1], [0], [0], [1], [0, 0, 1, 1], [], []>} : vector<8x32xf32>, vector<32x128xf32>, vector<8x128xf32> -> vector<8x128xf32>
    %74 = arith.addf %48#3, %73 : vector<8x128xf32>
    %75 = vector.extract_strided_slice %74 {offsets = [0, 0], sizes = [8, 10], strides = [1, 1]} : vector<8x128xf32> to vector<8x10xf32>
    %c0_35 = arith.constant 0 : index
    %c0_36 = arith.constant 0 : index
    %76 = vector.load %arg10[%c0_35, %c0_36] : memref<1x10xf32, #tpu.memory_space<vmem>>, vector<1x10xf32>
    %77 = vector.broadcast %76 : vector<1x10xf32> to vector<8x10xf32>
    %78 = arith.addf %75, %77 : vector<8x10xf32>
    %cst_37 = arith.constant dense<0xFF800000> : vector<8xf32>
    %79 = vector.multi_reduction <maximumf>, %78, %cst_37 [1] : vector<8x10xf32> to vector<8xf32>
    %80 = vector.shape_cast %79 : vector<8xf32> to vector<8x1xf32>
    %81 = vector.broadcast %80 : vector<8x1xf32> to vector<8x10xf32>
    %82 = arith.subf %78, %81 : vector<8x10xf32>
    %83 = math.exp %82 : vector<8x10xf32>
    %cst_38 = arith.constant dense<0.000000e+00> : vector<8xf32>
    %84 = vector.multi_reduction <add>, %83, %cst_38 [1] : vector<8x10xf32> to vector<8xf32>
    %85 = vector.shape_cast %84 : vector<8xf32> to vector<8x1xf32>
    %86 = math.log %85 : vector<8x1xf32>
    %87 = arith.addf %86, %80 : vector<8x1xf32>
    %88 = vector.broadcast %87 : vector<8x1xf32> to vector<8x10xf32>
    %89 = arith.subf %78, %88 : vector<8x10xf32>
    %c0_39 = arith.constant 0 : index
    %c0_40 = arith.constant 0 : index
    %90 = vector.load %arg11[%c0_39, %c0_40] : memref<8x10xf32, #tpu.memory_space<vmem>>, vector<8x10xf32>
    tpu.vector_store %arg11[%c0_39, %c0_40], %89 {strides = array<i32>} : memref<8x10xf32, #tpu.memory_space<vmem>>, vector<8x10xf32>,
    return
  }
}

</mosaic_0001>

<bundles_post_ra>
// kernel: custom_model_forward.1
= control target key start
LH: loop header
LB: loop body
LE: loop exit
PB: predicated region body
PF: predicated region fallthrough
CT: control target
= control target key end

     0   :  { %16 = vsyncpa [#allocation4], 0  ;;  %s10119_s0 = inlined_call_operand.vmem [shape: f32[1208,40], index: 0, kind: input, shape index: {}]   ;;  %s10120_s1 = inlined_call_operand.hbm [shape: f32[40,128], index: 1, kind: input, shape index: {}]   ;;  %s10121_s2 = inlined_call_operand.hbm [shape: f32[1,128], index: 2, kind: input, shape index: {}]   ;;  %s10122_s3 = inlined_call_operand.hbm [shape: f32[32,128], index: 3, kind: input, shape index: {}]   ;;  %s10123_s4 = inlined_call_operand.hbm [shape: f32[1,128], index: 4, kind: input, shape index: {}]   ;;  %s10124_s5 = inlined_call_operand.hbm [shape: f32[32,128], index: 5, kind: input, shape index: {}]   ;;  %s10125_s6 = inlined_call_operand.hbm [shape: f32[1,128], index: 6, kind: input, shape index: {}]   ;;  %s10126_s7 = inlined_call_operand.hbm [shape: f32[32,128], index: 7, kind: input, shape index: {}]   ;;  %s10127_s8 = inlined_call_operand.hbm [shape: f32[1,128], index: 8, kind: input, shape index: {}]   ;;  %s10128_s9 = inlined_call_operand.hbm [shape: f32[151,32,128], index: 9, kind: input, shape index: {}]   ;;  %s10129_s10 = inlined_call_operand.hbm [shape: f32[1,10], index: 10, kind: input, shape index: {}]   ;;  %s10130_s11 = inlined_call_operand.vmem [shape: f32[8,10], index: 11, kind: output, shape index: {}]  }
   0x1   :  { %17 = vsyncpa [#allocation6], 0 }
   0x2   :  { %18 = vsyncpa [#allocation9], 0 }
   0x3   :  { %19 = vsyncpa [#allocation12], 0 }
   0x4   :  { %20 = vsyncpa [#allocation15], 0 }
   0x5   :  { %21 = vsyncpa [#allocation18], 0  ;;  %s8198_s17 = smov [#allocation5]   ;;  %s8199_s19 = smov [#allocation8]  }
   0x6   :  { %s42_s18 = sshll.u32 %s8198_s17, 4  ;;  %s64_s20 = sshll.u32 %s8199_s19, 4  ;;  %s43_s18 = int_to_ptr.vmem [resolvable:$true] %s42_s18  ;;  %s65_s20 = int_to_ptr.vmem [resolvable:$true] %s64_s20 }
   0x7   :  { %s7926_s23 = scalar_lea.hbm %s10121_s2, 16 }
   0x8   :  { %p7927_p0 = scmp.ne.s32.totalorder %s10121_s2, %s7926_s23  ;;  %p7930_p1 = scmp.lt.u32.totalorder %s7926_s23, %s10121_s2 }
   0xa   :  { %p7932_p2 = pnand %p7930_p1, %p7927_p0 }
   0xc   :  { %7935 = shalt.err (!%p7932_p2)
}
   0xd   :  { %s7936_s28 = scalar_lea.vmem %s43_s18, 16  ;;  %s7940_s29 = scalar_lea.vmem %s43_s18, 32 }
   0xe   :  { %p7937_p3 = scmp.ne.s32.totalorder %s43_s18, %s7936_s28  ;;  %p7941_p4 = scmp.lt.s32.totalorder %s43_s18, %s43_s18 }
   0xf   :  { %p7942_p5 = scmp.lt.s32.totalorder %s7940_s29, %s7936_s28 }
  0x11   :  { %p7943_p6 = por %p7942_p5, %p7941_p4 }
  0x13   :  { %p7944_p7 = pnand %p7943_p6, %p7937_p3 }
  0x15   :  { %7947 = shalt.err (!%p7944_p7)
}
  0x16   :  { %45 = dma.hbm_to_vmem [thread:$0]  %s10121_s2, 16, %s43_s18, [#allocation6]  }
  0x17   :  { %s7948_s15 = scalar_lea.hbm %s10123_s4, 16 }
  0x18   :  { %p7949_p8 = scmp.ne.s32.totalorder %s10123_s4, %s7948_s15  ;;  %p7952_p9 = scmp.lt.u32.totalorder %s7948_s15, %s10123_s4 }
  0x1a   :  { %p7954_p10 = pnand %p7952_p9, %p7949_p8 }
  0x1c   :  { %7957 = shalt.err (!%p7954_p10)
}
  0x1d   :  { %s7958_s22 = scalar_lea.vmem %s65_s20, 16  ;;  %s7962_s23 = scalar_lea.vmem %s65_s20, 32 }
  0x1e   :  { %p7959_p11 = scmp.ne.s32.totalorder %s65_s20, %s7958_s22  ;;  %p7963_p12 = scmp.lt.s32.totalorder %s65_s20, %s65_s20 }
  0x1f   :  { %p7964_p13 = scmp.lt.s32.totalorder %s7962_s23, %s7958_s22 }
  0x21   :  { %p7965_p0 = por %p7964_p13, %p7963_p12 }
  0x23   :  { %p7966_p1 = pnand %p7965_p0, %p7959_p11 }
  0x25   :  { %7969 = shalt.err (!%p7966_p1)
}
  0x26   :  { %67 = dma.hbm_to_vmem [thread:$0]  %s10123_s4, 16, %s65_s20, [#allocation9]  }
  0x27   :  { %s8200_s24 = smov [#allocation11]   ;;  %s8201_s26 = smov [#allocation14]  }
  0x28   :  { %s86_s25 = sshll.u32 %s8200_s24, 4  ;;  %s108_s27 = sshll.u32 %s8201_s26, 4  ;;  %s87_s25 = int_to_ptr.vmem [resolvable:$true] %s86_s25  ;;  %s109_s27 = int_to_ptr.vmem [resolvable:$true] %s108_s27 }
  0x29   :  { %s7970_s30 = scalar_lea.hbm %s10125_s6, 16 }
  0x2a   :  { %p7971_p2 = scmp.ne.s32.totalorder %s10125_s6, %s7970_s30  ;;  %p7974_p3 = scmp.lt.u32.totalorder %s7970_s30, %s10125_s6 }
  0x2c   :  { %p7976_p4 = pnand %p7974_p3, %p7971_p2 }
  0x2e   :  { %7979 = shalt.err (!%p7976_p4)
}
  0x2f   :  { %s7980_s4 = scalar_lea.vmem %s87_s25, 16  ;;  %s7984_s20 = scalar_lea.vmem %s87_s25, 32 }
  0x30   :  { %p7981_p5 = scmp.ne.s32.totalorder %s87_s25, %s7980_s4  ;;  %p7985_p6 = scmp.lt.s32.totalorder %s87_s25, %s87_s25 }
  0x31   :  { %p7986_p7 = scmp.lt.s32.totalorder %s7984_s20, %s7980_s4 }
  0x33   :  { %p7987_p8 = por %p7986_p7, %p7985_p6 }
  0x35   :  { %p7988_p9 = pnand %p7987_p8, %p7981_p5 }
  0x37   :  { %7991 = shalt.err (!%p7988_p9)
}
  0x38   :  { %89 = dma.hbm_to_vmem [thread:$0]  %s10125_s6, 16, %s87_s25, [#allocation12]  }
  0x39   :  { %s7992_s22 = scalar_lea.hbm %s10127_s8, 16 }
  0x3a   :  { %p7993_p10 = scmp.ne.s32.totalorder %s10127_s8, %s7992_s22  ;;  %p7996_p11 = scmp.lt.u32.totalorder %s7992_s22, %s10127_s8 }
  0x3c   :  { %p7998_p12 = pnand %p7996_p11, %p7993_p10 }
  0x3e   :  { %8001 = shalt.err (!%p7998_p12)
}
  0x3f   :  { %s8002_s26 = scalar_lea.vmem %s109_s27, 16  ;;  %s8006_s28 = scalar_lea.vmem %s109_s27, 32 }
  0x40   :  { %p8003_p13 = scmp.ne.s32.totalorder %s109_s27, %s8002_s26  ;;  %p8007_p0 = scmp.lt.s32.totalorder %s109_s27, %s109_s27 }
  0x41   :  { %p8008_p1 = scmp.lt.s32.totalorder %s8006_s28, %s8002_s26 }
  0x43   :  { %p8009_p2 = por %p8008_p1, %p8007_p0 }
  0x45   :  { %p8010_p3 = pnand %p8009_p2, %p8003_p13 }
  0x47   :  { %8013 = shalt.err (!%p8010_p3)
}
  0x48   :  { %111 = dma.hbm_to_vmem [thread:$0]  %s10127_s8, 16, %s109_s27, [#allocation15]  }
  0x49   :  { %s8202_s29 = smov [#allocation3]   ;;  %s8014_s14 = scalar_lea.hbm %s10120_s1, 640 }
  0x4a   :  { %s29_s30 = sshll.u32 %s8202_s29, 4  ;;  %p8015_p4 = scmp.ne.s32.totalorder %s10120_s1, %s8014_s14  ;;  %s30_s30 = int_to_ptr.vmem [resolvable:$true] %s29_s30 }
  0x4b   :  { %p8018_p5 = scmp.lt.u32.totalorder %s8014_s14, %s10120_s1 }
  0x4d   :  { %p8020_p6 = pnand %p8018_p5, %p8015_p4 }
  0x4f   :  { %8023 = shalt.err (!%p8020_p6)
}
  0x50   :  { %s8024_s17 = scalar_lea.vmem %s30_s30, 640  ;;  %p8029_p8 = scmp.lt.s32.totalorder %s30_s30, %s30_s30 }
  0x51   :  { %p8025_p7 = scmp.ne.s32.totalorder %s30_s30, %s8024_s17  ;;  %p8030_p9 = scmp.lt.s32.totalorder %s8024_s17, %s8024_s17 }
  0x53   :  { %p8031_p10 = por %p8030_p9, %p8029_p8 }
  0x55   :  { %p8032_p11 = pnand %p8031_p10, %p8025_p7 }
  0x57   :  { %8035 = shalt.err (!%p8032_p11)
}
  0x58   :  { %s8203_s8 = smov 128   ;;  %s8204_s27 = smov 8  }
  0x59   :  { %35 = dma.hbm_to_vmem [thread:$0]  %s10120_s1, 640, %s30_s30, [#allocation4], %s8203_s8, %s8203_s8, %s8204_s27  }
  0x5a   :  { %s8205_s22 = smov [#allocation7]   ;;  %s8206_s2 = smov [#allocation10]  }
  0x5b   :  { %s51_s23 = sshll.u32 %s8205_s22, 4  ;;  %s73_s18 = sshll.u32 %s8206_s2, 4  ;;  %s52_s23 = int_to_ptr.vmem [resolvable:$true] %s51_s23  ;;  %s74_s18 = int_to_ptr.vmem [resolvable:$true] %s73_s18 }
  0x5c   :  { %s8036_s28 = scalar_lea.hbm %s10122_s3, 512 }
  0x5d   :  { %p8037_p12 = scmp.ne.s32.totalorder %s10122_s3, %s8036_s28  ;;  %p8040_p13 = scmp.lt.u32.totalorder %s8036_s28, %s10122_s3 }
  0x5f   :  { %p8042_p0 = pnand %p8040_p13, %p8037_p12 }
  0x61   :  { %8045 = shalt.err (!%p8042_p0)
}
  0x62   :  { %s8046_s1 = scalar_lea.vmem %s52_s23, 512  ;;  %p8051_p2 = scmp.lt.s32.totalorder %s52_s23, %s52_s23 }
  0x63   :  { %p8047_p1 = scmp.ne.s32.totalorder %s52_s23, %s8046_s1  ;;  %p8052_p3 = scmp.lt.s32.totalorder %s8046_s1, %s8046_s1 }
  0x65   :  { %p8053_p4 = por %p8052_p3, %p8051_p2 }
  0x67   :  { %p8054_p5 = pnand %p8053_p4, %p8047_p1 }
  0x69   :  { %8057 = shalt.err (!%p8054_p5)
}
  0x6a   :  { %57 = dma.hbm_to_vmem [thread:$0]  %s10122_s3, 512, %s52_s23, [#allocation6], %s8203_s8, %s8203_s8, %s8204_s27  }
  0x6b   :  { %s8058_s4 = scalar_lea.hbm %s10124_s5, 512 }
  0x6c   :  { %p8059_p6 = scmp.ne.s32.totalorder %s10124_s5, %s8058_s4  ;;  %p8062_p7 = scmp.lt.u32.totalorder %s8058_s4, %s10124_s5 }
  0x6e   :  { %p8064_p8 = pnand %p8062_p7, %p8059_p6 }
  0x70   :  { %8067 = shalt.err (!%p8064_p8)
}
  0x71   :  { %s8068_s21 = scalar_lea.vmem %s74_s18, 512  ;;  %p8073_p10 = scmp.lt.s32.totalorder %s74_s18, %s74_s18 }
  0x72   :  { %p8069_p9 = scmp.ne.s32.totalorder %s74_s18, %s8068_s21  ;;  %p8074_p11 = scmp.lt.s32.totalorder %s8068_s21, %s8068_s21 }
  0x74   :  { %p8075_p12 = por %p8074_p11, %p8073_p10 }
  0x76   :  { %p8076_p13 = pnand %p8075_p12, %p8069_p9 }
  0x78   :  { %8079 = shalt.err (!%p8076_p13)
}
  0x79   :  { %79 = dma.hbm_to_vmem [thread:$0]  %s10124_s5, 512, %s74_s18, [#allocation9], %s8203_s8, %s8203_s8, %s8204_s27  }
  0x7a   :  { %s8207_s23 = smov [#allocation13]   ;;  %s8208_s24 = smov [#allocation16]  }
  0x7b   :  { %s95_s2 = sshll.u32 %s8207_s23, 4  ;;  %s117_s26 = sshll.u32 %s8208_s24, 4  ;;  %s96_s2 = int_to_ptr.vmem [resolvable:$true] %s95_s2  ;;  %s118_s26 = int_to_ptr.vmem [resolvable:$true] %s117_s26 }
  0x7c   :  { %s8080_s25 = scalar_lea.hbm %s10126_s7, 512 }
  0x7d   :  { %p8081_p0 = scmp.ne.s32.totalorder %s10126_s7, %s8080_s25  ;;  %p8084_p1 = scmp.lt.u32.totalorder %s8080_s25, %s10126_s7 }
  0x7f   :  { %p8086_p2 = pnand %p8084_p1, %p8081_p0 }
  0x81   :  { %8089 = shalt.err (!%p8086_p2)
}
  0x82   :  { %s8090_s5 = scalar_lea.vmem %s96_s2, 512  ;;  %p8095_p4 = scmp.lt.s32.totalorder %s96_s2, %s96_s2 }
  0x83   :  { %p8091_p3 = scmp.ne.s32.totalorder %s96_s2, %s8090_s5  ;;  %p8096_p5 = scmp.lt.s32.totalorder %s8090_s5, %s8090_s5 }
  0x85   :  { %p8097_p6 = por %p8096_p5, %p8095_p4 }
  0x87   :  { %p8098_p7 = pnand %p8097_p6, %p8091_p3 }
  0x89   :  { %8101 = shalt.err (!%p8098_p7)
}
  0x8a   :  { %101 = dma.hbm_to_vmem [thread:$0]  %s10126_s7, 512, %s96_s2, [#allocation12], %s8203_s8, %s8203_s8, %s8204_s27  }
  0x8b   :  { %s8102_s4 = scalar_lea.hbm %s10128_s9, 77312 }
  0x8c   :  { %p8103_p8 = scmp.ne.s32.totalorder %s10128_s9, %s8102_s4  ;;  %p8106_p9 = scmp.lt.u32.totalorder %s8102_s4, %s10128_s9 }
  0x8e   :  { %p8108_p10 = pnand %p8106_p9, %p8103_p8 }
  0x90   :  { %8111 = shalt.err (!%p8108_p10)
}
  0x91   :  { %s8112_s21 = scalar_lea.vmem %s118_s26, 77312  ;;  %p8117_p12 = scmp.lt.s32.totalorder %s118_s26, %s118_s26 }
  0x92   :  { %p8113_p11 = scmp.ne.s32.totalorder %s118_s26, %s8112_s21  ;;  %p8118_p13 = scmp.lt.s32.totalorder %s8112_s21, %s8112_s21 }
  0x94   :  { %p8119_p0 = por %p8118_p13, %p8117_p12 }
  0x96   :  { %p8120_p1 = pnand %p8119_p0, %p8113_p11 }
  0x98   :  { %8123 = shalt.err (!%p8120_p1)
}
  0x99   :  { %123 = dma.hbm_to_vmem [thread:$0]  %s10128_s9, 77312, %s118_s26, [#allocation15], %s8203_s8, %s8203_s8, %s8204_s27  }
  0x9a   :  { %s8209_s22 = smov [#allocation17]   ;;  %s8124_s28 = scalar_lea.hbm %s10129_s10, 16 }
  0x9b   :  { %s130_s23 = sshll.u32 %s8209_s22, 4  ;;  %p8125_p2 = scmp.ne.s32.totalorder %s10129_s10, %s8124_s28  ;;  %s131_s23 = int_to_ptr.vmem [resolvable:$true] %s130_s23 }
  0x9c   :  { %p8128_p3 = scmp.lt.u32.totalorder %s8124_s28, %s10129_s10 }
  0x9e   :  { %p8130_p4 = pnand %p8128_p3, %p8125_p2 }
  0xa0   :  { %8133 = shalt.err (!%p8130_p4)
}
  0xa1   :  { %s8134_s1 = scalar_lea.vmem %s131_s23, 16  ;;  %s8138_s9 = scalar_lea.vmem %s131_s23, 32 }
  0xa2   :  { %p8135_p5 = scmp.ne.s32.totalorder %s131_s23, %s8134_s1  ;;  %p8139_p6 = scmp.lt.s32.totalorder %s131_s23, %s131_s23 }
  0xa3   :  { %p8140_p7 = scmp.lt.s32.totalorder %s8138_s9, %s8134_s1 }
  0xa5   :  { %p8141_p8 = por %p8140_p7, %p8139_p6 }
  0xa7   :  { %p8142_p9 = pnand %p8141_p8, %p8135_p5 }
  0xa9   :  { %8145 = shalt.err (!%p8142_p9)
}
  0xaa   :  { %133 = dma.hbm_to_vmem [thread:$0]  %s10129_s10, 16, %s131_s23, [#allocation18]  }
  0xab   :  { %8166 = dma.done.wait [#allocation4], 640  }
  0xac   :  { %8167 = vsyncadd [#allocation4], 4294966656 }
  0xad   :  { %8168 = dma.done.wait [#allocation6], 528  }
  0xae   :  { %8169 = vsyncadd [#allocation6], 4294966768 }
  0xaf   :  { %8170 = dma.done.wait [#allocation9], 528  }
  0xb0   :  { %8171 = vsyncadd [#allocation9], 4294966768 }
  0xb1   :  { %8172 = dma.done.wait [#allocation12], 528  }
  0xb2   :  { %8173 = vsyncadd [#allocation12], 4294966768 }
  0xb3   :  { %8174 = dma.done.wait [#allocation15], 77328  }
  0xb4   :  { %8175 = vsyncadd [#allocation15], 4294889968 }
  0xb5   :  { %8176 = dma.done.wait [#allocation18], 16  }
  0xb6   :  { %8177 = vsyncadd [#allocation18], 4294967280  ;;  %v8210_v0 = vmov 0.0|0.0   ;;  %vm8211_vm0 = vmmov 0   ;;  %v8212_v1 = vmov 0.0   ;;  %v8421_v2 = vld [vmem:[#allocation13] sm:$0xff] }
  0xb7   :  { %7702 = vmatprep.subr.bf16.mxu1 %v8210_v0  ;;  %6726 = vmatprep.mubr.msk.f32.mxu1 %vm8211_vm0, %v8212_v1  ;;  %v8423_v3 = vld [vmem:[#allocation13 + $0x8] sm:$0xff]  ;;  %v8425_v4 = vld [vmem:[#allocation13 + $0x10] sm:$0xff]  ;;  %v8427_v5 = vld [vmem:[#allocation13 + $0x18] sm:$0xff]  ;;  %vm327_vm1 = vcmask 326656   ;;  %s8213_s21 = smov 64   ;;  %s8214_s25 = smov 96  }
  0xb8   :  { %7432 = vmatprep.subr.bf16.mxu0 %v8210_v0  ;;  %6495 = vmatprep.mubr.msk.f32.mxu0 %vm8211_vm0, %v8212_v1  ;;  %v8429_v6 = vld [vmem:[#allocation14] ss:$0 sm:$0xff]  ;;  %v315_v7 = vld [vmem:[#allocation3] sm:$0xff]  ;;  %v317_v9 = vld [vmem:[#allocation3 + $0x10] sm:$0xff]  ;;  %vm1786_vm2 = vcmask 261120  }
  0xb9   :  { %v316_v8 = vld [vmem:[#allocation3 + $0x8] sm:$0xff]  ;;  %v318_v10 = vld [vmem:[#allocation3 + $0x18] sm:$0xff]  ;;  %v319_v15 = vld [vmem:[#allocation3 + $0x20] sm:$0xff] }
  0xba   :  { %v7433_v11 = vpack.c.bf16 %v316_v8, %v315_v7  ;;  %v7436_v12 = vpack.c.bf16 %v318_v10, %v317_v9  ;;  %v1752_v13 = vld [vmem:[#allocation7] sm:$0xff]  ;;  %v1753_v14 = vld [vmem:[#allocation7 + $0x8] sm:$0xff]  ;;  %v243_v19 = vld [vmem:[%s10119_s0 + $0x278] sm:$0xff] }
  0xbb   :  { %v241_v16 = vld [vmem:[%s10119_s0 + $0x268] sm:$0xff]  ;;  %v8438_v17 = vpack.c.bf16 %v1753_v14, %v1752_v13  ;;  %v242_v18 = vld [vmem:[%s10119_s0 + $0x270] sm:$0xff]  ;;  %v244_v20 = vld [vmem:[%s10119_s0 + $0x280] sm:$0xff] }
  0xbc   :  { %7705 = vmatpush3.bf16.msra.mxu1 %v7433_v11  ;;  %7434 = vmatpush3.bf16.msra.mxu0 %v7433_v11  ;;  %v245_v21 = vld [vmem:[%s10119_s0 + $0x288] sm:$0xff]  ;;  %v246_v22 = vld [vmem:[%s10119_s0 + $0x290] sm:$0xff]  ;;  %v1755_v24 = vld [vmem:[#allocation7 + $0x18] sm:$0xff] }
  0xbd   :  { %7703 = vmatprep.subr.bf16.mxu1 %v8210_v0  ;;  %7435 = vmatprep.subr.bf16.mxu0 %v8210_v0  ;;  %v1754_v23 = vld [vmem:[#allocation7 + $0x10] sm:$0xff]  ;;  %v248_v27 = vld [vmem:[%s10119_s0 + $0x2a0] sm:$0xff]  ;;  %v249_v28 = vld [vmem:[%s10119_s0 + $0x2a8] sm:$0xff] }
  0xbe   :  { %v247_v25 = vld [vmem:[%s10119_s0 + $0x298] sm:$0xff]  ;;  %v8479_v26 = vpack.c.bf16 %v1755_v24, %v1754_v23  ;;  %v250_v29 = vld [vmem:[%s10119_s0 + $0x2b0] sm:$0xff]  ;;  %v252_v31 = vld [vmem:[%s10119_s0 + $0x2c0] sm:$0xff] }
  0xbf   :  { %v251_v30 = vld [vmem:[%s10119_s0 + $0x2b8] sm:$0xff]  ;;  %v253_v32 = vld [vmem:[%s10119_s0 + $0x2c8] sm:$0xff]  ;;  %v254_v33 = vld [vmem:[%s10119_s0 + $0x2d0] sm:$0xff] }
  0xc0   :  { %7706 = vmatpush3.bf16.msra.mxu1 %v7436_v12  ;;  %7437 = vmatpush3.bf16.msra.mxu0 %v7436_v12  ;;  %v255_v34 = vld [vmem:[%s10119_s0 + $0x2d8] sm:$0xff]  ;;  %v256_v35 = vld [vmem:[%s10119_s0 + $0x2e0] sm:$0xff]  ;;  %v257_v36 = vld [vmem:[%s10119_s0 + $0x2e8] sm:$0xff] }
  0xc1   :  { %7704 = vmatprep.subr.mxu1 %v8212_v1  ;;  %6493 = vmatprep.subr.mxu0 %v8212_v1  ;;  %v258_v37 = vld [vmem:[%s10119_s0 + $0x2f0] sm:$0xff]  ;;  %v259_v38 = vld [vmem:[%s10119_s0 + $0x2f8] sm:$0xff]  ;;  %v260_v39 = vld [vmem:[%s10119_s0 + $0x300] sm:$0xff] }
  0xc2   :  { %v261_v40 = vld [vmem:[%s10119_s0 + $0x308] sm:$0xff]  ;;  %v262_v41 = vld [vmem:[%s10119_s0 + $0x310] sm:$0xff]  ;;  %v263_v42 = vld [vmem:[%s10119_s0 + $0x318] sm:$0xff] }
  0xc3   :  { %v264_v43 = vld [vmem:[%s10119_s0 + $0x320] sm:$0xff]  ;;  %v265_v44 = vld [vmem:[%s10119_s0 + $0x328] sm:$0xff]  ;;  %v266_v45 = vld [vmem:[%s10119_s0 + $0x330] sm:$0xff] }
  0xc4   :  { %7707 = vmatpush3.msra.mxu1 %v319_v15  ;;  %6494 = vmatpush3.msra.mxu0 %v319_v15  ;;  %v267_v46 = vld [vmem:[%s10119_s0 + $0x338] sm:$0xff]  ;;  %v268_v47 = vld [vmem:[%s10119_s0 + $0x340] sm:$0xff]  ;;  %v269_v48 = vld [vmem:[%s10119_s0 + $0x348] sm:$0xff] }
  0xc5   :  { %6727 = vmatmul.mubr.msk.f32.vlgmr.msra.gmra.mrb[0].mxu1 %vm327_vm1, %v241_v16  ;;  %7438 = vmatprep.subr.bf16.mxu1 %v8210_v0  ;;  %v270_v49 = vld [vmem:[%s10119_s0 + $0x350] sm:$0xff]  ;;  %v271_v50 = vld [vmem:[%s10119_s0 + $0x358] sm:$0xff]  ;;  %v272_v51 = vld [vmem:[%s10119_s0 + $0x360] sm:$0xff] }
  0xc6   :  { %7440 = vmatpush3.bf16.msra.mxu1 %v8438_v17  ;;  %6729 = vmatprep.mubr.msk.f32.mxu1 %vm8211_vm0, %v8212_v1  ;;  %v273_v52 = vld [vmem:[%s10119_s0 + $0x368] sm:$0xff]  ;;  %v274_v53 = vld [vmem:[%s10119_s0 + $0x370] sm:$0xff]  ;;  %v275_v54 = vld [vmem:[%s10119_s0 + $0x378] sm:$0xff] }
  0xc7   :  { %7441 = vmatprep.subr.bf16.mxu1 %v8210_v0  ;;  %v276_v55 = vld [vmem:[%s10119_s0 + $0x380] sm:$0xff]  ;;  %v277_v56 = vld [vmem:[%s10119_s0 + $0x388] sm:$0xff]  ;;  %v278_v57 = vld [vmem:[%s10119_s0 + $0x390] sm:$0xff] }
  0xc8   :  { %v279_v58 = vld [vmem:[%s10119_s0 + $0x398] sm:$0xff]  ;;  %v280_v59 = vld [vmem:[%s10119_s0 + $0x3a0] sm:$0xff]  ;;  %v281_v60 = vld [vmem:[%s10119_s0 + $0x3a8] sm:$0xff] }
  0xc9   :  { %6730 = vmatmul.mubr.msk.f32.gmra.mrb[2].mxu1 %vm327_vm1, %v242_v18  ;;  %v282_v61 = vld [vmem:[%s10119_s0 + $0x3b0] sm:$0xff]  ;;  %v164_v62 = vld [vmem:[%s10119_s0] sm:$0xff]  ;;  %v283_v63 = vld [vmem:[%s10119_s0 + $0x3b8] sm:$0xff] }
  0xca   :  { %6732 = vmatprep.mubr.msk.f32.mxu1 %vm8211_vm0, %v8212_v1  ;;  %7443 = vmatpush3.bf16.msra.mxu1 %v8479_v26  ;;  %v284_v7 = vld [vmem:[%s10119_s0 + $0x3c0] sm:$0xff]  ;;  %v285_v8 = vld [vmem:[%s10119_s0 + $0x3c8] sm:$0xff]  ;;  %v286_v9 = vld [vmem:[%s10119_s0 + $0x3d0] sm:$0xff] }
  0xcb   :  { %7444 = vmatprep.subr.bf16.mxu1 %v8210_v0  ;;  %6496 = vmatmul.mubr.msk.f32.vlgmr.msra.gmra.mrb[0].mxu0 %vm327_vm1, %v164_v62  ;;  %v287_v10 = vld [vmem:[%s10119_s0 + $0x3d8] sm:$0xff]  ;;  %v288_v11 = vld [vmem:[%s10119_s0 + $0x3e0] sm:$0xff]  ;;  %v289_v12 = vld [vmem:[%s10119_s0 + $0x3e8] sm:$0xff] }
  0xcc   :  { %6498 = vmatprep.mubr.msk.f32.mxu0 %vm8211_vm0, %v8212_v1  ;;  %v290_v13 = vld [vmem:[%s10119_s0 + $0x3f0] sm:$0xff]  ;;  %v291_v14 = vld [vmem:[%s10119_s0 + $0x3f8] sm:$0xff]  ;;  %v292_v15 = vld [vmem:[%s10119_s0 + $0x400] sm:$0xff] }
  0xcd   :  { %6733 = vmatmul.mubr.msk.f32.gmra.mrb[4].mxu1 %vm327_vm1, %v243_v19  ;;  %v293_v16 = vld [vmem:[%s10119_s0 + $0x408] sm:$0xff]  ;;  %v8766_v18 = vld [vmem:[#allocation5] ss:$0 sm:$0xff]  ;;  %v294_v19 = vld [vmem:[%s10119_s0 + $0x410] sm:$0xff] }
  0xce   :  { %6735 = vmatprep.mubr.msk.f32.mxu1 %vm8211_vm0, %v8212_v1  ;;  %v295_v23 = vld [vmem:[%s10119_s0 + $0x418] sm:$0xff] }
  0xd1   :  { %6736 = vmatmul.mubr.msk.f32.gmra.mrb[6].mxu1 %vm327_vm1, %v244_v20 }
  0xd2   :  { %6738 = vmatprep.mubr.msk.f32.mxu1 %vm8211_vm0, %v8212_v1 }
  0xd5   :  { %6739 = vmatmul.mubr.msk.f32.gmra.mrb[8].mxu1 %vm327_vm1, %v245_v21 }
  0xd6   :  { %6741 = vmatprep.mubr.msk.f32.mxu1 %vm8211_vm0, %v8212_v1 }
  0xd9   :  { %6742 = vmatmul.mubr.msk.f32.gmra.mrb[10].mxu1 %vm327_vm1, %v246_v22 }
  0xda   :  { %6744 = vmatprep.mubr.msk.f32.mxu1 %vm8211_vm0, %v8212_v1 }
  0xdd   :  { %6745 = vmatmul.mubr.msk.f32.gmra.mrb[12].mxu1 %vm327_vm1, %v247_v25 }
  0xde   :  { %6747 = vmatprep.mubr.msk.f32.mxu1 %vm8211_vm0, %v8212_v1 }
  0xe1   :  { %6748 = vmatmul.mubr.msk.f32.gmra.mrb[14].mxu1 %vm327_vm1, %v248_v27 }
  0xe2   :  { %6750 = vmatprep.mubr.msk.f32.mxu1 %vm8211_vm0, %v8212_v1 }
  0xe5   :  { %6751 = vmatmul.mubr.msk.f32.gmra.mrb[16].mxu1 %vm327_vm1, %v249_v28  ;;  %v296_v28 = vld [vmem:[%s10119_s0 + $0x420] sm:$0xff] }
  0xe6   :  { %6753 = vmatprep.mubr.msk.f32.mxu1 %vm8211_vm0, %v8212_v1 }
  0xe9   :  { %6754 = vmatmul.mubr.msk.f32.gmra.mrb[18].mxu1 %vm327_vm1, %v250_v29 }
  0xea   :  { %6756 = vmatprep.mubr.msk.f32.mxu1 %vm8211_vm0, %v8212_v1 }
  0xed   :  { %6757 = vmatmul.mubr.msk.f32.gmra.mrb[20].mxu1 %vm327_vm1, %v251_v30 }
  0xee   :  { %6759 = vmatprep.mubr.msk.f32.mxu1 %vm8211_vm0, %v8212_v1 }
  0xf1   :  { %6760 = vmatmul.mubr.msk.f32.gmra.mrb[22].mxu1 %vm327_vm1, %v252_v31 }
  0xf2   :  { %6762 = vmatprep.mubr.msk.f32.mxu1 %vm8211_vm0, %v8212_v1 }
  0xf5   :  { %6763 = vmatmul.mubr.msk.f32.gmra.mrb[24].mxu1 %vm327_vm1, %v253_v32  ;;  %v297_v32 = vld [vmem:[%s10119_s0 + $0x428] sm:$0xff] }
  0xf6   :  { %6765 = vmatprep.mubr.msk.f32.mxu1 %vm8211_vm0, %v8212_v1 }
  0xf9   :  { %6766 = vmatmul.mubr.msk.f32.gmra.mrb[26].mxu1 %vm327_vm1, %v254_v33 }
  0xfa   :  { %6768 = vmatprep.mubr.msk.f32.mxu1 %vm8211_vm0, %v8212_v1 }
  0xfd   :  { %6769 = vmatmul.mubr.msk.f32.gmra.mrb[28].mxu1 %vm327_vm1, %v255_v34 }
  0xfe   :  { %6771 = vmatprep.mubr.msk.f32.mxu1 %vm8211_vm0, %v8212_v1 }
 0x101   :  { %6772 = vmatmul.mubr.msk.f32.gmra.mrb[30].mxu1 %vm327_vm1, %v256_v35 }
 0x102   :  { %6774 = vmatprep.mubr.msk.f32.mxu1 %vm8211_vm0, %v8212_v1 }
 0x105   :  { %6775 = vmatmul.mubr.msk.f32.gmra.mrb[32].mxu1 %vm327_vm1, %v257_v36  ;;  %v298_v36 = vld [vmem:[%s10119_s0 + $0x430] sm:$0xff] }
 0x106   :  { %6777 = vmatprep.mubr.msk.f32.mxu1 %vm8211_vm0, %v8212_v1 }
 0x109   :  { %6778 = vmatmul.mubr.msk.f32.gmra.mrb[34].mxu1 %vm327_vm1, %v258_v37 }
 0x10a   :  { %6780 = vmatprep.mubr.msk.f32.mxu1 %vm8211_vm0, %v8212_v1 }
 0x10d   :  { %6781 = vmatmul.mubr.msk.f32.gmra.mrb[36].mxu1 %vm327_vm1, %v259_v38 }
 0x10e   :  { %6783 = vmatprep.mubr.msk.f32.mxu1 %vm8211_vm0, %v8212_v1 }
 0x111   :  { %6784 = vmatmul.mubr.msk.f32.gmra.mrb[38].mxu1 %vm327_vm1, %v260_v39 }
 0x112   :  { %6786 = vmatprep.mubr.msk.f32.mxu1 %vm8211_vm0, %v8212_v1 }
 0x115   :  { %6787 = vmatmul.mubr.msk.f32.gmra.mrb[40].mxu1 %vm327_vm1, %v261_v40  ;;  %v299_v40 = vld [vmem:[%s10119_s0 + $0x438] sm:$0xff] }
 0x116   :  { %6789 = vmatprep.mubr.msk.f32.mxu1 %vm8211_vm0, %v8212_v1 }
 0x119   :  { %6790 = vmatmul.mubr.msk.f32.gmra.mrb[42].mxu1 %vm327_vm1, %v262_v41 }
 0x11a   :  { %6792 = vmatprep.mubr.msk.f32.mxu1 %vm8211_vm0, %v8212_v1 }
 0x11d   :  { %6793 = vmatmul.mubr.msk.f32.gmra.mrb[44].mxu1 %vm327_vm1, %v263_v42 }
 0x11e   :  { %6795 = vmatprep.mubr.msk.f32.mxu1 %vm8211_vm0, %v8212_v1 }
 0x121   :  { %6796 = vmatmul.mubr.msk.f32.gmra.mrb[46].mxu1 %vm327_vm1, %v264_v43 }
 0x122   :  { %6798 = vmatprep.mubr.msk.f32.mxu1 %vm8211_vm0, %v8212_v1 }
 0x125   :  { %6799 = vmatmul.mubr.msk.f32.gmra.mrb[48].mxu1 %vm327_vm1, %v265_v44  ;;  %v300_v44 = vld [vmem:[%s10119_s0 + $0x440] sm:$0xff] }
 0x126   :  { %6801 = vmatprep.mubr.msk.f32.mxu1 %vm8211_vm0, %v8212_v1 }
 0x129   :  { %6802 = vmatmul.mubr.msk.f32.gmra.mrb[50].mxu1 %vm327_vm1, %v266_v45 }
 0x12a   :  { %6804 = vmatprep.mubr.msk.f32.mxu1 %vm8211_vm0, %v8212_v1 }
 0x12d   :  { %6805 = vmatmul.mubr.msk.f32.gmra.mrb[52].mxu1 %vm327_vm1, %v267_v46 }
 0x12e   :  { %6807 = vmatprep.mubr.msk.f32.mxu1 %vm8211_vm0, %v8212_v1 }
 0x131   :  { %6808 = vmatmul.mubr.msk.f32.gmra.mrb[54].mxu1 %vm327_vm1, %v268_v47 }
 0x132   :  { %6810 = vmatprep.mubr.msk.f32.mxu1 %vm8211_vm0, %v8212_v1 }
 0x135   :  { %6811 = vmatmul.mubr.msk.f32.gmra.mrb[56].mxu1 %vm327_vm1, %v269_v48  ;;  %v301_v48 = vld [vmem:[%s10119_s0 + $0x448] sm:$0xff] }
 0x136   :  { %6813 = vmatprep.mubr.msk.f32.mxu1 %vm8211_vm0, %v8212_v1 }
 0x139   :  { %6814 = vmatmul.mubr.msk.f32.gmra.mrb[58].mxu1 %vm327_vm1, %v270_v49 }
 0x13a   :  { %6816 = vmatprep.mubr.msk.f32.mxu1 %vm8211_vm0, %v8212_v1 }
 0x13d   :  { %6817 = vmatmul.mubr.msk.f32.gmra.mrb[60].mxu1 %vm327_vm1, %v271_v50 }
 0x13e   :  { %6819 = vmatprep.mubr.msk.f32.mxu1 %vm8211_vm0, %v8212_v1 }
 0x141   :  { %6820 = vmatmul.mubr.msk.f32.gmra.mrb[62].mxu1 %vm327_vm1, %v272_v51 }
 0x142   :  { %6822 = vmatprep.mubr.msk.f32.mxu1 %vm8211_vm0, %v8212_v1 }
 0x145   :  { %6823 = vmatmul.mubr.msk.f32.gmra.mrb[64].mxu1 %vm327_vm1, %v273_v52  ;;  %v302_v52 = vld [vmem:[%s10119_s0 + $0x450] sm:$0xff] }
 0x146   :  { %6825 = vmatprep.mubr.msk.f32.mxu1 %vm8211_vm0, %v8212_v1 }
 0x149   :  { %6826 = vmatmul.mubr.msk.f32.gmra.mrb[66].mxu1 %vm327_vm1, %v274_v53 }
 0x14a   :  { %6828 = vmatprep.mubr.msk.f32.mxu1 %vm8211_vm0, %v8212_v1 }
 0x14d   :  { %6829 = vmatmul.mubr.msk.f32.gmra.mrb[68].mxu1 %vm327_vm1, %v275_v54 }
 0x14e   :  { %6831 = vmatprep.mubr.msk.f32.mxu1 %vm8211_vm0, %v8212_v1 }
 0x151   :  { %6832 = vmatmul.mubr.msk.f32.gmra.mrb[70].mxu1 %vm327_vm1, %v276_v55 }
 0x152   :  { %6834 = vmatprep.mubr.msk.f32.mxu1 %vm8211_vm0, %v8212_v1 }
 0x155   :  { %6835 = vmatmul.mubr.msk.f32.gmra.mrb[72].mxu1 %vm327_vm1, %v277_v56  ;;  %v303_v56 = vld [vmem:[%s10119_s0 + $0x458] sm:$0xff] }
 0x156   :  { %6837 = vmatprep.mubr.msk.f32.mxu1 %vm8211_vm0, %v8212_v1 }
 0x159   :  { %6838 = vmatmul.mubr.msk.f32.gmra.mrb[74].mxu1 %vm327_vm1, %v278_v57 }
 0x15a   :  { %6840 = vmatprep.mubr.msk.f32.mxu1 %vm8211_vm0, %v8212_v1 }
 0x15d   :  { %6841 = vmatmul.mubr.msk.f32.gmra.mrb[76].mxu1 %vm327_vm1, %v279_v58 }
 0x15e   :  { %6843 = vmatprep.mubr.msk.f32.mxu1 %vm8211_vm0, %v8212_v1 }
 0x161   :  { %6844 = vmatmul.mubr.msk.f32.gmra.mrb[78].mxu1 %vm327_vm1, %v280_v59 }
 0x162   :  { %6846 = vmatprep.mubr.msk.f32.mxu1 %vm8211_vm0, %v8212_v1 }
 0x165   :  { %6847 = vmatmul.mubr.msk.f32.gmra.mrb[80].mxu1 %vm327_vm1, %v281_v60  ;;  %v304_v60 = vld [vmem:[%s10119_s0 + $0x460] sm:$0xff] }
 0x166   :  { %6849 = vmatprep.mubr.msk.f32.mxu1 %vm8211_vm0, %v8212_v1 }
 0x169   :  { %6850 = vmatmul.mubr.msk.f32.gmra.mrb[82].mxu1 %vm327_vm1, %v282_v61 }
 0x16a   :  { %6852 = vmatprep.mubr.msk.f32.mxu1 %vm8211_vm0, %v8212_v1 }
 0x16d   :  { %6853 = vmatmul.mubr.msk.f32.gmra.mrb[84].mxu1 %vm327_vm1, %v283_v63 }
 0x16e   :  { %6855 = vmatprep.mubr.msk.f32.mxu1 %vm8211_vm0, %v8212_v1 }
 0x171   :  { %6856 = vmatmul.mubr.msk.f32.gmra.mrb[86].mxu1 %vm327_vm1, %v284_v7  ;;  %v305_v7 = vld [vmem:[%s10119_s0 + $0x468] sm:$0xff] }
 0x172   :  { %6858 = vmatprep.mubr.msk.f32.mxu1 %vm8211_vm0, %v8212_v1 }
 0x175   :  { %6859 = vmatmul.mubr.msk.f32.gmra.mrb[88].mxu1 %vm327_vm1, %v285_v8 }
 0x176   :  { %6861 = vmatprep.mubr.msk.f32.mxu1 %vm8211_vm0, %v8212_v1 }
 0x179   :  { %6862 = vmatmul.mubr.msk.f32.gmra.mrb[90].mxu1 %vm327_vm1, %v286_v9 }
 0x17a   :  { %6864 = vmatprep.mubr.msk.f32.mxu1 %vm8211_vm0, %v8212_v1 }
 0x17d   :  { %6865 = vmatmul.mubr.msk.f32.gmra.mrb[92].mxu1 %vm327_vm1, %v287_v10 }
 0x17e   :  { %6867 = vmatprep.mubr.msk.f32.mxu1 %vm8211_vm0, %v8212_v1 }
 0x181   :  { %6868 = vmatmul.mubr.msk.f32.gmra.mrb[94].mxu1 %vm327_vm1, %v288_v11  ;;  %v306_v11 = vld [vmem:[%s10119_s0 + $0x470] sm:$0xff] }
 0x182   :  { %6870 = vmatprep.mubr.msk.f32.mxu1 %vm8211_vm0, %v8212_v1 }
 0x185   :  { %6871 = vmatmul.mubr.msk.f32.gmra.mrb[96].mxu1 %vm327_vm1, %v289_v12 }
 0x186   :  { %6873 = vmatprep.mubr.msk.f32.mxu1 %vm8211_vm0, %v8212_v1 }
 0x189   :  { %6874 = vmatmul.mubr.msk.f32.gmra.mrb[98].mxu1 %vm327_vm1, %v290_v13 }
 0x18a   :  { %6876 = vmatprep.mubr.msk.f32.mxu1 %vm8211_vm0, %v8212_v1 }
 0x18d   :  { %6877 = vmatmul.mubr.msk.f32.gmra.mrb[100].mxu1 %vm327_vm1, %v291_v14 }
 0x18e   :  { %6879 = vmatprep.mubr.msk.f32.mxu1 %vm8211_vm0, %v8212_v1 }
 0x191   :  { %6880 = vmatmul.mubr.msk.f32.gmra.mrb[102].mxu1 %vm327_vm1, %v292_v15  ;;  %v307_v15 = vld [vmem:[%s10119_s0 + $0x478] sm:$0xff] }
 0x192   :  { %6882 = vmatprep.mubr.msk.f32.mxu1 %vm8211_vm0, %v8212_v1 }
 0x195   :  { %6883 = vmatmul.mubr.msk.f32.gmra.mrb[104].mxu1 %vm327_vm1, %v293_v16 }
 0x196   :  { %6885 = vmatprep.mubr.msk.f32.mxu1 %vm8211_vm0, %v8212_v1 }
 0x198   :  { %v1232_v20 = vpop.f32.mrb[0].mxu1 }
 0x199   :  { %v1233_v21 = vadd.f32 %v8766_v18, %v1232_v20  ;;  %v6728_v22 = vpop.f32.mrb[1].mxu1  ;;  %6886 = vmatmul.mubr.msk.f32.gmra.mrb[106].mxu1 %vm327_vm1, %v294_v19 }
 0x19a   :  { %6888 = vmatprep.mubr.msk.f32.mxu1 %vm8211_vm0, %v8212_v1 }
 0x19b   :  { %1678 = vst [vmem:[#allocation2 + $0x268] sm:$0xff] %v1233_v21  ;;  %v308_v21 = vld [vmem:[%s10119_s0 + $0x480] sm:$0xff] }
 0x19c   :  { %v1237_v24 = vpop.f32.mrb[2].mxu1 }
 0x19d   :  { %v1238_v25 = vadd.f32 %v8766_v18, %v1237_v24  ;;  %v6731_v27 = vpop.f32.mrb[3].mxu1  ;;  %6889 = vmatmul.mubr.msk.f32.gmra.mrb[108].mxu1 %vm327_vm1, %v295_v23 }
 0x19e   :  { %6891 = vmatprep.mubr.msk.f32.mxu1 %vm8211_vm0, %v8212_v1 }
 0x19f   :  { %1679 = vst [vmem:[#allocation2 + $0x270] sm:$0xff] %v1238_v25  ;;  %v309_v25 = vld [vmem:[%s10119_s0 + $0x488] sm:$0xff] }
 0x1a0   :  { %v1242_v29 = vpop.f32.mrb[4].mxu1 }
 0x1a1   :  { %v1243_v30 = vadd.f32 %v8766_v18, %v1242_v29  ;;  %v6734_v31 = vpop.f32.mrb[5].mxu1  ;;  %6892 = vmatmul.mubr.msk.f32.gmra.mrb[110].mxu1 %vm327_vm1, %v296_v28 }
 0x1a2   :  { %6894 = vmatprep.mubr.msk.f32.mxu1 %vm8211_vm0, %v8212_v1 }
 0x1a3   :  { %1680 = vst [vmem:[#allocation2 + $0x278] sm:$0xff] %v1243_v30  ;;  %v310_v30 = vld [vmem:[%s10119_s0 + $0x490] sm:$0xff] }
 0x1a4   :  { %v1247_v33 = vpop.f32.mrb[6].mxu1 }
 0x1a5   :  { %v1248_v34 = vadd.f32 %v8766_v18, %v1247_v33  ;;  %v6737_v35 = vpop.f32.mrb[7].mxu1  ;;  %6895 = vmatmul.mubr.msk.f32.gmra.mrb[112].mxu1 %vm327_vm1, %v297_v32 }
 0x1a6   :  { %6897 = vmatprep.mubr.msk.f32.mxu1 %vm8211_vm0, %v8212_v1 }
 0x1a7   :  { %1681 = vst [vmem:[#allocation2 + $0x280] sm:$0xff] %v1248_v34  ;;  %v311_v34 = vld [vmem:[%s10119_s0 + $0x498] sm:$0xff] }
 0x1a8   :  { %v1252_v37 = vpop.f32.mrb[8].mxu1 }
 0x1a9   :  { %v1253_v38 = vadd.f32 %v8766_v18, %v1252_v37  ;;  %v6740_v39 = vpop.f32.mrb[9].mxu1  ;;  %6898 = vmatmul.mubr.msk.f32.gmra.mrb[114].mxu1 %vm327_vm1, %v298_v36 }
 0x1aa   :  { %6900 = vmatprep.mubr.msk.f32.mxu1 %vm8211_vm0, %v8212_v1 }
 0x1ab   :  { %1682 = vst [vmem:[#allocation2 + $0x288] sm:$0xff] %v1253_v38  ;;  %v312_v38 = vld [vmem:[%s10119_s0 + $0x4a0] sm:$0xff] }
 0x1ac   :  { %v1257_v41 = vpop.f32.mrb[10].mxu1 }
 0x1ad   :  { %v1258_v42 = vadd.f32 %v8766_v18, %v1257_v41  ;;  %v6743_v43 = vpop.f32.mrb[11].mxu1  ;;  %6901 = vmatmul.mubr.msk.f32.gmra.mrb[116].mxu1 %vm327_vm1, %v299_v40 }
 0x1ae   :  { %6903 = vmatprep.mubr.msk.f32.mxu1 %vm8211_vm0, %v8212_v1 }
 0x1af   :  { %1683 = vst [vmem:[#allocation2 + $0x290] sm:$0xff] %v1258_v42  ;;  %v313_v42 = vld [vmem:[%s10119_s0 + $0x4a8] sm:$0xff] }
 0x1b0   :  { %v1262_v45 = vpop.f32.mrb[12].mxu1 }
 0x1b1   :  { %v1263_v46 = vadd.f32 %v8766_v18, %v1262_v45  ;;  %v6746_v47 = vpop.f32.mrb[13].mxu1  ;;  %6904 = vmatmul.mubr.msk.f32.gmra.mrb[118].mxu1 %vm327_vm1, %v300_v44 }
 0x1b2   :  { %6906 = vmatprep.mubr.msk.f32.mxu1 %vm8211_vm0, %v8212_v1 }
 0x1b3   :  { %1684 = vst [vmem:[#allocation2 + $0x298] sm:$0xff] %v1263_v46  ;;  %v314_v46 = vld [vmem:[%s10119_s0 + $0x4b0] sm:$0xff] }
 0x1b4   :  { %v1267_v49 = vpop.f32.mrb[14].mxu1 }
 0x1b5   :  { %v1268_v50 = vadd.f32 %v8766_v18, %v1267_v49  ;;  %v6749_v51 = vpop.f32.mrb[15].mxu1  ;;  %6907 = vmatmul.mubr.msk.f32.gmra.mrb[120].mxu1 %vm327_vm1, %v301_v48 }
 0x1b6   :  { %6909 = vmatprep.mubr.msk.f32.mxu1 %vm8211_vm0, %v8212_v1 }
 0x1b7   :  { %1685 = vst [vmem:[#allocation2 + $0x2a0] sm:$0xff] %v1268_v50 }
 0x1b8   :  { %v1272_v53 = vpop.f32.mrb[16].mxu1 }
 0x1b9   :  { %v1273_v54 = vadd.f32 %v8766_v18, %v1272_v53  ;;  %v6752_v55 = vpop.f32.mrb[17].mxu1  ;;  %6910 = vmatmul.mubr.msk.f32.gmra.mrb[122].mxu1 %vm327_vm1, %v302_v52 }
 0x1ba   :  { %6912 = vmatprep.mubr.msk.f32.mxu1 %vm8211_vm0, %v8212_v1 }
 0x1bb   :  { %1686 = vst [vmem:[#allocation2 + $0x2a8] sm:$0xff] %v1273_v54 }
 0x1bc   :  { %v1277_v57 = vpop.f32.mrb[18].mxu1 }
 0x1bd   :  { %v1278_v58 = vadd.f32 %v8766_v18, %v1277_v57  ;;  %v6755_v59 = vpop.f32.mrb[19].mxu1  ;;  %6913 = vmatmul.mubr.msk.f32.gmra.mrb[124].mxu1 %vm327_vm1, %v303_v56 }
 0x1be   :  { %6915 = vmatprep.mubr.msk.f32.mxu1 %vm8211_vm0, %v8212_v1 }
 0x1bf   :  { %1687 = vst [vmem:[#allocation2 + $0x2b0] sm:$0xff] %v1278_v58 }
 0x1c0   :  { %v1282_v61 = vpop.f32.mrb[20].mxu1 }
 0x1c1   :  { %v1283_v62 = vadd.f32 %v8766_v18, %v1282_v61  ;;  %v6758_v63 = vpop.f32.mrb[21].mxu1  ;;  %6916 = vmatmul.mubr.msk.f32.gmra.mrb[126].mxu1 %vm327_vm1, %v304_v60 }
 0x1c2   :  { %6918 = vmatprep.mubr.msk.f32.mxu1 %vm8211_vm0, %v8212_v1 }
 0x1c3   :  { %1688 = vst [vmem:[#allocation2 + $0x2b8] sm:$0xff] %v1283_v62 }
 0x1c4   :  { %v1287_v8 = vpop.f32.mrb[22].mxu1 }
 0x1c5   :  { %v1288_v9 = vadd.f32 %v8766_v18, %v1287_v8  ;;  %v6761_v10 = vpop.f32.mrb[23].mxu1  ;;  %6919 = vmatmul.mubr.msk.f32.gmra.mrb[128].mxu1 %vm327_vm1, %v305_v7 }
 0x1c6   :  { %6921 = vmatprep.mubr.msk.f32.mxu1 %vm8211_vm0, %v8212_v1 }
 0x1c7   :  { %1689 = vst [vmem:[#allocation2 + $0x2c0] sm:$0xff] %v1288_v9 }
 0x1c8   :  { %v1292_v12 = vpop.f32.mrb[24].mxu1 }
 0x1c9   :  { %v1293_v13 = vadd.f32 %v8766_v18, %v1292_v12  ;;  %v6764_v14 = vpop.f32.mrb[25].mxu1  ;;  %6922 = vmatmul.mubr.msk.f32.gmra.mrb[130].mxu1 %vm327_vm1, %v306_v11 }
 0x1ca   :  { %6924 = vmatprep.mubr.msk.f32.mxu1 %vm8211_vm0, %v8212_v1 }
 0x1cb   :  { %1690 = vst [vmem:[#allocation2 + $0x2c8] sm:$0xff] %v1293_v13 }
 0x1cc   :  { %v1297_v16 = vpop.f32.mrb[26].mxu1 }
 0x1cd   :  { %v1298_v19 = vadd.f32 %v8766_v18, %v1297_v16  ;;  %v6767_v20 = vpop.f32.mrb[27].mxu1  ;;  %6925 = vmatmul.mubr.msk.f32.gmra.mrb[132].mxu1 %vm327_vm1, %v307_v15 }
 0x1ce   :  { %6927 = vmatprep.mubr.msk.f32.mxu1 %vm8211_vm0, %v8212_v1 }
 0x1cf   :  { %1691 = vst [vmem:[#allocation2 + $0x2d0] sm:$0xff] %v1298_v19 }
 0x1d0   :  { %v1302_v22 = vpop.f32.mrb[28].mxu1 }
 0x1d1   :  { %v1303_v23 = vadd.f32 %v8766_v18, %v1302_v22  ;;  %v6770_v24 = vpop.f32.mrb[29].mxu1  ;;  %6928 = vmatmul.mubr.msk.f32.gmra.mrb[134].mxu1 %vm327_vm1, %v308_v21 }
 0x1d2   :  { %6930 = vmatprep.mubr.msk.f32.mxu1 %vm8211_vm0, %v8212_v1 }
 0x1d3   :  { %1692 = vst [vmem:[#allocation2 + $0x2d8] sm:$0xff] %v1303_v23 }
 0x1d4   :  { %v1307_v27 = vpop.f32.mrb[30].mxu1 }
 0x1d5   :  { %v1308_v28 = vadd.f32 %v8766_v18, %v1307_v27  ;;  %v6773_v29 = vpop.f32.mrb[31].mxu1  ;;  %6931 = vmatmul.mubr.msk.f32.gmra.mrb[136].mxu1 %vm327_vm1, %v309_v25 }
 0x1d6   :  { %6933 = vmatprep.mubr.msk.f32.mxu1 %vm8211_vm0, %v8212_v1 }
 0x1d7   :  { %1693 = vst [vmem:[#allocation2 + $0x2e0] sm:$0xff] %v1308_v28 }
 0x1d8   :  { %v1312_v31 = vpop.f32.mrb[32].mxu1 }
 0x1d9   :  { %v1313_v32 = vadd.f32 %v8766_v18, %v1312_v31  ;;  %v6776_v33 = vpop.f32.mrb[33].mxu1  ;;  %6934 = vmatmul.mubr.msk.f32.gmra.mrb[138].mxu1 %vm327_vm1, %v310_v30 }
 0x1da   :  { %6936 = vmatprep.mubr.msk.f32.mxu1 %vm8211_vm0, %v8212_v1 }
 0x1db   :  { %1694 = vst [vmem:[#allocation2 + $0x2e8] sm:$0xff] %v1313_v32 }
 0x1dc   :  { %v1317_v35 = vpop.f32.mrb[34].mxu1 }
 0x1dd   :  { %v1318_v36 = vadd.f32 %v8766_v18, %v1317_v35  ;;  %v6779_v37 = vpop.f32.mrb[35].mxu1  ;;  %6937 = vmatmul.mubr.msk.f32.gmra.mrb[140].mxu1 %vm327_vm1, %v311_v34 }
 0x1de   :  { %6939 = vmatprep.mubr.msk.f32.mxu1 %vm8211_vm0, %v8212_v1 }
 0x1df   :  { %1695 = vst [vmem:[#allocation2 + $0x2f0] sm:$0xff] %v1318_v36 }
 0x1e0   :  { %v1322_v39 = vpop.f32.mrb[36].mxu1 }
 0x1e1   :  { %v1323_v40 = vadd.f32 %v8766_v18, %v1322_v39  ;;  %v6782_v41 = vpop.f32.mrb[37].mxu1  ;;  %6940 = vmatmul.mubr.msk.f32.gmra.mrb[142].mxu1 %vm327_vm1, %v312_v38 }
 0x1e2   :  { %6942 = vmatprep.mubr.msk.f32.mxu1 %vm8211_vm0, %v8212_v1 }
 0x1e3   :  { %1696 = vst [vmem:[#allocation2 + $0x2f8] sm:$0xff] %v1323_v40 }
 0x1e4   :  { %v1327_v43 = vpop.f32.mrb[38].mxu1 }
 0x1e5   :  { %v1328_v44 = vadd.f32 %v8766_v18, %v1327_v43  ;;  %v6785_v45 = vpop.f32.mrb[39].mxu1  ;;  %6943 = vmatmul.mubr.msk.f32.gmra.mrb[144].mxu1 %vm327_vm1, %v313_v42 }
 0x1e6   :  { %6945 = vmatprep.mubr.msk.f32.mxu1 %vm8211_vm0, %v8212_v1 }
 0x1e7   :  { %1697 = vst [vmem:[#allocation2 + $0x300] sm:$0xff] %v1328_v44 }
 0x1e8   :  { %v1332_v47 = vpop.f32.mrb[40].mxu1 }
 0x1e9   :  { %v1333_v48 = vadd.f32 %v8766_v18, %v1332_v47  ;;  %v6788_v49 = vpop.f32.mrb[41].mxu1  ;;  %6946 = vmatmul.mubr.msk.f32.gmra.mrb[146].mxu1 %vm327_vm1, %v314_v46 }
 0x1ea   :  { %6956 = vmatprep.mubr.msk.f32.mxu1 %vm8211_vm0, %v8212_v1 }
 0x1eb   :  { %1698 = vst [vmem:[#allocation2 + $0x308] sm:$0xff] %v1333_v48 }
 0x1ec   :  { %v1337_v50 = vpop.f32.mrb[42].mxu1 }
 0x1ed   :  { %v1338_v51 = vadd.f32 %v8766_v18, %v1337_v50  ;;  %v6791_v52 = vpop.f32.mrb[43].mxu1  ;;  %6957 = vmatmul.mubr.f32.vlgmr.msra.gmra.mrb[148].mxu1 %v8212_v1 }
 0x1ee   :  { %6967 = vmatprep.mubr.msk.f32.mxu1 %vm8211_vm0, %v8212_v1 }
 0x1ef   :  { %1699 = vst [vmem:[#allocation2 + $0x310] sm:$0xff] %v1338_v51 }
 0x1f0   :  { %v1342_v53 = vpop.f32.mrb[44].mxu1 }
 0x1f1   :  { %v1343_v54 = vadd.f32 %v8766_v18, %v1342_v53  ;;  %v6794_v55 = vpop.f32.mrb[45].mxu1 }
 0x1f3   :  { %1700 = vst [vmem:[#allocation2 + $0x318] sm:$0xff] %v1343_v54 }
 0x1f4   :  { %v1347_v56 = vpop.f32.mrb[46].mxu1 }
 0x1f5   :  { %v1348_v57 = vadd.f32 %v8766_v18, %v1347_v56  ;;  %v6797_v58 = vpop.f32.mrb[47].mxu1  ;;  %v847_v56 = vpop.f32.mrb[0].mxu0 }
 0x1f6   :  { %v8941_v58 = vadd.f32 %v8766_v18, %v847_v56 }
 0x1f7   :  { %1701 = vst [vmem:[#allocation2 + $0x320] sm:$0xff] %v1348_v57 }
 0x1f8   :  { %v1352_v59 = vpop.f32.mrb[48].mxu1  ;;  %1601 = vst [vmem:[#allocation2] sm:$0xff] %v8941_v58 }
 0x1f9   :  { %v1353_v60 = vadd.f32 %v8766_v18, %v1352_v59  ;;  %v6800_v61 = vpop.f32.mrb[49].mxu1  ;;  %v6497_v59 = vpop.f32.mrb[1].mxu0 }
 0x1fb   :  { %1702 = vst [vmem:[#allocation2 + $0x328] sm:$0xff] %v1353_v60 }
 0x1fc   :  { %v1357_v62 = vpop.f32.mrb[50].mxu1 }
 0x1fd   :  { %v1358_v63 = vadd.f32 %v8766_v18, %v1357_v62  ;;  %v6803_v7 = vpop.f32.mrb[51].mxu1 }
 0x1ff   :  { %1703 = vst [vmem:[#allocation2 + $0x330] sm:$0xff] %v1358_v63 }
 0x200   :  { %v1362_v8 = vpop.f32.mrb[52].mxu1 }
 0x201   :  { %v1363_v9 = vadd.f32 %v8766_v18, %v1362_v8  ;;  %v6806_v10 = vpop.f32.mrb[53].mxu1 }
 0x203   :  { %1704 = vst [vmem:[#allocation2 + $0x338] sm:$0xff] %v1363_v9 }
 0x204   :  { %v1367_v11 = vpop.f32.mrb[54].mxu1 }
 0x205   :  { %v1368_v12 = vadd.f32 %v8766_v18, %v1367_v11  ;;  %v6809_v13 = vpop.f32.mrb[55].mxu1 }
 0x207   :  { %1705 = vst [vmem:[#allocation2 + $0x340] sm:$0xff] %v1368_v12 }
 0x208   :  { %v1372_v14 = vpop.f32.mrb[56].mxu1 }
 0x209   :  { %v1373_v15 = vadd.f32 %v8766_v18, %v1372_v14  ;;  %v6812_v16 = vpop.f32.mrb[57].mxu1 }
 0x20b   :  { %1706 = vst [vmem:[#allocation2 + $0x348] sm:$0xff] %v1373_v15 }
 0x20c   :  { %v1377_v19 = vpop.f32.mrb[58].mxu1 }
 0x20d   :  { %v1378_v20 = vadd.f32 %v8766_v18, %v1377_v19  ;;  %v6815_v21 = vpop.f32.mrb[59].mxu1 }
 0x20f   :  { %1707 = vst [vmem:[#allocation2 + $0x350] sm:$0xff] %v1378_v20 }
 0x210   :  { %v1382_v22 = vpop.f32.mrb[60].mxu1 }
 0x211   :  { %v1383_v23 = vadd.f32 %v8766_v18, %v1382_v22  ;;  %v6818_v24 = vpop.f32.mrb[61].mxu1 }
 0x213   :  { %1708 = vst [vmem:[#allocation2 + $0x358] sm:$0xff] %v1383_v23 }
 0x214   :  { %v1387_v25 = vpop.f32.mrb[62].mxu1 }
 0x215   :  { %v1388_v27 = vadd.f32 %v8766_v18, %v1387_v25  ;;  %v6821_v28 = vpop.f32.mrb[63].mxu1 }
 0x217   :  { %1709 = vst [vmem:[#allocation2 + $0x360] sm:$0xff] %v1388_v27 }
 0x218   :  { %v1392_v29 = vpop.f32.mrb[64].mxu1 }
 0x219   :  { %v1393_v30 = vadd.f32 %v8766_v18, %v1392_v29  ;;  %v6824_v31 = vpop.f32.mrb[65].mxu1 }
 0x21b   :  { %1710 = vst [vmem:[#allocation2 + $0x368] sm:$0xff] %v1393_v30 }
 0x21c   :  { %v1397_v32 = vpop.f32.mrb[66].mxu1 }
 0x21d   :  { %v1398_v33 = vadd.f32 %v8766_v18, %v1397_v32  ;;  %v6827_v34 = vpop.f32.mrb[67].mxu1 }
 0x21f   :  { %1711 = vst [vmem:[#allocation2 + $0x370] sm:$0xff] %v1398_v33 }
 0x220   :  { %v1402_v35 = vpop.f32.mrb[68].mxu1 }
 0x221   :  { %v1403_v36 = vadd.f32 %v8766_v18, %v1402_v35  ;;  %v6830_v37 = vpop.f32.mrb[69].mxu1 }
 0x223   :  { %1712 = vst [vmem:[#allocation2 + $0x378] sm:$0xff] %v1403_v36 }
 0x224   :  { %v1407_v38 = vpop.f32.mrb[70].mxu1 }
 0x225   :  { %v1408_v39 = vadd.f32 %v8766_v18, %v1407_v38  ;;  %v6833_v40 = vpop.f32.mrb[71].mxu1 }
 0x227   :  { %1713 = vst [vmem:[#allocation2 + $0x380] sm:$0xff] %v1408_v39 }
 0x228   :  { %v1412_v41 = vpop.f32.mrb[72].mxu1 }
 0x229   :  { %v1413_v42 = vadd.f32 %v8766_v18, %v1412_v41  ;;  %v6836_v43 = vpop.f32.mrb[73].mxu1 }
 0x22b   :  { %1714 = vst [vmem:[#allocation2 + $0x388] sm:$0xff] %v1413_v42 }
 0x22c   :  { %v1417_v44 = vpop.f32.mrb[74].mxu1 }
 0x22d   :  { %v1418_v45 = vadd.f32 %v8766_v18, %v1417_v44  ;;  %v6839_v46 = vpop.f32.mrb[75].mxu1 }
 0x22f   :  { %1715 = vst [vmem:[#allocation2 + $0x390] sm:$0xff] %v1418_v45 }
 0x230   :  { %v1422_v47 = vpop.f32.mrb[76].mxu1 }
 0x231   :  { %v1423_v48 = vadd.f32 %v8766_v18, %v1422_v47  ;;  %v6842_v49 = vpop.f32.mrb[77].mxu1 }
 0x233   :  { %1716 = vst [vmem:[#allocation2 + $0x398] sm:$0xff] %v1423_v48 }
 0x234   :  { %v1427_v50 = vpop.f32.mrb[78].mxu1 }
 0x235   :  { %v1428_v51 = vadd.f32 %v8766_v18, %v1427_v50  ;;  %v6845_v52 = vpop.f32.mrb[79].mxu1 }
 0x237   :  { %1717 = vst [vmem:[#allocation2 + $0x3a0] sm:$0xff] %v1428_v51 }
 0x238   :  { %v1432_v53 = vpop.f32.mrb[80].mxu1 }
 0x239   :  { %v1433_v54 = vadd.f32 %v8766_v18, %v1432_v53  ;;  %v6848_v55 = vpop.f32.mrb[81].mxu1 }
 0x23b   :  { %1718 = vst [vmem:[#allocation2 + $0x3a8] sm:$0xff] %v1433_v54 }
 0x23c   :  { %v1437_v57 = vpop.f32.mrb[82].mxu1 }
 0x23d   :  { %v1438_v60 = vadd.f32 %v8766_v18, %v1437_v57  ;;  %v6851_v61 = vpop.f32.mrb[83].mxu1 }
 0x23f   :  { %1719 = vst [vmem:[#allocation2 + $0x3b0] sm:$0xff] %v1438_v60 }
 0x240   :  { %v1442_v62 = vpop.f32.mrb[84].mxu1 }
 0x241   :  { %v1443_v63 = vadd.f32 %v8766_v18, %v1442_v62  ;;  %v6854_v7 = vpop.f32.mrb[85].mxu1 }
 0x243   :  { %1720 = vst [vmem:[#allocation2 + $0x3b8] sm:$0xff] %v1443_v63 }
 0x244   :  { %v1447_v8 = vpop.f32.mrb[86].mxu1 }
 0x245   :  { %v1448_v9 = vadd.f32 %v8766_v18, %v1447_v8  ;;  %v6857_v10 = vpop.f32.mrb[87].mxu1 }
 0x247   :  { %1721 = vst [vmem:[#allocation2 + $0x3c0] sm:$0xff] %v1448_v9 }
 0x248   :  { %v1452_v11 = vpop.f32.mrb[88].mxu1 }
 0x249   :  { %v1453_v12 = vadd.f32 %v8766_v18, %v1452_v11  ;;  %v6860_v13 = vpop.f32.mrb[89].mxu1 }
 0x24b   :  { %1722 = vst [vmem:[#allocation2 + $0x3c8] sm:$0xff] %v1453_v12 }
 0x24c   :  { %v1457_v14 = vpop.f32.mrb[90].mxu1 }
 0x24d   :  { %v1458_v15 = vadd.f32 %v8766_v18, %v1457_v14  ;;  %v6863_v16 = vpop.f32.mrb[91].mxu1 }
 0x24f   :  { %1723 = vst [vmem:[#allocation2 + $0x3d0] sm:$0xff] %v1458_v15 }
 0x250   :  { %v1462_v19 = vpop.f32.mrb[92].mxu1 }
 0x251   :  { %v1463_v20 = vadd.f32 %v8766_v18, %v1462_v19  ;;  %v6866_v21 = vpop.f32.mrb[93].mxu1 }
 0x253   :  { %1724 = vst [vmem:[#allocation2 + $0x3d8] sm:$0xff] %v1463_v20 }
 0x254   :  { %v1467_v22 = vpop.f32.mrb[94].mxu1 }
 0x255   :  { %v1468_v23 = vadd.f32 %v8766_v18, %v1467_v22  ;;  %v6869_v24 = vpop.f32.mrb[95].mxu1 }
 0x257   :  { %1725 = vst [vmem:[#allocation2 + $0x3e0] sm:$0xff] %v1468_v23 }
 0x258   :  { %v1472_v25 = vpop.f32.mrb[96].mxu1 }
 0x259   :  { %v1473_v27 = vadd.f32 %v8766_v18, %v1472_v25  ;;  %v6872_v28 = vpop.f32.mrb[97].mxu1 }
 0x25b   :  { %1726 = vst [vmem:[#allocation2 + $0x3e8] sm:$0xff] %v1473_v27 }
 0x25c   :  { %v1477_v29 = vpop.f32.mrb[98].mxu1 }
 0x25d   :  { %v1478_v30 = vadd.f32 %v8766_v18, %v1477_v29  ;;  %v6875_v31 = vpop.f32.mrb[99].mxu1 }
 0x25f   :  { %1727 = vst [vmem:[#allocation2 + $0x3f0] sm:$0xff] %v1478_v30 }
 0x260   :  { %v1482_v32 = vpop.f32.mrb[100].mxu1 }
 0x261   :  { %v1483_v33 = vadd.f32 %v8766_v18, %v1482_v32  ;;  %v6878_v34 = vpop.f32.mrb[101].mxu1 }
 0x263   :  { %1728 = vst [vmem:[#allocation2 + $0x3f8] sm:$0xff] %v1483_v33 }
 0x264   :  { %v1487_v35 = vpop.f32.mrb[102].mxu1 }
 0x265   :  { %v1488_v36 = vadd.f32 %v8766_v18, %v1487_v35  ;;  %v6881_v37 = vpop.f32.mrb[103].mxu1 }
 0x267   :  { %1729 = vst [vmem:[#allocation2 + $0x400] sm:$0xff] %v1488_v36 }
 0x268   :  { %v1492_v38 = vpop.f32.mrb[104].mxu1 }
 0x269   :  { %v1493_v39 = vadd.f32 %v8766_v18, %v1492_v38  ;;  %v6884_v40 = vpop.f32.mrb[105].mxu1 }
 0x26b   :  { %1730 = vst [vmem:[#allocation2 + $0x408] sm:$0xff] %v1493_v39 }
 0x26c   :  { %v1497_v41 = vpop.f32.mrb[106].mxu1 }
 0x26d   :  { %v1498_v42 = vadd.f32 %v8766_v18, %v1497_v41  ;;  %v6887_v43 = vpop.f32.mrb[107].mxu1 }
 0x26f   :  { %1731 = vst [vmem:[#allocation2 + $0x410] sm:$0xff] %v1498_v42 }
 0x270   :  { %v1502_v44 = vpop.f32.mrb[108].mxu1 }
 0x271   :  { %v1503_v45 = vadd.f32 %v8766_v18, %v1502_v44  ;;  %v6890_v46 = vpop.f32.mrb[109].mxu1 }
 0x272   :  { %v165_v46 = vld [vmem:[%s10119_s0 + $0x8] sm:$0xff] }
 0x273   :  { %1732 = vst [vmem:[#allocation2 + $0x418] sm:$0xff] %v1503_v45  ;;  %6499 = vmatmul.mubr.msk.f32.gmra.mrb[2].mxu0 %vm327_vm1, %v165_v46  ;;  %v203_v46 = vld [vmem:[%s10119_s0 + $0x138] sm:$0xff] }
 0x274   :  { %v1507_v47 = vpop.f32.mrb[110].mxu1  ;;  %6501 = vmatprep.mubr.msk.f32.mxu0 %vm8211_vm0, %v8212_v1 }
 0x275   :  { %v1508_v48 = vadd.f32 %v8766_v18, %v1507_v47  ;;  %v6893_v49 = vpop.f32.mrb[111].mxu1 }
 0x276   :  { %v166_v49 = vld [vmem:[%s10119_s0 + $0x10] sm:$0xff] }
 0x277   :  { %1733 = vst [vmem:[#allocation2 + $0x420] sm:$0xff] %v1508_v48  ;;  %6502 = vmatmul.mubr.msk.f32.gmra.mrb[4].mxu0 %vm327_vm1, %v166_v49  ;;  %v206_v49 = vld [vmem:[%s10119_s0 + $0x150] sm:$0xff] }
 0x278   :  { %v1512_v50 = vpop.f32.mrb[112].mxu1  ;;  %6504 = vmatprep.mubr.msk.f32.mxu0 %vm8211_vm0, %v8212_v1 }
 0x279   :  { %v1513_v51 = vadd.f32 %v8766_v18, %v1512_v50  ;;  %v6896_v52 = vpop.f32.mrb[113].mxu1 }
 0x27b   :  { %1734 = vst [vmem:[#allocation2 + $0x428] sm:$0xff] %v1513_v51 }
 0x27c   :  { %v1517_v53 = vpop.f32.mrb[114].mxu1 }
 0x27d   :  { %v1518_v54 = vadd.f32 %v8766_v18, %v1517_v53  ;;  %v6899_v55 = vpop.f32.mrb[115].mxu1  ;;  %v8987_v53 = vld [vmem:[#allocation8] ss:$0 sm:$0xff] }
 0x27f   :  { %1735 = vst [vmem:[#allocation2 + $0x430] sm:$0xff] %v1518_v54  ;;  %v167_v54 = vld [vmem:[%s10119_s0 + $0x18] sm:$0xff] }
 0x280   :  { %v1522_v56 = vpop.f32.mrb[116].mxu1  ;;  %6505 = vmatmul.mubr.msk.f32.gmra.mrb[6].mxu0 %vm327_vm1, %v167_v54  ;;  %v210_v54 = vld [vmem:[%s10119_s0 + $0x170] sm:$0xff] }
 0x281   :  { %v1523_v57 = vadd.f32 %v8766_v18, %v1522_v56  ;;  %v6902_v59 = vpop.f32.mrb[117].mxu1  ;;  %6507 = vmatprep.mubr.msk.f32.mxu0 %vm8211_vm0, %v8212_v1 }
 0x282   :  { %v169_v59 = vld [vmem:[%s10119_s0 + $0x28] sm:$0xff] }
 0x283   :  { %1736 = vst [vmem:[#allocation2 + $0x438] sm:$0xff] %v1523_v57 }
 0x284   :  { %v1527_v60 = vpop.f32.mrb[118].mxu1 }
 0x285   :  { %v1528_v61 = vadd.f32 %v8766_v18, %v1527_v60  ;;  %v6905_v62 = vpop.f32.mrb[119].mxu1  ;;  %v170_v60 = vld [vmem:[%s10119_s0 + $0x30] sm:$0xff] }
 0x286   :  { %v172_v62 = vld [vmem:[%s10119_s0 + $0x40] sm:$0xff] }
 0x287   :  { %1737 = vst [vmem:[#allocation2 + $0x440] sm:$0xff] %v1528_v61  ;;  %v171_v61 = vld [vmem:[%s10119_s0 + $0x38] sm:$0xff] }
 0x288   :  { %v1532_v63 = vpop.f32.mrb[120].mxu1 }
 0x289   :  { %v1533_v7 = vadd.f32 %v8766_v18, %v1532_v63  ;;  %v6908_v8 = vpop.f32.mrb[121].mxu1  ;;  %v173_v63 = vld [vmem:[%s10119_s0 + $0x48] sm:$0xff] }
 0x28a   :  { %v175_v8 = vld [vmem:[%s10119_s0 + $0x58] sm:$0xff] }
 0x28b   :  { %1738 = vst [vmem:[#allocation2 + $0x448] sm:$0xff] %v1533_v7  ;;  %v174_v7 = vld [vmem:[%s10119_s0 + $0x50] sm:$0xff] }
 0x28c   :  { %v1537_v9 = vpop.f32.mrb[122].mxu1 }
 0x28d   :  { %v1538_v10 = vadd.f32 %v8766_v18, %v1537_v9  ;;  %v6911_v11 = vpop.f32.mrb[123].mxu1  ;;  %v176_v9 = vld [vmem:[%s10119_s0 + $0x60] sm:$0xff] }
 0x28e   :  { %v178_v11 = vld [vmem:[%s10119_s0 + $0x70] sm:$0xff] }
 0x28f   :  { %1739 = vst [vmem:[#allocation2 + $0x450] sm:$0xff] %v1538_v10  ;;  %v177_v10 = vld [vmem:[%s10119_s0 + $0x68] sm:$0xff] }
 0x290   :  { %v1542_v12 = vpop.f32.mrb[124].mxu1 }
 0x291   :  { %v1543_v13 = vadd.f32 %v8766_v18, %v1542_v12  ;;  %v6914_v14 = vpop.f32.mrb[125].mxu1 }
 0x293   :  { %1740 = vst [vmem:[#allocation2 + $0x458] sm:$0xff] %v1543_v13 }
 0x294   :  { %v1547_v15 = vpop.f32.mrb[126].mxu1 }
 0x295   :  { %v1548_v16 = vadd.f32 %v8766_v18, %v1547_v15  ;;  %v6917_v19 = vpop.f32.mrb[127].mxu1 }
 0x296   :  { %v180_v19 = vld [vmem:[%s10119_s0 + $0x80] sm:$0xff] }
 0x297   :  { %1741 = vst [vmem:[#allocation2 + $0x460] sm:$0xff] %v1548_v16  ;;  %v179_v16 = vld [vmem:[%s10119_s0 + $0x78] sm:$0xff] }
 0x298   :  { %v1552_v20 = vpop.f32.mrb[128].mxu1 }
 0x299   :  { %v1553_v21 = vadd.f32 %v8766_v18, %v1552_v20  ;;  %v6920_v22 = vpop.f32.mrb[129].mxu1  ;;  %v181_v20 = vld [vmem:[%s10119_s0 + $0x88] sm:$0xff] }
 0x29b   :  { %1742 = vst [vmem:[#allocation2 + $0x468] sm:$0xff] %v1553_v21  ;;  %v182_v21 = vld [vmem:[%s10119_s0 + $0x90] sm:$0xff] }
 0x29c   :  { %v1557_v23 = vpop.f32.mrb[130].mxu1 }
 0x29d   :  { %v1558_v24 = vadd.f32 %v8766_v18, %v1557_v23  ;;  %v6923_v25 = vpop.f32.mrb[131].mxu1 }
 0x29e   :  { %v183_v25 = vld [vmem:[%s10119_s0 + $0x98] sm:$0xff] }
 0x29f   :  { %1743 = vst [vmem:[#allocation2 + $0x470] sm:$0xff] %v1558_v24 }
 0x2a0   :  { %v1562_v27 = vpop.f32.mrb[132].mxu1 }
 0x2a1   :  { %v1563_v28 = vadd.f32 %v8766_v18, %v1562_v27  ;;  %v6926_v29 = vpop.f32.mrb[133].mxu1  ;;  %v184_v27 = vld [vmem:[%s10119_s0 + $0xa0] sm:$0xff] }
 0x2a2   :  { %v186_v29 = vld [vmem:[%s10119_s0 + $0xb0] sm:$0xff] }
 0x2a3   :  { %1744 = vst [vmem:[#allocation2 + $0x478] sm:$0xff] %v1563_v28  ;;  %v185_v28 = vld [vmem:[%s10119_s0 + $0xa8] sm:$0xff] }
 0x2a4   :  { %v1567_v30 = vpop.f32.mrb[134].mxu1 }
 0x2a5   :  { %v1568_v31 = vadd.f32 %v8766_v18, %v1567_v30  ;;  %v6929_v32 = vpop.f32.mrb[135].mxu1  ;;  %v187_v30 = vld [vmem:[%s10119_s0 + $0xb8] sm:$0xff] }
 0x2a6   :  { %v189_v32 = vld [vmem:[%s10119_s0 + $0xc8] sm:$0xff] }
 0x2a7   :  { %1745 = vst [vmem:[#allocation2 + $0x480] sm:$0xff] %v1568_v31  ;;  %v188_v31 = vld [vmem:[%s10119_s0 + $0xc0] sm:$0xff] }
 0x2a8   :  { %v1572_v33 = vpop.f32.mrb[136].mxu1 }
 0x2a9   :  { %v1573_v34 = vadd.f32 %v8766_v18, %v1572_v33  ;;  %v6932_v35 = vpop.f32.mrb[137].mxu1  ;;  %v190_v33 = vld [vmem:[%s10119_s0 + $0xd0] sm:$0xff] }
 0x2aa   :  { %v192_v35 = vld [vmem:[%s10119_s0 + $0xe0] sm:$0xff] }
 0x2ab   :  { %1746 = vst [vmem:[#allocation2 + $0x488] sm:$0xff] %v1573_v34  ;;  %v191_v34 = vld [vmem:[%s10119_s0 + $0xd8] sm:$0xff] }
 0x2ac   :  { %v1577_v36 = vpop.f32.mrb[138].mxu1 }
 0x2ad   :  { %v1578_v37 = vadd.f32 %v8766_v18, %v1577_v36  ;;  %v6935_v38 = vpop.f32.mrb[139].mxu1  ;;  %v193_v36 = vld [vmem:[%s10119_s0 + $0xe8] sm:$0xff] }
 0x2ae   :  { %v195_v38 = vld [vmem:[%s10119_s0 + $0xf8] sm:$0xff] }
 0x2af   :  { %1747 = vst [vmem:[#allocation2 + $0x490] sm:$0xff] %v1578_v37  ;;  %v194_v37 = vld [vmem:[%s10119_s0 + $0xf0] sm:$0xff] }
 0x2b0   :  { %v1582_v39 = vpop.f32.mrb[140].mxu1 }
 0x2b1   :  { %v1583_v40 = vadd.f32 %v8766_v18, %v1582_v39  ;;  %v6938_v41 = vpop.f32.mrb[141].mxu1  ;;  %v196_v39 = vld [vmem:[%s10119_s0 + $0x100] sm:$0xff] }
 0x2b2   :  { %v198_v41 = vld [vmem:[%s10119_s0 + $0x110] sm:$0xff] }
 0x2b3   :  { %1748 = vst [vmem:[#allocation2 + $0x498] sm:$0xff] %v1583_v40  ;;  %v197_v40 = vld [vmem:[%s10119_s0 + $0x108] sm:$0xff] }
 0x2b4   :  { %v1587_v42 = vpop.f32.mrb[142].mxu1 }
 0x2b5   :  { %v1588_v43 = vadd.f32 %v8766_v18, %v1587_v42  ;;  %v6941_v44 = vpop.f32.mrb[143].mxu1  ;;  %v199_v42 = vld [vmem:[%s10119_s0 + $0x118] sm:$0xff] }
 0x2b6   :  { %v201_v44 = vld [vmem:[%s10119_s0 + $0x128] sm:$0xff] }
 0x2b7   :  { %1749 = vst [vmem:[#allocation2 + $0x4a0] sm:$0xff] %v1588_v43  ;;  %v200_v43 = vld [vmem:[%s10119_s0 + $0x120] sm:$0xff] }
 0x2b8   :  { %v1592_v45 = vpop.f32.mrb[144].mxu1 }
 0x2b9   :  { %v1593_v47 = vadd.f32 %v8766_v18, %v1592_v45  ;;  %v6944_v48 = vpop.f32.mrb[145].mxu1  ;;  %v202_v45 = vld [vmem:[%s10119_s0 + $0x130] sm:$0xff] }
 0x2ba   :  { %v205_v48 = vld [vmem:[%s10119_s0 + $0x148] sm:$0xff] }
 0x2bb   :  { %1750 = vst [vmem:[#allocation2 + $0x4a8] sm:$0xff] %v1593_v47  ;;  %v204_v47 = vld [vmem:[%s10119_s0 + $0x140] sm:$0xff] }
 0x2bc   :  { %v1597_v50 = vpop.f32.mrb[146].mxu1 }
 0x2bd   :  { %v1598_v51 = vadd.f32 %v8766_v18, %v1597_v50  ;;  %v6947_v52 = vpop.f32.mrb[147].mxu1  ;;  %v168_v18 = vld [vmem:[%s10119_s0 + $0x20] sm:$0xff]  ;;  %v207_v50 = vld [vmem:[%s10119_s0 + $0x158] sm:$0xff] }
 0x2be   :  { %6508 = vmatmul.mubr.msk.f32.gmra.mrb[8].mxu0 %vm327_vm1, %v168_v18  ;;  %v209_v52 = vld [vmem:[%s10119_s0 + $0x168] sm:$0xff]  ;;  %v212_v18 = vld [vmem:[%s10119_s0 + $0x180] sm:$0xff] }
 0x2bf   :  { %1751 = vst [vmem:[#allocation2 + $0x4b0] sm:$0xff] %v1598_v51  ;;  %6510 = vmatprep.mubr.msk.f32.mxu0 %vm8211_vm0, %v8212_v1  ;;  %v208_v51 = vld [vmem:[%s10119_s0 + $0x160] sm:$0xff] }
 0x2c0   :  { %v1856_v55 = vpop.f32.mrb[148].mxu1 }
 0x2c1   :  { %v1857_v56 = vadd.f32 %v8987_v53, %v1856_v55  ;;  %v6958_v57 = vpop.f32.mrb[149].mxu1 }
 0x2c2   :  { %6511 = vmatmul.mubr.msk.f32.gmra.mrb[10].mxu0 %vm327_vm1, %v169_v59 }
 0x2c3   :  { %1868 = vrot.lane.b32.xlu0 %v1857_v56, %s8213_s21  ;;  %6513 = vmatprep.mubr.msk.f32.mxu0 %vm8211_vm0, %v8212_v1  ;;  %v1860_v12 = vadd.f32 %v1857_v56, %v8941_v58  ;;  %v211_v56 = vld [vmem:[%s10119_s0 + $0x178] sm:$0xff] }
 0x2c5   :  { %v5977_v13 = vmul.f32 -1.442695, %v1860_v12 }
 0x2c6   :  { %6514 = vmatmul.mubr.msk.f32.gmra.mrb[12].mxu0 %vm327_vm1, %v170_v60  ;;  %v9278_v60 = vld [vmem:[#allocation5] ss:$0 sm:$0xff] }
 0x2c7   :  { %6516 = vmatprep.mubr.msk.f32.mxu0 %vm8211_vm0, %v8212_v1  ;;  %7789 = vpow2.f32 %v5977_v13 }
 0x2ca   :  { %6517 = vmatmul.mubr.msk.f32.gmra.mrb[14].mxu0 %vm327_vm1, %v171_v61 }
 0x2cb   :  { %6519 = vmatprep.mubr.msk.f32.mxu0 %vm8211_vm0, %v8212_v1 }
 0x2ce   :  { %6520 = vmatmul.mubr.msk.f32.gmra.mrb[16].mxu0 %vm327_vm1, %v172_v62 }
 0x2cf   :  { %6522 = vmatprep.mubr.msk.f32.mxu0 %vm8211_vm0, %v8212_v1 }
 0x2d1   :  { %v7790_v14 = vpop.eup %7789 }
 0x2d2   :  { %6523 = vmatmul.mubr.msk.f32.gmra.mrb[18].mxu0 %vm327_vm1, %v173_v63  ;;  %v1864_v15 = vadd.f32 1.0, %v7790_v14 }
 0x2d3   :  { %6525 = vmatprep.mubr.msk.f32.mxu0 %vm8211_vm0, %v8212_v1 }
 0x2d4   :  { %7791 = vrcp.f32 %v1864_v15 }
 0x2d6   :  { %6526 = vmatmul.mubr.msk.f32.gmra.mrb[20].mxu0 %vm327_vm1, %v174_v7 }
 0x2d7   :  { %6528 = vmatprep.mubr.msk.f32.mxu0 %vm8211_vm0, %v8212_v1 }
 0x2da   :  { %6529 = vmatmul.mubr.msk.f32.gmra.mrb[22].mxu0 %vm327_vm1, %v175_v8 }
 0x2db   :  { %6531 = vmatprep.mubr.msk.f32.mxu0 %vm8211_vm0, %v8212_v1 }
 0x2de   :  { %6532 = vmatmul.mubr.msk.f32.gmra.mrb[24].mxu0 %vm327_vm1, %v176_v9  ;;  %v9087_v22 = vpop.eup %7791 }
 0x2df   :  { %6534 = vmatprep.mubr.msk.f32.mxu0 %vm8211_vm0, %v8212_v1 }
 0x2e2   :  { %6535 = vmatmul.mubr.msk.f32.gmra.mrb[26].mxu0 %vm327_vm1, %v177_v10  ;;  %v214_v10 = vld [vmem:[%s10119_s0 + $0x190] sm:$0xff] }
 0x2e3   :  { %6537 = vmatprep.mubr.msk.f32.mxu0 %vm8211_vm0, %v8212_v1 }
 0x2e6   :  { %6538 = vmatmul.mubr.msk.f32.gmra.mrb[28].mxu0 %vm327_vm1, %v178_v11 }
 0x2e7   :  { %6540 = vmatprep.mubr.msk.f32.mxu0 %vm8211_vm0, %v8212_v1 }
 0x2ea   :  { %6541 = vmatmul.mubr.msk.f32.gmra.mrb[30].mxu0 %vm327_vm1, %v179_v16 }
 0x2eb   :  { %6543 = vmatprep.mubr.msk.f32.mxu0 %vm8211_vm0, %v8212_v1 }
 0x2ee   :  { %6544 = vmatmul.mubr.msk.f32.gmra.mrb[32].mxu0 %vm327_vm1, %v180_v19 }
 0x2ef   :  { %6546 = vmatprep.mubr.msk.f32.mxu0 %vm8211_vm0, %v8212_v1 }
 0x2f2   :  { %6547 = vmatmul.mubr.msk.f32.gmra.mrb[34].mxu0 %vm327_vm1, %v181_v20  ;;  %v1774_v20 = vld [vmem:[#allocation10] sm:$0xff] }
 0x2f3   :  { %6549 = vmatprep.mubr.msk.f32.mxu0 %vm8211_vm0, %v8212_v1 }
 0x2f6   :  { %6550 = vmatmul.mubr.msk.f32.gmra.mrb[36].mxu0 %vm327_vm1, %v182_v21  ;;  %v215_v21 = vld [vmem:[%s10119_s0 + $0x198] sm:$0xff] }
 0x2f7   :  { %6552 = vmatprep.mubr.msk.f32.mxu0 %vm8211_vm0, %v8212_v1 }
 0x2fa   :  { %6553 = vmatmul.mubr.msk.f32.gmra.mrb[38].mxu0 %vm327_vm1, %v183_v25  ;;  %v1775_v25 = vld [vmem:[#allocation10 + $0x8] sm:$0xff] }
 0x2fb   :  { %6555 = vmatprep.mubr.msk.f32.mxu0 %vm8211_vm0, %v8212_v1 }
 0x2fe   :  { %6556 = vmatmul.mubr.msk.f32.gmra.mrb[40].mxu0 %vm327_vm1, %v184_v27  ;;  %v1776_v27 = vld [vmem:[#allocation10 + $0x10] sm:$0xff] }
 0x2ff   :  { %6558 = vmatprep.mubr.msk.f32.mxu0 %vm8211_vm0, %v8212_v1 }
 0x302   :  { %6559 = vmatmul.mubr.msk.f32.gmra.mrb[42].mxu0 %vm327_vm1, %v185_v28 }
 0x303   :  { %6561 = vmatprep.mubr.msk.f32.mxu0 %vm8211_vm0, %v8212_v1 }
 0x306   :  { %6562 = vmatmul.mubr.msk.f32.gmra.mrb[44].mxu0 %vm327_vm1, %v186_v29  ;;  %v9298_v29 = vpack.c.bf16 %v1775_v25, %v1774_v20  ;;  %v232_v20 = vld [vmem:[%s10119_s0 + $0x220] sm:$0xff]  ;;  %v233_v25 = vld [vmem:[%s10119_s0 + $0x228] sm:$0xff] }
 0x307   :  { %6564 = vmatprep.mubr.msk.f32.mxu0 %vm8211_vm0, %v8212_v1 }
 0x308   :  { %7446 = vmatpush3.bf16.msra.mxu1 %v9298_v29 }
 0x309   :  { %7447 = vmatprep.subr.bf16.mxu1 %v8210_v0 }
 0x30a   :  { %6565 = vmatmul.mubr.msk.f32.gmra.mrb[46].mxu0 %vm327_vm1, %v187_v30  ;;  %v1777_v30 = vld [vmem:[#allocation10 + $0x18] sm:$0xff] }
 0x30b   :  { %6567 = vmatprep.mubr.msk.f32.mxu0 %vm8211_vm0, %v8212_v1 }
 0x30e   :  { %6568 = vmatmul.mubr.msk.f32.gmra.mrb[48].mxu0 %vm327_vm1, %v188_v31 }
 0x30f   :  { %6570 = vmatprep.mubr.msk.f32.mxu0 %vm8211_vm0, %v8212_v1 }
 0x312   :  { %6571 = vmatmul.mubr.msk.f32.gmra.mrb[50].mxu0 %vm327_vm1, %v189_v32 }
 0x313   :  { %6573 = vmatprep.mubr.msk.f32.mxu0 %vm8211_vm0, %v8212_v1 }
 0x316   :  { %6574 = vmatmul.mubr.msk.f32.gmra.mrb[52].mxu0 %vm327_vm1, %v190_v33 }
 0x317   :  { %6576 = vmatprep.mubr.msk.f32.mxu0 %vm8211_vm0, %v8212_v1 }
 0x31a   :  { %6577 = vmatmul.mubr.msk.f32.gmra.mrb[54].mxu0 %vm327_vm1, %v191_v34  ;;  %v9303_v34 = vpack.c.bf16 %v1777_v30, %v1776_v27 }
 0x31b   :  { %6579 = vmatprep.mubr.msk.f32.mxu0 %vm8211_vm0, %v8212_v1 }
 0x31c   :  { %7449 = vmatpush3.bf16.msra.mxu1 %v9303_v34 }
 0x31e   :  { %6580 = vmatmul.mubr.msk.f32.gmra.mrb[56].mxu0 %vm327_vm1, %v192_v35  ;;  %v216_v35 = vld [vmem:[%s10119_s0 + $0x1a0] sm:$0xff] }
 0x31f   :  { %6582 = vmatprep.mubr.msk.f32.mxu0 %vm8211_vm0, %v8212_v1 }
 0x322   :  { %6583 = vmatmul.mubr.msk.f32.gmra.mrb[58].mxu0 %vm327_vm1, %v193_v36 }
 0x323   :  { %6585 = vmatprep.mubr.msk.f32.mxu0 %vm8211_vm0, %v8212_v1 }
 0x326   :  { %6586 = vmatmul.mubr.msk.f32.gmra.mrb[60].mxu0 %vm327_vm1, %v194_v37 }
 0x327   :  { %6588 = vmatprep.mubr.msk.f32.mxu0 %vm8211_vm0, %v8212_v1 }
 0x32a   :  { %6589 = vmatmul.mubr.msk.f32.gmra.mrb[62].mxu0 %vm327_vm1, %v195_v38 }
 0x32b   :  { %6591 = vmatprep.mubr.msk.f32.mxu0 %vm8211_vm0, %v8212_v1 }
 0x32e   :  { %6592 = vmatmul.mubr.msk.f32.gmra.mrb[64].mxu0 %vm327_vm1, %v196_v39 }
 0x32f   :  { %6594 = vmatprep.mubr.msk.f32.mxu0 %vm8211_vm0, %v8212_v1 }
 0x332   :  { %6595 = vmatmul.mubr.msk.f32.gmra.mrb[66].mxu0 %vm327_vm1, %v197_v40 }
 0x333   :  { %6597 = vmatprep.mubr.msk.f32.mxu0 %vm8211_vm0, %v8212_v1 }
 0x335   :  { %v1869_v23 = vpop.permute.xlu0 %1868 }
 0x336   :  { %v1871_v24 = vmul.f32 %v9087_v22, %v1869_v23  ;;  %6598 = vmatmul.mubr.msk.f32.gmra.mrb[68].mxu0 %vm327_vm1, %v198_v41 }
 0x337   :  { %6600 = vmatprep.mubr.msk.f32.mxu0 %vm8211_vm0, %v8212_v1 }
 0x338   :  { %1873 = vrot.lane.b32.xlu0 %v1871_v24, %s8213_s21 }
 0x33a   :  { %6601 = vmatmul.mubr.msk.f32.gmra.mrb[70].mxu0 %vm327_vm1, %v199_v42  ;;  %v217_v42 = vld [vmem:[%s10119_s0 + $0x1a8] sm:$0xff] }
 0x33b   :  { %6603 = vmatprep.mubr.msk.f32.mxu0 %vm8211_vm0, %v8212_v1 }
 0x33e   :  { %6604 = vmatmul.mubr.msk.f32.gmra.mrb[72].mxu0 %vm327_vm1, %v200_v43 }
 0x33f   :  { %6606 = vmatprep.mubr.msk.f32.mxu0 %vm8211_vm0, %v8212_v1 }
 0x342   :  { %6607 = vmatmul.mubr.msk.f32.gmra.mrb[74].mxu0 %vm327_vm1, %v201_v44 }
 0x343   :  { %6609 = vmatprep.mubr.msk.f32.mxu0 %vm8211_vm0, %v8212_v1 }
 0x346   :  { %6610 = vmatmul.mubr.msk.f32.gmra.mrb[76].mxu0 %vm327_vm1, %v202_v45  ;;  %v852_v59 = vpop.f32.mrb[2].mxu0 }
 0x347   :  { %6612 = vmatprep.mubr.msk.f32.mxu0 %vm8211_vm0, %v8212_v1  ;;  %v853_v61 = vadd.f32 %v9278_v60, %v852_v59  ;;  %v6500_v62 = vpop.f32.mrb[3].mxu0 }
 0x349   :  { %1602 = vst [vmem:[#allocation2 + $0x8] sm:$0xff] %v853_v61 }
 0x34a   :  { %6613 = vmatmul.mubr.msk.f32.gmra.mrb[78].mxu0 %vm327_vm1, %v203_v46  ;;  %v857_v63 = vpop.f32.mrb[4].mxu0 }
 0x34b   :  { %6615 = vmatprep.mubr.msk.f32.mxu0 %vm8211_vm0, %v8212_v1  ;;  %v858_v7 = vadd.f32 %v9278_v60, %v857_v63  ;;  %v6503_v8 = vpop.f32.mrb[5].mxu0  ;;  %v220_v63 = vld [vmem:[%s10119_s0 + $0x1c0] sm:$0xff] }
 0x34c   :  { %v222_v8 = vld [vmem:[%s10119_s0 + $0x1d0] sm:$0xff] }
 0x34d   :  { %1603 = vst [vmem:[#allocation2 + $0x10] sm:$0xff] %v858_v7  ;;  %v221_v7 = vld [vmem:[%s10119_s0 + $0x1c8] sm:$0xff] }
 0x34e   :  { %6616 = vmatmul.mubr.msk.f32.gmra.mrb[80].mxu0 %vm327_vm1, %v204_v47 }
 0x34f   :  { %6618 = vmatprep.mubr.msk.f32.mxu0 %vm8211_vm0, %v8212_v1 }
 0x352   :  { %6619 = vmatmul.mubr.msk.f32.gmra.mrb[82].mxu0 %vm327_vm1, %v205_v48 }
 0x353   :  { %6621 = vmatprep.mubr.msk.f32.mxu0 %vm8211_vm0, %v8212_v1  ;;  %v862_v9 = vpop.f32.mrb[6].mxu0 }
 0x354   :  { %v863_v11 = vadd.f32 %v9278_v60, %v862_v9  ;;  %v6506_v12 = vpop.f32.mrb[7].mxu0  ;;  %v223_v9 = vld [vmem:[%s10119_s0 + $0x1d8] sm:$0xff] }
 0x355   :  { %v226_v12 = vld [vmem:[%s10119_s0 + $0x1f0] sm:$0xff] }
 0x356   :  { %6622 = vmatmul.mubr.msk.f32.gmra.mrb[84].mxu0 %vm327_vm1, %v206_v49  ;;  %1604 = vst [vmem:[#allocation2 + $0x18] sm:$0xff] %v863_v11  ;;  %v218_v49 = vld [vmem:[%s10119_s0 + $0x1b0] sm:$0xff]  ;;  %v225_v11 = vld [vmem:[%s10119_s0 + $0x1e8] sm:$0xff] }
 0x357   :  { %6624 = vmatprep.mubr.msk.f32.mxu0 %vm8211_vm0, %v8212_v1 }
 0x35a   :  { %6625 = vmatmul.mubr.msk.f32.gmra.mrb[86].mxu0 %vm327_vm1, %v207_v50 }
 0x35b   :  { %6627 = vmatprep.mubr.msk.f32.mxu0 %vm8211_vm0, %v8212_v1 }
 0x35e   :  { %6628 = vmatmul.mubr.msk.f32.gmra.mrb[88].mxu0 %vm327_vm1, %v208_v51 }
 0x35f   :  { %6630 = vmatprep.mubr.msk.f32.mxu0 %vm8211_vm0, %v8212_v1 }
 0x362   :  { %6631 = vmatmul.mubr.msk.f32.gmra.mrb[90].mxu0 %vm327_vm1, %v209_v52 }
 0x363   :  { %6633 = vmatprep.mubr.msk.f32.mxu0 %vm8211_vm0, %v8212_v1 }
 0x366   :  { %6634 = vmatmul.mubr.msk.f32.gmra.mrb[92].mxu0 %vm327_vm1, %v210_v54 }
 0x367   :  { %6636 = vmatprep.mubr.msk.f32.mxu0 %vm8211_vm0, %v8212_v1 }
 0x36a   :  { %6637 = vmatmul.mubr.msk.f32.gmra.mrb[94].mxu0 %vm327_vm1, %v211_v56 }
 0x36b   :  { %6639 = vmatprep.mubr.msk.f32.mxu0 %vm8211_vm0, %v8212_v1 }
 0x36e   :  { %6640 = vmatmul.mubr.msk.f32.gmra.mrb[96].mxu0 %vm327_vm1, %v212_v18 }
 0x36f   :  { %6642 = vmatprep.mubr.msk.f32.mxu0 %vm8211_vm0, %v8212_v1 }
 0x391   :  { %v867_v13 = vpop.f32.mrb[8].mxu0 }
 0x392   :  { %v868_v14 = vadd.f32 %v9278_v60, %v867_v13  ;;  %v6509_v15 = vpop.f32.mrb[9].mxu0  ;;  %v227_v13 = vld [vmem:[%s10119_s0 + $0x1f8] sm:$0xff] }
 0x393   :  { %v229_v15 = vld [vmem:[%s10119_s0 + $0x208] sm:$0xff] }
 0x394   :  { %1605 = vst [vmem:[#allocation2 + $0x20] sm:$0xff] %v868_v14  ;;  %v228_v14 = vld [vmem:[%s10119_s0 + $0x200] sm:$0xff] }
 0x395   :  { %v872_v19 = vpop.f32.mrb[10].mxu0 }
 0x396   :  { %v873_v23 = vadd.f32 %v9278_v60, %v872_v19  ;;  %v6512_v24 = vpop.f32.mrb[11].mxu0  ;;  %v231_v19 = vld [vmem:[%s10119_s0 + $0x218] sm:$0xff] }
 0x398   :  { %1606 = vst [vmem:[#allocation2 + $0x28] sm:$0xff] %v873_v23 }
 0x399   :  { %v877_v28 = vpop.f32.mrb[12].mxu0 }
 0x39a   :  { %v878_v31 = vadd.f32 %v9278_v60, %v877_v28  ;;  %v6515_v32 = vpop.f32.mrb[13].mxu0 }
 0x39c   :  { %1607 = vst [vmem:[#allocation2 + $0x30] sm:$0xff] %v878_v31  ;;  %v234_v31 = vld [vmem:[%s10119_s0 + $0x230] sm:$0xff] }
 0x39d   :  { %v882_v33 = vpop.f32.mrb[14].mxu0 }
 0x39e   :  { %v883_v36 = vadd.f32 %v9278_v60, %v882_v33  ;;  %v6518_v37 = vpop.f32.mrb[15].mxu0 }
 0x3a0   :  { %1608 = vst [vmem:[#allocation2 + $0x38] sm:$0xff] %v883_v36  ;;  %v235_v36 = vld [vmem:[%s10119_s0 + $0x238] sm:$0xff] }
 0x3a1   :  { %v887_v38 = vpop.f32.mrb[16].mxu0 }
 0x3a2   :  { %v888_v39 = vadd.f32 %v9278_v60, %v887_v38  ;;  %v6521_v40 = vpop.f32.mrb[17].mxu0 }
 0x3a3   :  { %v236_v40 = vld [vmem:[%s10119_s0 + $0x240] sm:$0xff] }
 0x3a4   :  { %1609 = vst [vmem:[#allocation2 + $0x40] sm:$0xff] %v888_v39 }
 0x3a5   :  { %v892_v41 = vpop.f32.mrb[18].mxu0 }
 0x3a6   :  { %v893_v43 = vadd.f32 %v9278_v60, %v892_v41  ;;  %v6524_v44 = vpop.f32.mrb[19].mxu0 }
 0x3a7   :  { %v237_v44 = vld [vmem:[%s10119_s0 + $0x248] sm:$0xff] }
 0x3a8   :  { %1610 = vst [vmem:[#allocation2 + $0x48] sm:$0xff] %v893_v43 }
 0x3a9   :  { %v897_v45 = vpop.f32.mrb[20].mxu0 }
 0x3aa   :  { %v1874_v55 = vpop.permute.xlu0 %1873  ;;  %v898_v46 = vadd.f32 %v9278_v60, %v897_v45  ;;  %v6527_v47 = vpop.f32.mrb[21].mxu0 }
 0x3ab   :  { %v1876_v57 = vadd.f32 %v1874_v55, %v8941_v58  ;;  %v213_v58 = vld [vmem:[%s10119_s0 + $0x188] sm:$0xff] }
 0x3ac   :  { %6643 = vmatmul.mubr.msk.f32.gmra.mrb[98].mxu0 %vm327_vm1, %v213_v58  ;;  %1611 = vst [vmem:[#allocation2 + $0x50] sm:$0xff] %v898_v46 }
 0x3ad   :  { %7793 = vtanh.f32 %v1876_v57  ;;  %6645 = vmatprep.mubr.msk.f32.mxu0 %vm8211_vm0, %v8212_v1  ;;  %v902_v48 = vpop.f32.mrb[22].mxu0  ;;  %v219_v57 = vld [vmem:[%s10119_s0 + $0x1b8] sm:$0xff] }
 0x3ae   :  { %v903_v50 = vadd.f32 %v9278_v60, %v902_v48  ;;  %v6530_v51 = vpop.f32.mrb[23].mxu0  ;;  %v238_v48 = vld [vmem:[%s10119_s0 + $0x250] sm:$0xff] }
 0x3b0   :  { %6646 = vmatmul.mubr.msk.f32.gmra.mrb[100].mxu0 %vm327_vm1, %v214_v10  ;;  %1612 = vst [vmem:[#allocation2 + $0x58] sm:$0xff] %v903_v50  ;;  %v224_v10 = vld [vmem:[%s10119_s0 + $0x1e0] sm:$0xff] }
 0x3b1   :  { %6648 = vmatprep.mubr.msk.f32.mxu0 %vm8211_vm0, %v8212_v1  ;;  %v907_v52 = vpop.f32.mrb[24].mxu0 }
 0x3b2   :  { %v908_v54 = vadd.f32 %v9278_v60, %v907_v52  ;;  %v6533_v55 = vpop.f32.mrb[25].mxu0  ;;  %v239_v52 = vld [vmem:[%s10119_s0 + $0x258] sm:$0xff] }
 0x3b4   :  { %6649 = vmatmul.mubr.msk.f32.gmra.mrb[102].mxu0 %vm327_vm1, %v215_v21  ;;  %1613 = vst [vmem:[#allocation2 + $0x60] sm:$0xff] %v908_v54 }
 0x3b5   :  { %6651 = vmatprep.mubr.msk.f32.mxu0 %vm8211_vm0, %v8212_v1  ;;  %v912_v56 = vpop.f32.mrb[26].mxu0 }
 0x3b6   :  { %v913_v18 = vadd.f32 %v9278_v60, %v912_v56  ;;  %v6536_v59 = vpop.f32.mrb[27].mxu0 }
 0x3b7   :  { %v7794_v16 = vpop.eup %7793 }
 0x3b8   :  { %1880 = vrot.lane.b32.xlu1 %v7794_v16, %s8214_s25  ;;  %6652 = vmatmul.mubr.msk.f32.gmra.mrb[104].mxu0 %vm327_vm1, %v216_v35  ;;  %1614 = vst [vmem:[#allocation2 + $0x68] sm:$0xff] %v913_v18  ;;  %v230_v16 = vld [vmem:[%s10119_s0 + $0x210] sm:$0xff] }
 0x3b9   :  { %6654 = vmatprep.mubr.msk.f32.mxu0 %vm8211_vm0, %v8212_v1  ;;  %v917_v58 = vpop.f32.mrb[28].mxu0 }
 0x3ba   :  { %v918_v61 = vadd.f32 %v9278_v60, %v917_v58  ;;  %v6539_v62 = vpop.f32.mrb[29].mxu0 }
 0x3bc   :  { %6655 = vmatmul.mubr.msk.f32.gmra.mrb[106].mxu0 %vm327_vm1, %v217_v42  ;;  %1615 = vst [vmem:[#allocation2 + $0x70] sm:$0xff] %v918_v61 }
 0x3bd   :  { %6657 = vmatprep.mubr.msk.f32.mxu0 %vm8211_vm0, %v8212_v1  ;;  %v922_v21 = vpop.f32.mrb[30].mxu0 }
 0x3be   :  { %v923_v23 = vadd.f32 %v9278_v60, %v922_v21  ;;  %v6542_v24 = vpop.f32.mrb[31].mxu0 }
 0x3c0   :  { %6658 = vmatmul.mubr.msk.f32.gmra.mrb[108].mxu0 %vm327_vm1, %v218_v49  ;;  %1616 = vst [vmem:[#allocation2 + $0x78] sm:$0xff] %v923_v23 }
 0x3c1   :  { %6660 = vmatprep.mubr.msk.f32.mxu0 %vm8211_vm0, %v8212_v1  ;;  %v927_v27 = vpop.f32.mrb[32].mxu0 }
 0x3c2   :  { %v928_v28 = vadd.f32 %v9278_v60, %v927_v27  ;;  %v6545_v30 = vpop.f32.mrb[33].mxu0 }
 0x3c4   :  { %6661 = vmatmul.mubr.msk.f32.gmra.mrb[110].mxu0 %vm327_vm1, %v219_v57  ;;  %1617 = vst [vmem:[#allocation2 + $0x80] sm:$0xff] %v928_v28  ;;  %v240_v57 = vld [vmem:[%s10119_s0 + $0x260] sm:$0xff]  ;;  %s9546_s0 = smov 0  }
 0x3c5   :  { %6663 = vmatprep.mubr.msk.f32.mxu0 %vm8211_vm0, %v8212_v1  ;;  %v932_v32 = vpop.f32.mrb[34].mxu0 }
 0x3c6   :  { %v933_v33 = vadd.f32 %v9278_v60, %v932_v32  ;;  %v6548_v35 = vpop.f32.mrb[35].mxu0 }
 0x3c8   :  { %6664 = vmatmul.mubr.msk.f32.gmra.mrb[112].mxu0 %vm327_vm1, %v220_v63  ;;  %1618 = vst [vmem:[#allocation2 + $0x88] sm:$0xff] %v933_v33 }
 0x3c9   :  { %6666 = vmatprep.mubr.msk.f32.mxu0 %vm8211_vm0, %v8212_v1  ;;  %v937_v37 = vpop.f32.mrb[36].mxu0 }
 0x3ca   :  { %v938_v38 = vadd.f32 %v9278_v60, %v937_v37  ;;  %v6551_v39 = vpop.f32.mrb[37].mxu0 }
 0x3cc   :  { %6667 = vmatmul.mubr.msk.f32.gmra.mrb[114].mxu0 %vm327_vm1, %v221_v7  ;;  %1619 = vst [vmem:[#allocation2 + $0x90] sm:$0xff] %v938_v38 }
 0x3cd   :  { %6669 = vmatprep.mubr.msk.f32.mxu0 %vm8211_vm0, %v8212_v1  ;;  %v942_v41 = vpop.f32.mrb[38].mxu0 }
 0x3ce   :  { %v943_v42 = vadd.f32 %v9278_v60, %v942_v41  ;;  %v6554_v43 = vpop.f32.mrb[39].mxu0 }
 0x3d0   :  { %6670 = vmatmul.mubr.msk.f32.gmra.mrb[116].mxu0 %vm327_vm1, %v222_v8  ;;  %1620 = vst [vmem:[#allocation2 + $0x98] sm:$0xff] %v943_v42 }
 0x3d1   :  { %6672 = vmatprep.mubr.msk.f32.mxu0 %vm8211_vm0, %v8212_v1  ;;  %v947_v45 = vpop.f32.mrb[40].mxu0 }
 0x3d2   :  { %v948_v46 = vadd.f32 %v9278_v60, %v947_v45  ;;  %v6557_v47 = vpop.f32.mrb[41].mxu0 }
 0x3d4   :  { %6673 = vmatmul.mubr.msk.f32.gmra.mrb[118].mxu0 %vm327_vm1, %v223_v9  ;;  %1621 = vst [vmem:[#allocation2 + $0xa0] sm:$0xff] %v948_v46 }
 0x3d5   :  { %6675 = vmatprep.mubr.msk.f32.mxu0 %vm8211_vm0, %v8212_v1  ;;  %v952_v49 = vpop.f32.mrb[42].mxu0 }
 0x3d6   :  { %v953_v50 = vadd.f32 %v9278_v60, %v952_v49  ;;  %v6560_v51 = vpop.f32.mrb[43].mxu0 }
 0x3d8   :  { %6676 = vmatmul.mubr.msk.f32.gmra.mrb[120].mxu0 %vm327_vm1, %v224_v10  ;;  %1622 = vst [vmem:[#allocation2 + $0xa8] sm:$0xff] %v953_v50  ;;  %v1878_v10 = vsub.f32 1.0, %v9087_v22 }
 0x3d9   :  { %6678 = vmatprep.mubr.msk.f32.mxu0 %vm8211_vm0, %v8212_v1  ;;  %v957_v54 = vpop.f32.mrb[44].mxu0 }
 0x3da   :  { %v958_v55 = vadd.f32 %v9278_v60, %v957_v54  ;;  %v6563_v56 = vpop.f32.mrb[45].mxu0 }
 0x3dc   :  { %6679 = vmatmul.mubr.msk.f32.gmra.mrb[122].mxu0 %vm327_vm1, %v225_v11  ;;  %1623 = vst [vmem:[#allocation2 + $0xb0] sm:$0xff] %v958_v55 }
 0x3dd   :  { %6681 = vmatprep.mubr.msk.f32.mxu0 %vm8211_vm0, %v8212_v1  ;;  %v962_v18 = vpop.f32.mrb[46].mxu0 }
 0x3de   :  { %v963_v59 = vadd.f32 %v9278_v60, %v962_v18  ;;  %v6566_v58 = vpop.f32.mrb[47].mxu0 }
 0x3e0   :  { %6682 = vmatmul.mubr.msk.f32.gmra.mrb[124].mxu0 %vm327_vm1, %v226_v12  ;;  %1624 = vst [vmem:[#allocation2 + $0xb8] sm:$0xff] %v963_v59 }
 0x3e1   :  { %6684 = vmatprep.mubr.msk.f32.mxu0 %vm8211_vm0, %v8212_v1  ;;  %v967_v61 = vpop.f32.mrb[48].mxu0 }
 0x3e2   :  { %v968_v62 = vadd.f32 %v9278_v60, %v967_v61  ;;  %v6569_v63 = vpop.f32.mrb[49].mxu0 }
 0x3e4   :  { %6685 = vmatmul.mubr.msk.f32.gmra.mrb[126].mxu0 %vm327_vm1, %v227_v13  ;;  %1625 = vst [vmem:[#allocation2 + $0xc0] sm:$0xff] %v968_v62  ;;  %v1884_v13 = vmul.f32 0.0, %v9087_v22 }
 0x3e5   :  { %6687 = vmatprep.mubr.msk.f32.mxu0 %vm8211_vm0, %v8212_v1  ;;  %v972_v7 = vpop.f32.mrb[50].mxu0 }
 0x3e6   :  { %v973_v8 = vadd.f32 %v9278_v60, %v972_v7  ;;  %v6572_v9 = vpop.f32.mrb[51].mxu0 }
 0x3e8   :  { %6688 = vmatmul.mubr.msk.f32.gmra.mrb[128].mxu0 %vm327_vm1, %v228_v14  ;;  %1626 = vst [vmem:[#allocation2 + $0xc8] sm:$0xff] %v973_v8 }
 0x3e9   :  { %6690 = vmatprep.mubr.msk.f32.mxu0 %vm8211_vm0, %v8212_v1  ;;  %v977_v12 = vpop.f32.mrb[52].mxu0 }
 0x3ec   :  { %6691 = vmatmul.mubr.msk.f32.gmra.mrb[130].mxu0 %vm327_vm1, %v229_v15  ;;  %v978_v15 = vadd.f32 %v9278_v60, %v977_v12 }
 0x3ed   :  { %6693 = vmatprep.mubr.msk.f32.mxu0 %vm8211_vm0, %v8212_v1 }
 0x3ee   :  { %1627 = vst [vmem:[#allocation2 + $0xd0] sm:$0xff] %v978_v15 }
 0x3f0   :  { %6694 = vmatmul.mubr.msk.f32.gmra.mrb[132].mxu0 %vm327_vm1, %v230_v16  ;;  %v6575_v16 = vpop.f32.mrb[53].mxu0 }
 0x3f1   :  { %6696 = vmatprep.mubr.msk.f32.mxu0 %vm8211_vm0, %v8212_v1 }
 0x3f4   :  { %6697 = vmatmul.mubr.msk.f32.gmra.mrb[134].mxu0 %vm327_vm1, %v231_v19 }
 0x3f5   :  { %6699 = vmatprep.mubr.msk.f32.mxu0 %vm8211_vm0, %v8212_v1 }
 0x3f8   :  { %6700 = vmatmul.mubr.msk.f32.gmra.mrb[136].mxu0 %vm327_vm1, %v232_v20  ;;  %v982_v20 = vpop.f32.mrb[54].mxu0 }
 0x3f9   :  { %6702 = vmatprep.mubr.msk.f32.mxu0 %vm8211_vm0, %v8212_v1  ;;  %v983_v21 = vadd.f32 %v9278_v60, %v982_v20  ;;  %v6578_v23 = vpop.f32.mrb[55].mxu0 }
 0x3fa   :  { %v987_v24 = vpop.f32.mrb[56].mxu0 }
 0x3fb   :  { %1628 = vst [vmem:[#allocation2 + $0xd8] sm:$0xff] %v983_v21  ;;  %v6581_v27 = vpop.f32.mrb[57].mxu0 }
 0x3fc   :  { %6703 = vmatmul.mubr.msk.f32.gmra.mrb[138].mxu0 %vm327_vm1, %v233_v25  ;;  %v988_v25 = vadd.f32 %v9278_v60, %v987_v24  ;;  %v992_v22 = vpop.f32.mrb[58].mxu0 }
 0x3fd   :  { %6705 = vmatprep.mubr.msk.f32.mxu0 %vm8211_vm0, %v8212_v1  ;;  %v993_v28 = vadd.f32 %v9278_v60, %v992_v22  ;;  %v6584_v30 = vpop.f32.mrb[59].mxu0 }
 0x3fe   :  { %1629 = vst [vmem:[#allocation2 + $0xe0] sm:$0xff] %v988_v25 }
 0x3ff   :  { %1630 = vst [vmem:[#allocation2 + $0xe8] sm:$0xff] %v993_v28 }
 0x400   :  { %6706 = vmatmul.mubr.msk.f32.gmra.mrb[140].mxu0 %vm327_vm1, %v234_v31  ;;  %v997_v31 = vpop.f32.mrb[60].mxu0 }
 0x401   :  { %6708 = vmatprep.mubr.msk.f32.mxu0 %vm8211_vm0, %v8212_v1  ;;  %v998_v32 = vadd.f32 %v9278_v60, %v997_v31  ;;  %v6587_v33 = vpop.f32.mrb[61].mxu0 }
 0x402   :  { %v1002_v35 = vpop.f32.mrb[62].mxu0 }
 0x403   :  { %1631 = vst [vmem:[#allocation2 + $0xf0] sm:$0xff] %v998_v32  ;;  %v6590_v37 = vpop.f32.mrb[63].mxu0 }
 0x404   :  { %6709 = vmatmul.mubr.msk.f32.gmra.mrb[142].mxu0 %vm327_vm1, %v235_v36  ;;  %v1003_v36 = vadd.f32 %v9278_v60, %v1002_v35  ;;  %v1007_v38 = vpop.f32.mrb[64].mxu0 }
 0x405   :  { %6711 = vmatprep.mubr.msk.f32.mxu0 %vm8211_vm0, %v8212_v1  ;;  %v1008_v39 = vadd.f32 %v9278_v60, %v1007_v38 }
 0x406   :  { %1632 = vst [vmem:[#allocation2 + $0xf8] sm:$0xff] %v1003_v36 }
 0x407   :  { %1633 = vst [vmem:[#allocation2 + $0x100] sm:$0xff] %v1008_v39 }
 0x408   :  { %6712 = vmatmul.mubr.msk.f32.gmra.mrb[144].mxu0 %vm327_vm1, %v236_v40  ;;  %v6593_v40 = vpop.f32.mrb[65].mxu0 }
 0x409   :  { %6714 = vmatprep.mubr.msk.f32.mxu0 %vm8211_vm0, %v8212_v1  ;;  %v1012_v41 = vpop.f32.mrb[66].mxu0 }
 0x40a   :  { %v1013_v42 = vadd.f32 %v9278_v60, %v1012_v41  ;;  %v6596_v43 = vpop.f32.mrb[67].mxu0 }
 0x40c   :  { %6715 = vmatmul.mubr.msk.f32.gmra.mrb[146].mxu0 %vm327_vm1, %v237_v44  ;;  %1634 = vst [vmem:[#allocation2 + $0x108] sm:$0xff] %v1013_v42  ;;  %v1017_v44 = vpop.f32.mrb[68].mxu0 }
 0x40d   :  { %6717 = vmatprep.mubr.msk.f32.mxu0 %vm8211_vm0, %v8212_v1  ;;  %v1018_v45 = vadd.f32 %v9278_v60, %v1017_v44  ;;  %v6599_v46 = vpop.f32.mrb[69].mxu0 }
 0x40e   :  { %v1022_v47 = vpop.f32.mrb[70].mxu0 }
 0x40f   :  { %1635 = vst [vmem:[#allocation2 + $0x110] sm:$0xff] %v1018_v45  ;;  %v6602_v49 = vpop.f32.mrb[71].mxu0 }
 0x410   :  { %6718 = vmatmul.mubr.msk.f32.gmra.mrb[148].mxu0 %vm327_vm1, %v238_v48  ;;  %v1023_v48 = vadd.f32 %v9278_v60, %v1022_v47 }
 0x411   :  { %6720 = vmatprep.mubr.msk.f32.mxu0 %vm8211_vm0, %v8212_v1  ;;  %v1027_v50 = vpop.f32.mrb[72].mxu0 }
 0x412   :  { %1636 = vst [vmem:[#allocation2 + $0x118] sm:$0xff] %v1023_v48  ;;  %v1028_v51 = vadd.f32 %v9278_v60, %v1027_v50 }
 0x414   :  { %6721 = vmatmul.mubr.msk.f32.gmra.mrb[150].mxu0 %vm327_vm1, %v239_v52  ;;  %v6605_v52 = vpop.f32.mrb[73].mxu0  ;;  %1637 = vst [vmem:[#allocation2 + $0x120] sm:$0xff] %v1028_v51 }
 0x415   :  { %6723 = vmatprep.mubr.msk.f32.mxu0 %vm8211_vm0, %v8212_v1  ;;  %v1032_v54 = vpop.f32.mrb[74].mxu0 }
 0x416   :  { %v1033_v55 = vadd.f32 %v9278_v60, %v1032_v54  ;;  %v6608_v56 = vpop.f32.mrb[75].mxu0 }
 0x418   :  { %6724 = vmatmul.mubr.msk.f32.gmra.mrb[152].mxu0 %vm327_vm1, %v240_v57  ;;  %1638 = vst [vmem:[#allocation2 + $0x128] sm:$0xff] %v1033_v55 }
 0x419   :  { %v1037_v57 = vpop.f32.mrb[76].mxu0 }
 0x41a   :  { %v1038_v18 = vadd.f32 %v9278_v60, %v1037_v57  ;;  %v6611_v59 = vpop.f32.mrb[77].mxu0 }
 0x41c   :  { %1639 = vst [vmem:[#allocation2 + $0x130] sm:$0xff] %v1038_v18 }
 0x41d   :  { %v1042_v58 = vpop.f32.mrb[78].mxu0 }
 0x41e   :  { %v1043_v61 = vadd.f32 %v9278_v60, %v1042_v58  ;;  %v6614_v62 = vpop.f32.mrb[79].mxu0 }
 0x420   :  { %1640 = vst [vmem:[#allocation2 + $0x138] sm:$0xff] %v1043_v61 }
 0x421   :  { %v1047_v63 = vpop.f32.mrb[80].mxu0 }
 0x422   :  { %v1048_v7 = vadd.f32 %v9278_v60, %v1047_v63  ;;  %v6617_v8 = vpop.f32.mrb[81].mxu0 }
 0x424   :  { %1641 = vst [vmem:[#allocation2 + $0x140] sm:$0xff] %v1048_v7 }
 0x425   :  { %v1052_v9 = vpop.f32.mrb[82].mxu0 }
 0x42a   :  { %v1881_v11 = vpop.permute.xlu1 %1880 }
 0x42b   :  { %v1883_v14 = vmul.f32 %v1881_v11, %v1878_v10  ;;  %v1053_v10 = vadd.f32 %v9278_v60, %v1052_v9  ;;  %v6620_v11 = vpop.f32.mrb[83].mxu0 }
 0x42c   :  { %v1057_v12 = vpop.f32.mrb[84].mxu0 }
 0x42d   :  { %v9479_v19 = vadd.f32 %v1884_v13, %v1883_v14   ;;  %1642 = vst [vmem:[#allocation2 + $0x148] sm:$0xff] %v1053_v10  ;;  %v1058_v13 = vadd.f32 %v9278_v60, %v1057_v12  ;;  %v6623_v14 = vpop.f32.mrb[85].mxu0 }
 0x42e   :  { %v1062_v15 = vpop.f32.mrb[86].mxu0 }
 0x42f   :  { %1887 = vrot.lane.b32.xlu1 %v9479_v19, %s8214_s25  ;;  %1643 = vst [vmem:[#allocation2 + $0x150] sm:$0xff] %v1058_v13  ;;  %v1063_v16 = vadd.f32 %v9278_v60, %v1062_v15  ;;  %v6626_v20 = vpop.f32.mrb[87].mxu0 }
 0x431   :  { %1644 = vst [vmem:[#allocation2 + $0x158] sm:$0xff] %v1063_v16  ;;  %v1067_v21 = vpop.f32.mrb[88].mxu0 }
 0x432   :  { %v1068_v23 = vadd.f32 %v9278_v60, %v1067_v21  ;;  %v6629_v24 = vpop.f32.mrb[89].mxu0 }
 0x434   :  { %1645 = vst [vmem:[#allocation2 + $0x160] sm:$0xff] %v1068_v23 }
 0x435   :  { %v1072_v25 = vpop.f32.mrb[90].mxu0 }
 0x436   :  { %v1073_v27 = vadd.f32 %v9278_v60, %v1072_v25  ;;  %v6632_v22 = vpop.f32.mrb[91].mxu0 }
 0x438   :  { %1646 = vst [vmem:[#allocation2 + $0x168] sm:$0xff] %v1073_v27 }
 0x439   :  { %v1077_v28 = vpop.f32.mrb[92].mxu0 }
 0x43a   :  { %v1078_v30 = vadd.f32 %v9278_v60, %v1077_v28  ;;  %v6635_v31 = vpop.f32.mrb[93].mxu0 }
 0x43c   :  { %1647 = vst [vmem:[#allocation2 + $0x170] sm:$0xff] %v1078_v30 }
 0x43d   :  { %v1082_v32 = vpop.f32.mrb[94].mxu0 }
 0x43e   :  { %v1083_v33 = vadd.f32 %v9278_v60, %v1082_v32  ;;  %v6638_v35 = vpop.f32.mrb[95].mxu0 }
 0x440   :  { %1648 = vst [vmem:[#allocation2 + $0x178] sm:$0xff] %v1083_v33 }
 0x441   :  { %v1087_v36 = vpop.f32.mrb[96].mxu0 }
 0x442   :  { %v1088_v37 = vadd.f32 %v9278_v60, %v1087_v36  ;;  %v6641_v38 = vpop.f32.mrb[97].mxu0 }
 0x444   :  { %1649 = vst [vmem:[#allocation2 + $0x180] sm:$0xff] %v1088_v37 }
 0x47f   :  { %v1092_v39 = vpop.f32.mrb[98].mxu0 }
 0x480   :  { %v1093_v40 = vadd.f32 %v9278_v60, %v1092_v39  ;;  %v6644_v41 = vpop.f32.mrb[99].mxu0 }
 0x482   :  { %1650 = vst [vmem:[#allocation2 + $0x188] sm:$0xff] %v1093_v40 }
 0x483   :  { %v1097_v42 = vpop.f32.mrb[100].mxu0 }
 0x484   :  { %v1098_v43 = vadd.f32 %v9278_v60, %v1097_v42  ;;  %v6647_v44 = vpop.f32.mrb[101].mxu0 }
 0x486   :  { %1651 = vst [vmem:[#allocation2 + $0x190] sm:$0xff] %v1098_v43 }
 0x487   :  { %v1102_v45 = vpop.f32.mrb[102].mxu0 }
 0x488   :  { %v1103_v46 = vadd.f32 %v9278_v60, %v1102_v45  ;;  %v6650_v47 = vpop.f32.mrb[103].mxu0 }
 0x48a   :  { %1652 = vst [vmem:[#allocation2 + $0x198] sm:$0xff] %v1103_v46 }
 0x48b   :  { %v1107_v48 = vpop.f32.mrb[104].mxu0 }
 0x48c   :  { %v1108_v49 = vadd.f32 %v9278_v60, %v1107_v48  ;;  %v6653_v50 = vpop.f32.mrb[105].mxu0 }
 0x48e   :  { %1653 = vst [vmem:[#allocation2 + $0x1a0] sm:$0xff] %v1108_v49 }
 0x48f   :  { %v1112_v51 = vpop.f32.mrb[106].mxu0 }
 0x490   :  { %v1113_v52 = vadd.f32 %v9278_v60, %v1112_v51  ;;  %v6656_v54 = vpop.f32.mrb[107].mxu0 }
 0x492   :  { %1654 = vst [vmem:[#allocation2 + $0x1a8] sm:$0xff] %v1113_v52 }
 0x493   :  { %v1117_v55 = vpop.f32.mrb[108].mxu0 }
 0x494   :  { %v1118_v56 = vadd.f32 %v9278_v60, %v1117_v55  ;;  %v6659_v57 = vpop.f32.mrb[109].mxu0 }
 0x496   :  { %1655 = vst [vmem:[#allocation2 + $0x1b0] sm:$0xff] %v1118_v56 }
 0x497   :  { %v1122_v18 = vpop.f32.mrb[110].mxu0 }
 0x498   :  { %v1123_v59 = vadd.f32 %v9278_v60, %v1122_v18  ;;  %v6662_v58 = vpop.f32.mrb[111].mxu0 }
 0x49a   :  { %1656 = vst [vmem:[#allocation2 + $0x1b8] sm:$0xff] %v1123_v59 }
 0x49b   :  { %v1127_v62 = vpop.f32.mrb[112].mxu0 }
 0x49c   :  { %v1128_v63 = vadd.f32 %v9278_v60, %v1127_v62  ;;  %v6665_v7 = vpop.f32.mrb[113].mxu0 }
 0x49e   :  { %1657 = vst [vmem:[#allocation2 + $0x1c0] sm:$0xff] %v1128_v63 }
 0x49f   :  { %v1132_v8 = vpop.f32.mrb[114].mxu0 }
 0x4a0   :  { %v1133_v9 = vadd.f32 %v9278_v60, %v1132_v8  ;;  %v6668_v10 = vpop.f32.mrb[115].mxu0 }
 0x4a1   :  { %v1888_v61 = vpop.permute.xlu1 %1887 }
 0x4a2   :  { %6968 = vmatmul.mubr.msk.f32.vlgmr.msra.gmra.mrb[150].mxu1 %vm1786_vm2, %v1888_v61  ;;  %1658 = vst [vmem:[#allocation2 + $0x1c8] sm:$0xff] %v1133_v9 }
 0x4a3   :  { %v1137_v11 = vpop.f32.mrb[116].mxu0 }
 0x4a4   :  { %v1138_v12 = vadd.f32 %v9278_v60, %v1137_v11  ;;  %v6671_v13 = vpop.f32.mrb[117].mxu0 }
 0x4a6   :  { %1659 = vst [vmem:[#allocation2 + $0x1d0] sm:$0xff] %v1138_v12 }
 0x4a7   :  { %v1142_v14 = vpop.f32.mrb[118].mxu0 }
 0x4a8   :  { %v1143_v15 = vadd.f32 %v9278_v60, %v1142_v14  ;;  %v6674_v16 = vpop.f32.mrb[119].mxu0 }
 0x4aa   :  { %1660 = vst [vmem:[#allocation2 + $0x1d8] sm:$0xff] %v1143_v15 }
 0x4ab   :  { %v1147_v20 = vpop.f32.mrb[120].mxu0 }
 0x4ac   :  { %v1148_v21 = vadd.f32 %v9278_v60, %v1147_v20  ;;  %v6677_v23 = vpop.f32.mrb[121].mxu0 }
 0x4ae   :  { %1661 = vst [vmem:[#allocation2 + $0x1e0] sm:$0xff] %v1148_v21  ;;  %v9534_v21 = vld [vmem:[#allocation11] ss:$0 sm:$0xff] }
 0x4af   :  { %v1152_v24 = vpop.f32.mrb[122].mxu0 }
 0x4b0   :  { %v1153_v25 = vadd.f32 %v9278_v60, %v1152_v24  ;;  %v6680_v27 = vpop.f32.mrb[123].mxu0 }
 0x4b1   :  { %v9537_v27 = vmov 0.0  }
 0x4b2   :  { %1662 = vst [vmem:[#allocation2 + $0x1e8] sm:$0xff] %v1153_v25 }
 0x4b3   :  { %v1157_v22 = vpop.f32.mrb[124].mxu0 }
 0x4b4   :  { %v1158_v28 = vadd.f32 %v9278_v60, %v1157_v22  ;;  %v6683_v30 = vpop.f32.mrb[125].mxu0  ;;  %v9541_v22 = vmov 0.0  }
 0x4b6   :  { %1663 = vst [vmem:[#allocation2 + $0x1f0] sm:$0xff] %v1158_v28 }
 0x4b7   :  { %v1162_v31 = vpop.f32.mrb[126].mxu0 }
 0x4b8   :  { %v1163_v32 = vadd.f32 %v9278_v60, %v1162_v31  ;;  %v6686_v33 = vpop.f32.mrb[127].mxu0 }
 0x4ba   :  { %1664 = vst [vmem:[#allocation2 + $0x1f8] sm:$0xff] %v1163_v32 }
 0x4bb   :  { %v1167_v35 = vpop.f32.mrb[128].mxu0 }
 0x4bc   :  { %v1168_v36 = vadd.f32 %v9278_v60, %v1167_v35  ;;  %v6689_v37 = vpop.f32.mrb[129].mxu0 }
 0x4be   :  { %1665 = vst [vmem:[#allocation2 + $0x200] sm:$0xff] %v1168_v36 }
 0x4bf   :  { %v1172_v38 = vpop.f32.mrb[130].mxu0 }
 0x4c0   :  { %v1173_v39 = vadd.f32 %v9278_v60, %v1172_v38  ;;  %v6692_v40 = vpop.f32.mrb[131].mxu0 }
 0x4c2   :  { %1666 = vst [vmem:[#allocation2 + $0x208] sm:$0xff] %v1173_v39 }
 0x4c3   :  { %v1177_v41 = vpop.f32.mrb[132].mxu0 }
 0x4c4   :  { %v1178_v42 = vadd.f32 %v9278_v60, %v1177_v41  ;;  %v6695_v43 = vpop.f32.mrb[133].mxu0 }
 0x4c6   :  { %1667 = vst [vmem:[#allocation2 + $0x210] sm:$0xff] %v1178_v42 }
 0x4c7   :  { %v1182_v44 = vpop.f32.mrb[134].mxu0 }
 0x4c8   :  { %v1183_v45 = vadd.f32 %v9278_v60, %v1182_v44  ;;  %v6698_v46 = vpop.f32.mrb[135].mxu0 }
 0x4ca   :  { %1668 = vst [vmem:[#allocation2 + $0x218] sm:$0xff] %v1183_v45 }
 0x4cb   :  { %v1187_v47 = vpop.f32.mrb[136].mxu0 }
 0x4cc   :  { %v1188_v48 = vadd.f32 %v9278_v60, %v1187_v47  ;;  %v6701_v49 = vpop.f32.mrb[137].mxu0 }
 0x4ce   :  { %1669 = vst [vmem:[#allocation2 + $0x220] sm:$0xff] %v1188_v48 }
 0x4cf   :  { %v1192_v50 = vpop.f32.mrb[138].mxu0 }
 0x4d0   :  { %v1193_v51 = vadd.f32 %v9278_v60, %v1192_v50  ;;  %v6704_v52 = vpop.f32.mrb[139].mxu0 }
 0x4d2   :  { %1670 = vst [vmem:[#allocation2 + $0x228] sm:$0xff] %v1193_v51 }
 0x4d3   :  { %v1197_v54 = vpop.f32.mrb[140].mxu0 }
 0x4d4   :  { %v1198_v55 = vadd.f32 %v9278_v60, %v1197_v54  ;;  %v6707_v56 = vpop.f32.mrb[141].mxu0 }
 0x4d6   :  { %1671 = vst [vmem:[#allocation2 + $0x230] sm:$0xff] %v1198_v55 }
 0x4d7   :  { %v1202_v57 = vpop.f32.mrb[142].mxu0 }
 0x4d8   :  { %v1203_v18 = vadd.f32 %v9278_v60, %v1202_v57  ;;  %v6710_v59 = vpop.f32.mrb[143].mxu0 }
 0x4da   :  { %1672 = vst [vmem:[#allocation2 + $0x238] sm:$0xff] %v1203_v18 }
 0x4db   :  { %v1207_v58 = vpop.f32.mrb[144].mxu0 }
 0x4dc   :  { %v1208_v61 = vadd.f32 %v9278_v60, %v1207_v58  ;;  %v6713_v62 = vpop.f32.mrb[145].mxu0 }
 0x4de   :  { %1673 = vst [vmem:[#allocation2 + $0x240] sm:$0xff] %v1208_v61 }
 0x4df   :  { %v1212_v63 = vpop.f32.mrb[146].mxu0 }
 0x4e0   :  { %v1213_v7 = vadd.f32 %v9278_v60, %v1212_v63  ;;  %v6716_v8 = vpop.f32.mrb[147].mxu0 }
 0x4e2   :  { %1674 = vst [vmem:[#allocation2 + $0x248] sm:$0xff] %v1213_v7 }
 0x4e3   :  { %v1217_v9 = vpop.f32.mrb[148].mxu0 }
 0x4e4   :  { %v1218_v10 = vadd.f32 %v9278_v60, %v1217_v9  ;;  %v6719_v11 = vpop.f32.mrb[149].mxu0 }
 0x4e6   :  { %1675 = vst [vmem:[#allocation2 + $0x250] sm:$0xff] %v1218_v10 }
 0x4e7   :  { %v1222_v12 = vpop.f32.mrb[150].mxu0 }
 0x4e8   :  { %v1223_v13 = vadd.f32 %v9278_v60, %v1222_v12  ;;  %v6722_v14 = vpop.f32.mrb[151].mxu0 }
 0x4ea   :  { %1676 = vst [vmem:[#allocation2 + $0x258] sm:$0xff] %v1223_v13 }
 0x4eb   :  { %v1227_v15 = vpop.f32.mrb[152].mxu0 }
 0x4ec   :  { %v1228_v16 = vadd.f32 %v9278_v60, %v1227_v15  ;;  %v6725_v20 = vpop.f32.mrb[153].mxu0 }
 0x4ee   :  { %1677 = vst [vmem:[#allocation2 + $0x260] sm:$0xff] %v1228_v16 }
 0x575   :  { %v1957_v23 = vpop.f32.mrb[150].mxu1 }
 0x576   :  { %v1958_v24 = vadd.f32 %v9534_v21, %v1957_v23   ;;  %v6969_v25 = vpop.f32.mrb[151].mxu1 }
 0x577 LB: > { %v8215_v60 = vmov 0.0|0.0   ;;  %s8216_s28 = smov 96   ;;  %vm8217_vm3 = vmmov 0   ;;  %v8218_v28 = vmov 0.0   ;;  %v9583_v30 = vpack.c.bf16 %v8423_v3, %v8421_v2  ;;  %s8219_s6 = smov 64   ;;  %s8196_s0 = sphi %s9546_s0, %s1966_s0   ;;  %v8192_v19 = vphi %v9479_v19, %v5258_v19   ;;  %v8188_v22 = vphi %v9541_v22, %v10134_v22   ;;  %v8184_v24 = vphi %v1958_v24, %v10133_v24   ;;  %v8180_v27 = vphi %v9537_v27, %v10132_v27  }
 0x578   : > { %7450 = vmatprep.subr.bf16.mxu0 %v8215_v60  ;;  %7456 = vmatprep.subr.bf16.mxu1 %v8215_v60  ;;  %v9589_v32 = vpack.c.bf16 %v8427_v5, %v8425_v4  ;;  %s5979_s29 = smul.u32 80, %s8196_s0 }
 0x579   : > { %1977 = vrot.lane.b32.xlu0 %v8192_v19, %s8216_s28  ;;  %7452 = vmatpush3.bf16.msra.mxu0 %v8438_v17  ;;  %s5986_s1 = smul.u32 320, %s8196_s0  ;;  %s1966_s0 = sadd.s32 1, %s8196_s0  }
 0x57a   : > { %7453 = vmatprep.subr.bf16.mxu0 %v8215_v60  ;;  %6978 = vmatprep.mubr.msk.f32.mxu0 %vm8217_vm3, %v8218_v28  ;;  %s9608_s12 = scalar_lea.vmem [#allocation2], %s5979_s29  ;;  %p1963_p10 = scmp.ge.s32.totalorder %s1966_s0, 15  }
 0x57b   : > { %7458 = vmatpush3.bf16.msra.mxu1 %v9298_v29  ;;  %6989 = vmatprep.mubr.msk.f32.mxu1 %vm8217_vm3, %v8218_v28  ;;  %v5980_v41 = vld [vmem:[%s9608_s12 + $0x8] sm:$0xff]  ;;  %s9628_s9 = scalar_lea.vmem [#allocation16], %s5986_s1  ;;  %vm5702_vm4 = vcmask (%p1963_p10), 80896  }
 0x57c   : > { %7459 = vmatprep.subr.bf16.mxu1 %v8215_v60  ;;  %v2256_v16 = vld [vmem:[%s9628_s9 + $0x8] sm:$0xff]  ;;  %v2257_v23 = vld [vmem:[%s9628_s9 + $0x10] sm:$0xff] }
 0x57d   : > { %2153 = vrot.lane.b32.xlu0 %v8188_v22, %s8216_s28  ;;  %7455 = vmatpush3.bf16.msra.mxu0 %v8479_v26 }
 0x57e   : > { %7462 = vmatprep.subr.bf16.mxu0 %v8215_v60 }
 0x57f   : > { %7461 = vmatpush3.bf16.msra.mxu1 %v9303_v34 }
 0x580   : > { %7468 = vmatprep.subr.bf16.mxu1 %v8215_v60 }
 0x5eb   : > { %v1978_v31 = vpop.permute.xlu0 %1977 }
 0x5ec   : > { %6979 = vmatmul.mubr.msk.f32.vlgmr.msra.gmra.mrb[0].mxu0 %vm1786_vm2, %v1978_v31 }
 0x5ed   : > { %7464 = vmatpush3.bf16.msra.mxu0 %v9583_v30  ;;  %7000 = vmatprep.mubr.msk.f32.mxu0 %vm8217_vm3, %v8218_v28 }
 0x5ee   : > { %7465 = vmatprep.subr.bf16.mxu0 %v8215_v60 }
 0x5ef   : > { %v2154_v33 = vpop.permute.xlu0 %2153 }
 0x5f1   : > { %7467 = vmatpush3.bf16.msra.mxu0 %v9589_v32 }
 0x5f2   : > { %7474 = vmatprep.subr.bf16.mxu0 %v8215_v60 }
 0x5f4   : > { %7001 = vmatmul.mubr.msk.f32.vlgmr.msra.gmra.mrb[2].mxu0 %vm1786_vm2, %v2154_v33 }
 0x5f5   : > { %7476 = vmatpush3.bf16.msra.mxu0 %v8438_v17  ;;  %7022 = vmatprep.mubr.msk.f32.mxu0 %vm8217_vm3, %v8218_v28 }
 0x5f6   : > { %7477 = vmatprep.subr.bf16.mxu0 %v8215_v60 }
 0x5f9   : > { %7479 = vmatpush3.bf16.msra.mxu0 %v8479_v26 }
 0x5fa   : > { %7486 = vmatprep.subr.bf16.mxu0 %v8215_v60 }
 0x6bf   : > { %v2047_v35 = vpop.f32.mrb[0].mxu0 }
 0x6c0   : > { %v2048_v36 = vadd.f32 %v8987_v53, %v2047_v35  ;;  %v6980_v37 = vpop.f32.mrb[1].mxu0 }
 0x6c2   : > { %2059 = vrot.lane.b32.xlu1 %v2048_v36, %s8219_s6  ;;  %v2051_v42 = vadd.f32 %v5980_v41, %v2048_v36 }
 0x6c4   : > { %v5982_v43 = vmul.f32 -1.442695, %v2051_v42  ;;  %v5989_v42 = vld [vmem:[%s9608_s12 + $0x10] sm:$0xff] }
 0x6c6   : > { %7796 = vpow2.f32 %v5982_v43 }
 0x6c7   : > { %v2223_v38 = vpop.f32.mrb[2].mxu0 }
 0x6c8   : > { %v2224_v39 = vadd.f32 %v8429_v6, %v2223_v38  ;;  %v7002_v40 = vpop.f32.mrb[3].mxu0 }
 0x6ca   : > { %2235 = vrot.lane.b32.xlu1 %v2224_v39, %s8219_s6  ;;  %v2227_v44 = vadd.f32 %v8184_v24, %v2224_v39 }
 0x6cc   : > { %v5985_v45 = vmul.f32 -1.442695, %v2227_v44 }
 0x6ce   : > { %7798 = vpow2.f32 %v5985_v45 }
 0x6d0   : > { %v7797_v46 = vpop.eup %7796 }
 0x6d1   : > { %v2055_v47 = vadd.f32 1.0, %v7797_v46 }
 0x6d3   : > { %7800 = vrcp.f32 %v2055_v47 }
 0x6d8   : > { %v7799_v48 = vpop.eup %7798 }
 0x6d9   : > { %v2231_v49 = vadd.f32 1.0, %v7799_v48 }
 0x6db   : > { %7802 = vrcp.f32 %v2231_v49 }
 0x6dd   : > { %v7801_v50 = vpop.eup %7800 }
 0x6de   : > { %v2069_v63 = vsub.f32 1.0, %v7801_v50  ;;  %v2075_v8 = vmul.f32 %v8192_v19, %v7801_v50  ;;  %v2255_v19 = vld [vmem:[%s9628_s9] sm:$0xff] }
 0x6df   : > { %v7469_v20 = vpack.c.bf16 %v2256_v16, %v2255_v19 }
 0x6e5   : > { %v7803_v54 = vpop.eup %7802 }
 0x6e6   : > { %v2245_v11 = vsub.f32 1.0, %v7803_v54  ;;  %v2251_v13 = vmul.f32 %v8188_v22, %v7803_v54 }
 0x734   : > { %v2060_v51 = vpop.permute.xlu1 %2059 }
 0x735   : > { %v2062_v52 = vmul.f32 %v7801_v50, %v2060_v51 }
 0x737   : > { %2064 = vrot.lane.b32.xlu0 %v2062_v52, %s8219_s6 }
 0x73c   : > { %v2236_v55 = vpop.permute.xlu1 %2235 }
 0x73d   : > { %v2238_v56 = vmul.f32 %v7803_v54, %v2236_v55 }
 0x73f   : > { %2240 = vrot.lane.b32.xlu1 %v2238_v56, %s8219_s6 }
 0x7a9   : > { %v2065_v57 = vpop.permute.xlu0 %2064 }
 0x7aa   : > { %v2067_v18 = vadd.f32 %v5980_v41, %v2065_v57 }
 0x7ac   : > { %7804 = vtanh.f32 %v2067_v18 }
 0x7b1   : > { %v2241_v59 = vpop.permute.xlu1 %2240 }
 0x7b2   : > { %v2243_v58 = vadd.f32 %v8184_v24, %v2241_v59  ;;  %v2258_v24 = vld [vmem:[%s9628_s9 + $0x18] sm:$0xff] }
 0x7b3   : > { %v7472_v22 = vpack.c.bf16 %v2258_v24, %v2257_v23  ;;  %v5996_v24 = vld [vmem:[%s9628_s9 + $0x20] sm:$0xff] }
 0x7b4   : > { %7806 = vtanh.f32 %v2243_v58 }
 0x7b6   : > { %v7805_v61 = vpop.eup %7804 }
 0x7b7   : > { %2071 = vrot.lane.b32.xlu0 %v7805_v61, %s8216_s28 }
 0x7be   : > { %v7807_v62 = vpop.eup %7806 }
 0x7bf   : > { %2247 = vrot.lane.b32.xlu1 %v7807_v62, %s8216_s28 }
 0x829   : > { %v2072_v7 = vpop.permute.xlu0 %2071 }
 0x82a   : > { %v2074_v9 = vmul.f32 %v2072_v7, %v2069_v63 }
 0x82c   : > { %v9618_v10 = vadd.f32 %v2075_v8, %v2074_v9 }
 0x82e   : > { %2078 = vrot.lane.b32.xlu0 %v9618_v10, %s8216_s28 }
 0x831   : > { %v2248_v12 = vpop.permute.xlu1 %2247 }
 0x832   : > { %v2250_v14 = vmul.f32 %v2248_v12, %v2245_v11 }
 0x834   : > { %v9623_v15 = vadd.f32 %v2251_v13, %v2250_v14 }
 0x836   : > { %2260 = vrot.lane.b32.xlu1 %v9623_v15, %s8216_s28 }
 0x8a0   : > { %v2079_v25 = vpop.permute.xlu0 %2078 }
 0x8a1   : > { %6990 = vmatmul.mubr.msk.f32.vlgmr.msra.gmra.mrb[0].mxu1 %vm1786_vm2, %v2079_v25  ;;  %7023 = vmatmul.mubr.msk.f32.vlgmr.msra.gmra.mrb[4].mxu0 %vm1786_vm2, %v2079_v25  ;;  %v5997_v25 = vld [vmem:[%s9628_s9 + $0x28] sm:$0xff] }
 0x8a2   : > { %7470 = vmatpush3.bf16.msra.mxu1 %v7469_v20  ;;  %7488 = vmatpush3.bf16.msra.mxu0 %v9583_v30 }
 0x8a3   : > { %7471 = vmatprep.subr.bf16.mxu1 %v8215_v60  ;;  %7489 = vmatprep.subr.bf16.mxu0 %v8215_v60 }
 0x8a4   : > { %7011 = vmatprep.mubr.msk.f32.mxu1 %vm8217_vm3, %v8218_v28  ;;  %7044 = vmatprep.mubr.msk.f32.mxu0 %vm8217_vm3, %v8218_v28 }
 0x8a6   : > { %7473 = vmatpush3.bf16.msra.mxu1 %v7472_v22  ;;  %7491 = vmatpush3.bf16.msra.mxu0 %v9589_v32  ;;  %v7493_v22 = vpack.c.bf16 %v5997_v25, %v5996_v24 }
 0x8a7   : > { %7480 = vmatprep.subr.bf16.mxu1 %v8215_v60  ;;  %7498 = vmatprep.subr.bf16.mxu0 %v8215_v60 }
 0x8a8   : > { %v2261_v31 = vpop.permute.xlu1 %2260 }
 0x8a9   : > { %7012 = vmatmul.mubr.msk.f32.vlgmr.msra.gmra.mrb[2].mxu1 %vm1786_vm2, %v2261_v31  ;;  %7045 = vmatmul.mubr.msk.f32.vlgmr.msra.gmra.mrb[6].mxu0 %vm1786_vm2, %v2261_v31  ;;  %v5999_v31 = vld [vmem:[%s9628_s9 + $0x38] sm:$0xff] }
 0x8aa   : > { %7482 = vmatpush3.bf16.msra.mxu1 %v9298_v29  ;;  %7500 = vmatpush3.bf16.msra.mxu0 %v8438_v17 }
 0x8ab   : > { %7483 = vmatprep.subr.bf16.mxu1 %v8215_v60  ;;  %7501 = vmatprep.subr.bf16.mxu0 %v8215_v60 }
 0x8ac   : > { %7033 = vmatprep.mubr.msk.f32.mxu1 %vm8217_vm3, %v8218_v28  ;;  %7066 = vmatprep.mubr.msk.f32.mxu0 %vm8217_vm3, %v8218_v28 }
 0x8ae   : > { %7485 = vmatpush3.bf16.msra.mxu1 %v9303_v34  ;;  %7503 = vmatpush3.bf16.msra.mxu0 %v8479_v26 }
 0x8af   : > { %7492 = vmatprep.subr.bf16.mxu1 %v8215_v60  ;;  %7510 = vmatprep.subr.bf16.mxu0 %v8215_v60 }
 0x974   : > { %v2148_v33 = vpop.f32.mrb[0].mxu1  ;;  %v2405_v35 = vpop.f32.mrb[4].mxu0 }
 0x975   : > { %v2406_v36 = vadd.f32 %v8987_v53, %v2405_v35  ;;  %v6991_v37 = vpop.f32.mrb[1].mxu1  ;;  %v7024_v38 = vpop.f32.mrb[5].mxu0  ;;  %v2149_v45 = vadd.f32 %v9534_v21, %v2148_v33 }
 0x977   : > { %2417 = vrot.lane.b32.xlu0 %v2406_v36, %s8219_s6  ;;  %v2409_v43 = vadd.f32 %v5989_v42, %v2406_v36 }
 0x979   : > { %v5991_v44 = vmul.f32 -1.442695, %v2409_v43 }
 0x97b   : > { %7808 = vpow2.f32 %v5991_v44  ;;  %v6002_v44 = vld [vmem:[%s9608_s12 + $0x18] sm:$0xff] }
 0x97c   : > { %v2576_v39 = vpop.f32.mrb[6].mxu0 }
 0x97d   : > { %v2577_v40 = vadd.f32 %v8429_v6, %v2576_v39  ;;  %v7046_v41 = vpop.f32.mrb[7].mxu0 }
 0x97f   : > { %2588 = vrot.lane.b32.xlu1 %v2577_v40, %s8219_s6  ;;  %v2580_v46 = vadd.f32 %v2577_v40, %v2149_v45 }
 0x981   : > { %v5994_v47 = vmul.f32 -1.442695, %v2580_v46 }
 0x983   : > { %7810 = vpow2.f32 %v5994_v47 }
 0x985   : > { %v7809_v48 = vpop.eup %7808 }
 0x986   : > { %v2413_v49 = vadd.f32 1.0, %v7809_v48 }
 0x988   : > { %7812 = vrcp.f32 %v2413_v49 }
 0x98d   : > { %v7811_v50 = vpop.eup %7810 }
 0x98e   : > { %v2584_v51 = vadd.f32 1.0, %v7811_v50 }
 0x990   : > { %7814 = vrcp.f32 %v2584_v51 }
 0x992   : > { %v7813_v52 = vpop.eup %7812 }
 0x993   : > { %v2427_v8 = vsub.f32 1.0, %v7813_v52  ;;  %v2433_v11 = vmul.f32 %v7813_v52, %v9618_v10  ;;  %v5998_v10 = vld [vmem:[%s9628_s9 + $0x30] sm:$0xff] }
 0x99a   : > { %v7815_v56 = vpop.eup %7814 }
 0x99b   : > { %v2598_v14 = vsub.f32 1.0, %v7815_v56  ;;  %v2604_v16 = vmul.f32 %v7815_v56, %v9623_v15  ;;  %v7496_v15 = vpack.c.bf16 %v5999_v31, %v5998_v10  ;;  %v6009_v31 = vld [vmem:[%s9628_s9 + $0x40] sm:$0xff] }
 0x9e9   : > { %v2418_v54 = vpop.permute.xlu0 %2417 }
 0x9ea   : > { %v2420_v55 = vmul.f32 %v7813_v52, %v2418_v54 }
 0x9ec   : > { %2422 = vrot.lane.b32.xlu0 %v2420_v55, %s8219_s6 }
 0x9f1   : > { %v2589_v57 = vpop.permute.xlu1 %2588 }
 0x9f2   : > { %v2591_v18 = vmul.f32 %v7815_v56, %v2589_v57 }
 0x9f4   : > { %2593 = vrot.lane.b32.xlu1 %v2591_v18, %s8219_s6 }
 0xa5e   : > { %v2423_v59 = vpop.permute.xlu0 %2422 }
 0xa5f   : > { %v2425_v58 = vadd.f32 %v5989_v42, %v2423_v59 }
 0xa61   : > { %7816 = vtanh.f32 %v2425_v58 }
 0xa66   : > { %v2594_v61 = vpop.permute.xlu1 %2593 }
 0xa67   : > { %v2596_v62 = vadd.f32 %v2594_v61, %v2149_v45 }
 0xa69   : > { %7818 = vtanh.f32 %v2596_v62 }
 0xa6b   : > { %v7817_v63 = vpop.eup %7816 }
 0xa6c   : > { %2429 = vrot.lane.b32.xlu0 %v7817_v63, %s8216_s28 }
 0xa73   : > { %v7819_v7 = vpop.eup %7818 }
 0xa74   : > { %2600 = vrot.lane.b32.xlu1 %v7819_v7, %s8216_s28 }
 0xade   : > { %v2430_v9 = vpop.permute.xlu0 %2429 }
 0xadf   : > { %v2432_v12 = vmul.f32 %v2430_v9, %v2427_v8 }
 0xae1   : > { %v9671_v13 = vadd.f32 %v2433_v11, %v2432_v12 }
 0xae3   : > { %2436 = vrot.lane.b32.xlu0 %v9671_v13, %s8216_s28 }
 0xae6   : > { %v2601_v19 = vpop.permute.xlu1 %2600 }
 0xae7   : > { %v2603_v20 = vmul.f32 %v2601_v19, %v2598_v14 }
 0xae9   : > { %v9676_v23 = vadd.f32 %v2604_v16, %v2603_v20 }
 0xaeb   : > { %2613 = vrot.lane.b32.xlu1 %v9676_v23, %s8216_s28 }
 0xb55   : > { %v2437_v33 = vpop.permute.xlu0 %2436 }
 0xb56   : > { %7034 = vmatmul.mubr.msk.f32.vlgmr.msra.gmra.mrb[4].mxu1 %vm1786_vm2, %v2437_v33  ;;  %7067 = vmatmul.mubr.msk.f32.vlgmr.msra.gmra.mrb[8].mxu0 %vm1786_vm2, %v2437_v33  ;;  %v6010_v33 = vld [vmem:[%s9628_s9 + $0x48] sm:$0xff] }
 0xb57   : > { %7494 = vmatpush3.bf16.msra.mxu1 %v7493_v22  ;;  %7512 = vmatpush3.bf16.msra.mxu0 %v9583_v30 }
 0xb58   : > { %7495 = vmatprep.subr.bf16.mxu1 %v8215_v60  ;;  %7513 = vmatprep.subr.bf16.mxu0 %v8215_v60 }
 0xb59   : > { %7088 = vmatprep.mubr.msk.f32.mxu0 %vm8217_vm3, %v8218_v28  ;;  %7055 = vmatprep.mubr.msk.f32.mxu1 %vm8217_vm3, %v8218_v28 }
 0xb5b   : > { %7497 = vmatpush3.bf16.msra.mxu1 %v7496_v15  ;;  %7515 = vmatpush3.bf16.msra.mxu0 %v9589_v32  ;;  %v7517_v15 = vpack.c.bf16 %v6010_v33, %v6009_v31 }
 0xb5c   : > { %7504 = vmatprep.subr.bf16.mxu1 %v8215_v60  ;;  %7522 = vmatprep.subr.bf16.mxu0 %v8215_v60 }
 0xb5d   : > { %v2614_v35 = vpop.permute.xlu1 %2613 }
 0xb5e   : > { %7056 = vmatmul.mubr.msk.f32.vlgmr.msra.gmra.mrb[2].mxu1 %vm1786_vm2, %v2614_v35  ;;  %7089 = vmatmul.mubr.msk.f32.vlgmr.msra.gmra.mrb[10].mxu0 %vm1786_vm2, %v2614_v35  ;;  %v6012_v35 = vld [vmem:[%s9628_s9 + $0x58] sm:$0xff] }
 0xb5f   : > { %7506 = vmatpush3.bf16.msra.mxu1 %v9298_v29  ;;  %7524 = vmatpush3.bf16.msra.mxu0 %v8438_v17 }
 0xb60   : > { %7507 = vmatprep.subr.bf16.mxu1 %v8215_v60  ;;  %7525 = vmatprep.subr.bf16.mxu0 %v8215_v60 }
 0xb61   : > { %7110 = vmatprep.mubr.msk.f32.mxu0 %vm8217_vm3, %v8218_v28  ;;  %7077 = vmatprep.mubr.msk.f32.mxu1 %vm8217_vm3, %v8218_v28 }
 0xb63   : > { %7509 = vmatpush3.bf16.msra.mxu1 %v9303_v34  ;;  %7527 = vmatpush3.bf16.msra.mxu0 %v8479_v26 }
 0xb64   : > { %7534 = vmatprep.subr.bf16.mxu0 %v8215_v60  ;;  %7516 = vmatprep.subr.bf16.mxu1 %v8215_v60 }
 0xc29   : > { %v2506_v36 = vpop.f32.mrb[4].mxu1  ;;  %v2758_v37 = vpop.f32.mrb[8].mxu0 }
 0xc2a   : > { %v2759_v38 = vadd.f32 %v8987_v53, %v2758_v37  ;;  %v7035_v39 = vpop.f32.mrb[5].mxu1  ;;  %v7068_v40 = vpop.f32.mrb[9].mxu0  ;;  %v2507_v47 = vadd.f32 %v9534_v21, %v2506_v36 }
 0xc2c   : > { %2770 = vrot.lane.b32.xlu0 %v2759_v38, %s8219_s6  ;;  %v2762_v45 = vadd.f32 %v6002_v44, %v2759_v38 }
 0xc2e   : > { %v6004_v46 = vmul.f32 -1.442695, %v2762_v45 }
 0xc30   : > { %7820 = vpow2.f32 %v6004_v46  ;;  %v6015_v46 = vld [vmem:[%s9608_s12 + $0x20] sm:$0xff] }
 0xc31   : > { %v2929_v41 = vpop.f32.mrb[10].mxu0 }
 0xc32   : > { %v2930_v42 = vadd.f32 %v8429_v6, %v2929_v41  ;;  %v7090_v43 = vpop.f32.mrb[11].mxu0 }
 0xc34   : > { %2941 = vrot.lane.b32.xlu1 %v2930_v42, %s8219_s6  ;;  %v2933_v48 = vadd.f32 %v2930_v42, %v2507_v47 }
 0xc36   : > { %v6007_v49 = vmul.f32 -1.442695, %v2933_v48 }
 0xc38   : > { %7822 = vpow2.f32 %v6007_v49 }
 0xc3a   : > { %v7821_v50 = vpop.eup %7820 }
 0xc3b   : > { %v2766_v51 = vadd.f32 1.0, %v7821_v50 }
 0xc3d   : > { %7824 = vrcp.f32 %v2766_v51 }
 0xc42   : > { %v7823_v52 = vpop.eup %7822 }
 0xc43   : > { %v2937_v54 = vadd.f32 1.0, %v7823_v52 }
 0xc45   : > { %7826 = vrcp.f32 %v2937_v54 }
 0xc47   : > { %v7825_v55 = vpop.eup %7824 }
 0xc48   : > { %v2780_v11 = vsub.f32 1.0, %v7825_v55  ;;  %v2786_v14 = vmul.f32 %v7825_v55, %v9671_v13  ;;  %v6011_v13 = vld [vmem:[%s9628_s9 + $0x50] sm:$0xff] }
 0xc4f   : > { %v7827_v18 = vpop.eup %7826 }
 0xc50   : > { %v2951_v20 = vsub.f32 1.0, %v7827_v18  ;;  %v2957_v25 = vmul.f32 %v7827_v18, %v9676_v23  ;;  %v7520_v23 = vpack.c.bf16 %v6012_v35, %v6011_v13  ;;  %v6022_v35 = vld [vmem:[%s9628_s9 + $0x60] sm:$0xff] }
 0xc9e   : > { %v2771_v56 = vpop.permute.xlu0 %2770 }
 0xc9f   : > { %v2773_v57 = vmul.f32 %v7825_v55, %v2771_v56 }
 0xca1   : > { %2775 = vrot.lane.b32.xlu0 %v2773_v57, %s8219_s6 }
 0xca6   : > { %v2942_v59 = vpop.permute.xlu1 %2941 }
 0xca7   : > { %v2944_v58 = vmul.f32 %v7827_v18, %v2942_v59 }
 0xca9   : > { %2946 = vrot.lane.b32.xlu1 %v2944_v58, %s8219_s6 }
 0xd13   : > { %v2776_v61 = vpop.permute.xlu0 %2775 }
 0xd14   : > { %v2778_v62 = vadd.f32 %v6002_v44, %v2776_v61 }
 0xd16   : > { %7828 = vtanh.f32 %v2778_v62 }
 0xd1b   : > { %v2947_v63 = vpop.permute.xlu1 %2946 }
 0xd1c   : > { %v2949_v7 = vadd.f32 %v2947_v63, %v2507_v47 }
 0xd1e   : > { %7830 = vtanh.f32 %v2949_v7 }
 0xd20   : > { %v7829_v8 = vpop.eup %7828 }
 0xd21   : > { %2782 = vrot.lane.b32.xlu0 %v7829_v8, %s8216_s28 }
 0xd28   : > { %v7831_v9 = vpop.eup %7830 }
 0xd29   : > { %2953 = vrot.lane.b32.xlu1 %v7831_v9, %s8216_s28 }
 0xd93   : > { %v2783_v12 = vpop.permute.xlu0 %2782 }
 0xd94   : > { %v2785_v19 = vmul.f32 %v2783_v12, %v2780_v11 }
 0xd96   : > { %v9721_v16 = vadd.f32 %v2786_v14, %v2785_v19 }
 0xd98   : > { %2789 = vrot.lane.b32.xlu0 %v9721_v16, %s8216_s28 }
 0xd9b   : > { %v2954_v24 = vpop.permute.xlu1 %2953 }
 0xd9c   : > { %v2956_v22 = vmul.f32 %v2954_v24, %v2951_v20 }
 0xd9e   : > { %v9726_v10 = vadd.f32 %v2957_v25, %v2956_v22 }
 0xda0   : > { %2966 = vrot.lane.b32.xlu1 %v9726_v10, %s8216_s28 }
 0xe0a   : > { %v2790_v36 = vpop.permute.xlu0 %2789 }
 0xe0b   : > { %7078 = vmatmul.mubr.msk.f32.vlgmr.msra.gmra.mrb[6].mxu1 %vm1786_vm2, %v2790_v36  ;;  %7111 = vmatmul.mubr.msk.f32.vlgmr.msra.gmra.mrb[12].mxu0 %vm1786_vm2, %v2790_v36  ;;  %v6023_v36 = vld [vmem:[%s9628_s9 + $0x68] sm:$0xff] }
 0xe0c   : > { %7518 = vmatpush3.bf16.msra.mxu1 %v7517_v15  ;;  %7536 = vmatpush3.bf16.msra.mxu0 %v9583_v30 }
 0xe0d   : > { %7519 = vmatprep.subr.bf16.mxu1 %v8215_v60  ;;  %7537 = vmatprep.subr.bf16.mxu0 %v8215_v60 }
 0xe0e   : > { %7099 = vmatprep.mubr.msk.f32.mxu1 %vm8217_vm3, %v8218_v28  ;;  %7132 = vmatprep.mubr.msk.f32.mxu0 %vm8217_vm3, %v8218_v28 }
 0xe10   : > { %7521 = vmatpush3.bf16.msra.mxu1 %v7520_v23  ;;  %7539 = vmatpush3.bf16.msra.mxu0 %v9589_v32  ;;  %v7541_v23 = vpack.c.bf16 %v6023_v36, %v6022_v35 }
 0xe11   : > { %7528 = vmatprep.subr.bf16.mxu1 %v8215_v60  ;;  %7546 = vmatprep.subr.bf16.mxu0 %v8215_v60 }
 0xe12   : > { %v2967_v37 = vpop.permute.xlu1 %2966 }
 0xe13   : > { %7100 = vmatmul.mubr.msk.f32.vlgmr.msra.gmra.mrb[2].mxu1 %vm1786_vm2, %v2967_v37  ;;  %7133 = vmatmul.mubr.msk.f32.vlgmr.msra.gmra.mrb[14].mxu0 %vm1786_vm2, %v2967_v37  ;;  %v6025_v37 = vld [vmem:[%s9628_s9 + $0x78] sm:$0xff] }
 0xe14   : > { %7530 = vmatpush3.bf16.msra.mxu1 %v9298_v29  ;;  %7548 = vmatpush3.bf16.msra.mxu0 %v8438_v17 }
 0xe15   : > { %7531 = vmatprep.subr.bf16.mxu1 %v8215_v60  ;;  %7549 = vmatprep.subr.bf16.mxu0 %v8215_v60 }
 0xe16   : > { %7121 = vmatprep.mubr.msk.f32.mxu1 %vm8217_vm3, %v8218_v28  ;;  %7154 = vmatprep.mubr.msk.f32.mxu0 %vm8217_vm3, %v8218_v28 }
 0xe18   : > { %7533 = vmatpush3.bf16.msra.mxu1 %v9303_v34  ;;  %7551 = vmatpush3.bf16.msra.mxu0 %v8479_v26 }
 0xe19   : > { %7540 = vmatprep.subr.bf16.mxu1 %v8215_v60  ;;  %7558 = vmatprep.subr.bf16.mxu0 %v8215_v60 }
 0xede   : > { %v2859_v38 = vpop.f32.mrb[6].mxu1  ;;  %v3111_v39 = vpop.f32.mrb[12].mxu0 }
 0xedf   : > { %v3112_v40 = vadd.f32 %v8987_v53, %v3111_v39  ;;  %v7079_v41 = vpop.f32.mrb[7].mxu1  ;;  %v7112_v42 = vpop.f32.mrb[13].mxu0  ;;  %v2860_v49 = vadd.f32 %v9534_v21, %v2859_v38 }
 0xee1   : > { %3123 = vrot.lane.b32.xlu0 %v3112_v40, %s8219_s6  ;;  %v3115_v47 = vadd.f32 %v6015_v46, %v3112_v40 }
 0xee3   : > { %v6017_v48 = vmul.f32 -1.442695, %v3115_v47 }
 0xee5   : > { %7832 = vpow2.f32 %v6017_v48  ;;  %v6028_v48 = vld [vmem:[%s9608_s12 + $0x28] sm:$0xff] }
 0xee6   : > { %v3282_v43 = vpop.f32.mrb[14].mxu0 }
 0xee7   : > { %v3283_v44 = vadd.f32 %v8429_v6, %v3282_v43  ;;  %v7134_v45 = vpop.f32.mrb[15].mxu0 }
 0xee9   : > { %3294 = vrot.lane.b32.xlu1 %v3283_v44, %s8219_s6  ;;  %v3286_v50 = vadd.f32 %v3283_v44, %v2860_v49 }
 0xeeb   : > { %v6020_v51 = vmul.f32 -1.442695, %v3286_v50 }
 0xeed   : > { %7834 = vpow2.f32 %v6020_v51 }
 0xeef   : > { %v7833_v52 = vpop.eup %7832 }
 0xef0   : > { %v3119_v54 = vadd.f32 1.0, %v7833_v52 }
 0xef2   : > { %7836 = vrcp.f32 %v3119_v54 }
 0xef7   : > { %v7835_v55 = vpop.eup %7834 }
 0xef8   : > { %v3290_v56 = vadd.f32 1.0, %v7835_v55 }
 0xefa   : > { %7838 = vrcp.f32 %v3290_v56 }
 0xefc   : > { %v7837_v57 = vpop.eup %7836 }
 0xefd   : > { %v3133_v14 = vsub.f32 1.0, %v7837_v57  ;;  %v3139_v20 = vmul.f32 %v7837_v57, %v9721_v16  ;;  %v6024_v16 = vld [vmem:[%s9628_s9 + $0x70] sm:$0xff] }
 0xf04   : > { %v7839_v58 = vpop.eup %7838 }
 0xf05   : > { %v3304_v22 = vsub.f32 1.0, %v7839_v58  ;;  %v3310_v33 = vmul.f32 %v7839_v58, %v9726_v10  ;;  %v7544_v10 = vpack.c.bf16 %v6025_v37, %v6024_v16  ;;  %v6035_v37 = vld [vmem:[%s9628_s9 + $0x80] sm:$0xff] }
 0xf53   : > { %v3124_v18 = vpop.permute.xlu0 %3123 }
 0xf54   : > { %v3126_v59 = vmul.f32 %v7837_v57, %v3124_v18 }
 0xf56   : > { %3128 = vrot.lane.b32.xlu0 %v3126_v59, %s8219_s6 }
 0xf5b   : > { %v3295_v61 = vpop.permute.xlu1 %3294 }
 0xf5c   : > { %v3297_v62 = vmul.f32 %v7839_v58, %v3295_v61 }
 0xf5e   : > { %3299 = vrot.lane.b32.xlu1 %v3297_v62, %s8219_s6 }
 0xfc8   : > { %v3129_v63 = vpop.permute.xlu0 %3128 }
 0xfc9   : > { %v3131_v7 = vadd.f32 %v6015_v46, %v3129_v63 }
 0xfcb   : > { %7840 = vtanh.f32 %v3131_v7 }
 0xfd0   : > { %v3300_v8 = vpop.permute.xlu1 %3299 }
 0xfd1   : > { %v3302_v9 = vadd.f32 %v3300_v8, %v2860_v49 }
 0xfd3   : > { %7842 = vtanh.f32 %v3302_v9 }
 0xfd5   : > { %v7841_v11 = vpop.eup %7840 }
 0xfd6   : > { %3135 = vrot.lane.b32.xlu0 %v7841_v11, %s8216_s28 }
 0xfdd   : > { %v7843_v12 = vpop.eup %7842 }
 0xfde   : > { %3306 = vrot.lane.b32.xlu1 %v7843_v12, %s8216_s28 }
0x1048   : > { %v3136_v19 = vpop.permute.xlu0 %3135 }
0x1049   : > { %v3138_v24 = vmul.f32 %v3136_v19, %v3133_v14 }
0x104b   : > { %v9771_v25 = vadd.f32 %v3139_v20, %v3138_v24 }
0x104d   : > { %3142 = vrot.lane.b32.xlu0 %v9771_v25, %s8216_s28 }
0x1050   : > { %v3307_v31 = vpop.permute.xlu1 %3306 }
0x1051   : > { %v3309_v15 = vmul.f32 %v3307_v31, %v3304_v22 }
0x1053   : > { %v9776_v13 = vadd.f32 %v3310_v33, %v3309_v15 }
0x1055   : > { %3319 = vrot.lane.b32.xlu1 %v9776_v13, %s8216_s28 }
0x10bf   : > { %v3143_v38 = vpop.permute.xlu0 %3142 }
0x10c0   : > { %7122 = vmatmul.mubr.msk.f32.vlgmr.msra.gmra.mrb[8].mxu1 %vm1786_vm2, %v3143_v38  ;;  %7155 = vmatmul.mubr.msk.f32.vlgmr.msra.gmra.mrb[16].mxu0 %vm1786_vm2, %v3143_v38  ;;  %v6036_v38 = vld [vmem:[%s9628_s9 + $0x88] sm:$0xff] }
0x10c1   : > { %7542 = vmatpush3.bf16.msra.mxu1 %v7541_v23  ;;  %7560 = vmatpush3.bf16.msra.mxu0 %v9583_v30 }
0x10c2   : > { %7543 = vmatprep.subr.bf16.mxu1 %v8215_v60  ;;  %7561 = vmatprep.subr.bf16.mxu0 %v8215_v60 }
0x10c3   : > { %7143 = vmatprep.mubr.msk.f32.mxu1 %vm8217_vm3, %v8218_v28  ;;  %7176 = vmatprep.mubr.msk.f32.mxu0 %vm8217_vm3, %v8218_v28 }
0x10c5   : > { %7545 = vmatpush3.bf16.msra.mxu1 %v7544_v10  ;;  %7563 = vmatpush3.bf16.msra.mxu0 %v9589_v32  ;;  %v7565_v10 = vpack.c.bf16 %v6036_v38, %v6035_v37 }
0x10c6   : > { %7552 = vmatprep.subr.bf16.mxu1 %v8215_v60  ;;  %7570 = vmatprep.subr.bf16.mxu0 %v8215_v60 }
0x10c7   : > { %v3320_v39 = vpop.permute.xlu1 %3319 }
0x10c8   : > { %7144 = vmatmul.mubr.msk.f32.vlgmr.msra.gmra.mrb[2].mxu1 %vm1786_vm2, %v3320_v39  ;;  %7177 = vmatmul.mubr.msk.f32.vlgmr.msra.gmra.mrb[18].mxu0 %vm1786_vm2, %v3320_v39  ;;  %v6038_v39 = vld [vmem:[%s9628_s9 + $0x98] sm:$0xff] }
0x10c9   : > { %7554 = vmatpush3.bf16.msra.mxu1 %v9298_v29  ;;  %7572 = vmatpush3.bf16.msra.mxu0 %v8438_v17 }
0x10ca   : > { %7555 = vmatprep.subr.bf16.mxu1 %v8215_v60  ;;  %7573 = vmatprep.subr.bf16.mxu0 %v8215_v60 }
0x10cb   : > { %7165 = vmatprep.mubr.msk.f32.mxu1 %vm8217_vm3, %v8218_v28  ;;  %7198 = vmatprep.mubr.msk.f32.mxu0 %vm8217_vm3, %v8218_v28 }
0x10cd   : > { %7557 = vmatpush3.bf16.msra.mxu1 %v9303_v34  ;;  %7575 = vmatpush3.bf16.msra.mxu0 %v8479_v26 }
0x10ce   : > { %7564 = vmatprep.subr.bf16.mxu1 %v8215_v60  ;;  %7582 = vmatprep.subr.bf16.mxu0 %v8215_v60 }
0x1193   : > { %v3212_v40 = vpop.f32.mrb[8].mxu1  ;;  %v3464_v41 = vpop.f32.mrb[16].mxu0 }
0x1194   : > { %v3465_v42 = vadd.f32 %v8987_v53, %v3464_v41  ;;  %v7123_v43 = vpop.f32.mrb[9].mxu1  ;;  %v7156_v44 = vpop.f32.mrb[17].mxu0  ;;  %v3213_v51 = vadd.f32 %v9534_v21, %v3212_v40 }
0x1196   : > { %3476 = vrot.lane.b32.xlu0 %v3465_v42, %s8219_s6  ;;  %v3468_v49 = vadd.f32 %v6028_v48, %v3465_v42 }
0x1198   : > { %v6030_v50 = vmul.f32 -1.442695, %v3468_v49 }
0x119a   : > { %7844 = vpow2.f32 %v6030_v50  ;;  %v6041_v50 = vld [vmem:[%s9608_s12 + $0x30] sm:$0xff] }
0x119b   : > { %v3635_v45 = vpop.f32.mrb[18].mxu0 }
0x119c   : > { %v3636_v46 = vadd.f32 %v8429_v6, %v3635_v45  ;;  %v7178_v47 = vpop.f32.mrb[19].mxu0 }
0x119e   : > { %3647 = vrot.lane.b32.xlu1 %v3636_v46, %s8219_s6  ;;  %v3639_v52 = vadd.f32 %v3636_v46, %v3213_v51 }
0x11a0   : > { %v6033_v54 = vmul.f32 -1.442695, %v3639_v52 }
0x11a2   : > { %7846 = vpow2.f32 %v6033_v54 }
0x11a4   : > { %v7845_v55 = vpop.eup %7844 }
0x11a5   : > { %v3472_v56 = vadd.f32 1.0, %v7845_v55 }
0x11a7   : > { %7848 = vrcp.f32 %v3472_v56 }
0x11ac   : > { %v7847_v57 = vpop.eup %7846 }
0x11ad   : > { %v3643_v18 = vadd.f32 1.0, %v7847_v57 }
0x11af   : > { %7850 = vrcp.f32 %v3643_v18 }
0x11b1   : > { %v7849_v59 = vpop.eup %7848 }
0x11b2   : > { %v3486_v20 = vsub.f32 1.0, %v7849_v59  ;;  %v3492_v22 = vmul.f32 %v7849_v59, %v9771_v25  ;;  %v6037_v25 = vld [vmem:[%s9628_s9 + $0x90] sm:$0xff] }
0x11b9   : > { %v7851_v62 = vpop.eup %7850 }
0x11ba   : > { %v3657_v15 = vsub.f32 1.0, %v7851_v62  ;;  %v3663_v36 = vmul.f32 %v7851_v62, %v9776_v13  ;;  %v7568_v13 = vpack.c.bf16 %v6038_v39, %v6037_v25  ;;  %v6048_v39 = vld [vmem:[%s9628_s9 + $0xa0] sm:$0xff] }
0x1208   : > { %v3477_v58 = vpop.permute.xlu0 %3476 }
0x1209   : > { %v3479_v61 = vmul.f32 %v7849_v59, %v3477_v58 }
0x120b   : > { %3481 = vrot.lane.b32.xlu0 %v3479_v61, %s8219_s6 }
0x1210   : > { %v3648_v63 = vpop.permute.xlu1 %3647 }
0x1211   : > { %v3650_v7 = vmul.f32 %v7851_v62, %v3648_v63 }
0x1213   : > { %3652 = vrot.lane.b32.xlu1 %v3650_v7, %s8219_s6 }
0x127d   : > { %v3482_v8 = vpop.permute.xlu0 %3481 }
0x127e   : > { %v3484_v9 = vadd.f32 %v6028_v48, %v3482_v8 }
0x1280   : > { %7852 = vtanh.f32 %v3484_v9 }
0x1285   : > { %v3653_v11 = vpop.permute.xlu1 %3652 }
0x1286   : > { %v3655_v12 = vadd.f32 %v3653_v11, %v3213_v51 }
0x1288   : > { %7854 = vtanh.f32 %v3655_v12 }
0x128a   : > { %v7853_v14 = vpop.eup %7852 }
0x128b   : > { %3488 = vrot.lane.b32.xlu0 %v7853_v14, %s8216_s28 }
0x1292   : > { %v7855_v19 = vpop.eup %7854 }
0x1293   : > { %3659 = vrot.lane.b32.xlu1 %v7855_v19, %s8216_s28 }
0x12fd   : > { %v3489_v24 = vpop.permute.xlu0 %3488 }
0x12fe   : > { %v3491_v31 = vmul.f32 %v3489_v24, %v3486_v20 }
0x1300   : > { %v9821_v33 = vadd.f32 %v3492_v22, %v3491_v31 }
0x1302   : > { %3495 = vrot.lane.b32.xlu0 %v9821_v33, %s8216_s28 }
0x1305   : > { %v3660_v35 = vpop.permute.xlu1 %3659 }
0x1306   : > { %v3662_v23 = vmul.f32 %v3660_v35, %v3657_v15 }
0x1308   : > { %v9826_v16 = vadd.f32 %v3663_v36, %v3662_v23 }
0x130a   : > { %3672 = vrot.lane.b32.xlu1 %v9826_v16, %s8216_s28 }
0x1374   : > { %v3496_v40 = vpop.permute.xlu0 %3495 }
0x1375   : > { %7166 = vmatmul.mubr.msk.f32.vlgmr.msra.gmra.mrb[10].mxu1 %vm1786_vm2, %v3496_v40  ;;  %7199 = vmatmul.mubr.msk.f32.vlgmr.msra.gmra.mrb[20].mxu0 %vm1786_vm2, %v3496_v40  ;;  %v6049_v40 = vld [vmem:[%s9628_s9 + $0xa8] sm:$0xff] }
0x1376   : > { %7566 = vmatpush3.bf16.msra.mxu1 %v7565_v10  ;;  %7584 = vmatpush3.bf16.msra.mxu0 %v9583_v30 }
0x1377   : > { %7567 = vmatprep.subr.bf16.mxu1 %v8215_v60  ;;  %7585 = vmatprep.subr.bf16.mxu0 %v8215_v60 }
0x1378   : > { %7187 = vmatprep.mubr.msk.f32.mxu1 %vm8217_vm3, %v8218_v28  ;;  %7220 = vmatprep.mubr.msk.f32.mxu0 %vm8217_vm3, %v8218_v28 }
0x137a   : > { %7569 = vmatpush3.bf16.msra.mxu1 %v7568_v13  ;;  %7587 = vmatpush3.bf16.msra.mxu0 %v9589_v32  ;;  %v7589_v13 = vpack.c.bf16 %v6049_v40, %v6048_v39 }
0x137b   : > { %7576 = vmatprep.subr.bf16.mxu1 %v8215_v60  ;;  %7594 = vmatprep.subr.bf16.mxu0 %v8215_v60 }
0x137c   : > { %v3673_v41 = vpop.permute.xlu1 %3672 }
0x137d   : > { %7188 = vmatmul.mubr.msk.f32.vlgmr.msra.gmra.mrb[2].mxu1 %vm1786_vm2, %v3673_v41  ;;  %7221 = vmatmul.mubr.msk.f32.vlgmr.msra.gmra.mrb[22].mxu0 %vm1786_vm2, %v3673_v41  ;;  %v6051_v41 = vld [vmem:[%s9628_s9 + $0xb8] sm:$0xff] }
0x137e   : > { %7578 = vmatpush3.bf16.msra.mxu1 %v9298_v29  ;;  %7596 = vmatpush3.bf16.msra.mxu0 %v8438_v17 }
0x137f   : > { %7579 = vmatprep.subr.bf16.mxu1 %v8215_v60  ;;  %7597 = vmatprep.subr.bf16.mxu0 %v8215_v60 }
0x1380   : > { %7209 = vmatprep.mubr.msk.f32.mxu1 %vm8217_vm3, %v8218_v28  ;;  %7242 = vmatprep.mubr.msk.f32.mxu0 %vm8217_vm3, %v8218_v28 }
0x1382   : > { %7581 = vmatpush3.bf16.msra.mxu1 %v9303_v34  ;;  %7599 = vmatpush3.bf16.msra.mxu0 %v8479_v26 }
0x1383   : > { %7588 = vmatprep.subr.bf16.mxu1 %v8215_v60  ;;  %7606 = vmatprep.subr.bf16.mxu0 %v8215_v60 }
0x1448   : > { %v3565_v42 = vpop.f32.mrb[10].mxu1  ;;  %v3817_v43 = vpop.f32.mrb[20].mxu0 }
0x1449   : > { %v3818_v44 = vadd.f32 %v8987_v53, %v3817_v43  ;;  %v7167_v45 = vpop.f32.mrb[11].mxu1  ;;  %v7200_v46 = vpop.f32.mrb[21].mxu0  ;;  %v3566_v54 = vadd.f32 %v9534_v21, %v3565_v42 }
0x144b   : > { %3829 = vrot.lane.b32.xlu0 %v3818_v44, %s8219_s6  ;;  %v3821_v51 = vadd.f32 %v6041_v50, %v3818_v44 }
0x144d   : > { %v6043_v52 = vmul.f32 -1.442695, %v3821_v51 }
0x144f   : > { %7856 = vpow2.f32 %v6043_v52  ;;  %v6054_v52 = vld [vmem:[%s9608_s12 + $0x38] sm:$0xff] }
0x1450   : > { %v3988_v47 = vpop.f32.mrb[22].mxu0 }
0x1451   : > { %v3989_v48 = vadd.f32 %v8429_v6, %v3988_v47  ;;  %v7222_v49 = vpop.f32.mrb[23].mxu0 }
0x1453   : > { %4000 = vrot.lane.b32.xlu1 %v3989_v48, %s8219_s6  ;;  %v3992_v55 = vadd.f32 %v3989_v48, %v3566_v54 }
0x1455   : > { %v6046_v56 = vmul.f32 -1.442695, %v3992_v55 }
0x1457   : > { %7858 = vpow2.f32 %v6046_v56 }
0x1459   : > { %v7857_v57 = vpop.eup %7856 }
0x145a   : > { %v3825_v18 = vadd.f32 1.0, %v7857_v57 }
0x145c   : > { %7860 = vrcp.f32 %v3825_v18 }
0x1461   : > { %v7859_v59 = vpop.eup %7858 }
0x1462   : > { %v3996_v58 = vadd.f32 1.0, %v7859_v59 }
0x1464   : > { %7862 = vrcp.f32 %v3996_v58 }
0x1466   : > { %v7861_v61 = vpop.eup %7860 }
0x1467   : > { %v3839_v22 = vsub.f32 1.0, %v7861_v61  ;;  %v3845_v15 = vmul.f32 %v7861_v61, %v9821_v33  ;;  %v6050_v33 = vld [vmem:[%s9628_s9 + $0xb0] sm:$0xff] }
0x146e   : > { %v7863_v7 = vpop.eup %7862 }
0x146f   : > { %v4010_v23 = vsub.f32 1.0, %v7863_v7  ;;  %v4016_v38 = vmul.f32 %v7863_v7, %v9826_v16  ;;  %v7592_v16 = vpack.c.bf16 %v6051_v41, %v6050_v33  ;;  %v6061_v41 = vld [vmem:[%s9628_s9 + $0xc0] sm:$0xff] }
0x14bd   : > { %v3830_v62 = vpop.permute.xlu0 %3829 }
0x14be   : > { %v3832_v63 = vmul.f32 %v7861_v61, %v3830_v62 }
0x14c0   : > { %3834 = vrot.lane.b32.xlu0 %v3832_v63, %s8219_s6 }
0x14c5   : > { %v4001_v8 = vpop.permute.xlu1 %4000 }
0x14c6   : > { %v4003_v9 = vmul.f32 %v7863_v7, %v4001_v8 }
0x14c8   : > { %4005 = vrot.lane.b32.xlu1 %v4003_v9, %s8219_s6 }
0x1532   : > { %v3835_v11 = vpop.permute.xlu0 %3834 }
0x1533   : > { %v3837_v12 = vadd.f32 %v6041_v50, %v3835_v11 }
0x1535   : > { %7864 = vtanh.f32 %v3837_v12 }
0x153a   : > { %v4006_v14 = vpop.permute.xlu1 %4005 }
0x153b   : > { %v4008_v19 = vadd.f32 %v4006_v14, %v3566_v54 }
0x153d   : > { %7866 = vtanh.f32 %v4008_v19 }
0x153f   : > { %v7865_v20 = vpop.eup %7864 }
0x1540   : > { %3841 = vrot.lane.b32.xlu0 %v7865_v20, %s8216_s28 }
0x1547   : > { %v7867_v24 = vpop.eup %7866 }
0x1548   : > { %4012 = vrot.lane.b32.xlu1 %v7867_v24, %s8216_s28 }
0x15b2   : > { %v3842_v31 = vpop.permute.xlu0 %3841 }
0x15b3   : > { %v3844_v35 = vmul.f32 %v3842_v31, %v3839_v22 }
0x15b5   : > { %v9871_v36 = vadd.f32 %v3845_v15, %v3844_v35 }
0x15b7   : > { %3848 = vrot.lane.b32.xlu0 %v9871_v36, %s8216_s28 }
0x15ba   : > { %v4013_v37 = vpop.permute.xlu1 %4012 }
0x15bb   : > { %v4015_v10 = vmul.f32 %v4013_v37, %v4010_v23 }
0x15bd   : > { %v9876_v25 = vadd.f32 %v4016_v38, %v4015_v10 }
0x15bf   : > { %4025 = vrot.lane.b32.xlu1 %v9876_v25, %s8216_s28 }
0x1629   : > { %v3849_v42 = vpop.permute.xlu0 %3848 }
0x162a   : > { %7210 = vmatmul.mubr.msk.f32.vlgmr.msra.gmra.mrb[12].mxu1 %vm1786_vm2, %v3849_v42  ;;  %7243 = vmatmul.mubr.msk.f32.vlgmr.msra.gmra.mrb[24].mxu0 %vm1786_vm2, %v3849_v42  ;;  %v6062_v42 = vld [vmem:[%s9628_s9 + $0xc8] sm:$0xff] }
0x162b   : > { %7590 = vmatpush3.bf16.msra.mxu1 %v7589_v13  ;;  %7608 = vmatpush3.bf16.msra.mxu0 %v9583_v30 }
0x162c   : > { %7591 = vmatprep.subr.bf16.mxu1 %v8215_v60  ;;  %7609 = vmatprep.subr.bf16.mxu0 %v8215_v60 }
0x162d   : > { %7231 = vmatprep.mubr.msk.f32.mxu1 %vm8217_vm3, %v8218_v28  ;;  %7264 = vmatprep.mubr.msk.f32.mxu0 %vm8217_vm3, %v8218_v28 }
0x162f   : > { %7593 = vmatpush3.bf16.msra.mxu1 %v7592_v16  ;;  %7611 = vmatpush3.bf16.msra.mxu0 %v9589_v32  ;;  %v7613_v16 = vpack.c.bf16 %v6062_v42, %v6061_v41 }
0x1630   : > { %7600 = vmatprep.subr.bf16.mxu1 %v8215_v60  ;;  %7618 = vmatprep.subr.bf16.mxu0 %v8215_v60 }
0x1631   : > { %v4026_v43 = vpop.permute.xlu1 %4025 }
0x1632   : > { %7232 = vmatmul.mubr.msk.f32.vlgmr.msra.gmra.mrb[2].mxu1 %vm1786_vm2, %v4026_v43  ;;  %7265 = vmatmul.mubr.msk.f32.vlgmr.msra.gmra.mrb[26].mxu0 %vm1786_vm2, %v4026_v43  ;;  %v6064_v43 = vld [vmem:[%s9628_s9 + $0xd8] sm:$0xff] }
0x1633   : > { %7602 = vmatpush3.bf16.msra.mxu1 %v9298_v29  ;;  %7620 = vmatpush3.bf16.msra.mxu0 %v8438_v17 }
0x1634   : > { %7603 = vmatprep.subr.bf16.mxu1 %v8215_v60  ;;  %7621 = vmatprep.subr.bf16.mxu0 %v8215_v60 }
0x1635   : > { %7253 = vmatprep.mubr.msk.f32.mxu1 %vm8217_vm3, %v8218_v28  ;;  %7286 = vmatprep.mubr.msk.f32.mxu0 %vm8217_vm3, %v8218_v28 }
0x1637   : > { %7605 = vmatpush3.bf16.msra.mxu1 %v9303_v34  ;;  %7623 = vmatpush3.bf16.msra.mxu0 %v8479_v26 }
0x1638   : > { %7612 = vmatprep.subr.bf16.mxu1 %v8215_v60  ;;  %7630 = vmatprep.subr.bf16.mxu0 %v8215_v60 }
0x16fd   : > { %v3918_v44 = vpop.f32.mrb[12].mxu1  ;;  %v4170_v45 = vpop.f32.mrb[24].mxu0 }
0x16fe   : > { %v4171_v46 = vadd.f32 %v8987_v53, %v4170_v45  ;;  %v7211_v47 = vpop.f32.mrb[13].mxu1  ;;  %v7244_v48 = vpop.f32.mrb[25].mxu0  ;;  %v3919_v56 = vadd.f32 %v9534_v21, %v3918_v44 }
0x1700   : > { %4182 = vrot.lane.b32.xlu0 %v4171_v46, %s8219_s6  ;;  %v4174_v54 = vadd.f32 %v6054_v52, %v4171_v46 }
0x1702   : > { %v6056_v55 = vmul.f32 -1.442695, %v4174_v54 }
0x1704   : > { %7868 = vpow2.f32 %v6056_v55  ;;  %v6067_v55 = vld [vmem:[%s9608_s12 + $0x40] sm:$0xff] }
0x1705   : > { %v4341_v49 = vpop.f32.mrb[26].mxu0 }
0x1706   : > { %v4342_v50 = vadd.f32 %v8429_v6, %v4341_v49  ;;  %v7266_v51 = vpop.f32.mrb[27].mxu0 }
0x1708   : > { %4353 = vrot.lane.b32.xlu1 %v4342_v50, %s8219_s6  ;;  %v4345_v57 = vadd.f32 %v4342_v50, %v3919_v56 }
0x170a   : > { %v6059_v18 = vmul.f32 -1.442695, %v4345_v57 }
0x170c   : > { %7870 = vpow2.f32 %v6059_v18 }
0x170e   : > { %v7869_v59 = vpop.eup %7868 }
0x170f   : > { %v4178_v58 = vadd.f32 1.0, %v7869_v59 }
0x1711   : > { %7872 = vrcp.f32 %v4178_v58 }
0x1716   : > { %v7871_v61 = vpop.eup %7870 }
0x1717   : > { %v4349_v62 = vadd.f32 1.0, %v7871_v61 }
0x1719   : > { %7874 = vrcp.f32 %v4349_v62 }
0x171b   : > { %v7873_v63 = vpop.eup %7872 }
0x171c   : > { %v4192_v15 = vsub.f32 1.0, %v7873_v63  ;;  %v4198_v23 = vmul.f32 %v7873_v63, %v9871_v36  ;;  %v6063_v36 = vld [vmem:[%s9628_s9 + $0xd0] sm:$0xff] }
0x1723   : > { %v7875_v9 = vpop.eup %7874 }
0x1724   : > { %v4363_v10 = vsub.f32 1.0, %v7875_v9  ;;  %v4369_v40 = vmul.f32 %v7875_v9, %v9876_v25  ;;  %v7616_v25 = vpack.c.bf16 %v6064_v43, %v6063_v36  ;;  %v6074_v43 = vld [vmem:[%s9628_s9 + $0xe0] sm:$0xff] }
0x1772   : > { %v4183_v7 = vpop.permute.xlu0 %4182 }
0x1773   : > { %v4185_v8 = vmul.f32 %v7873_v63, %v4183_v7 }
0x1775   : > { %4187 = vrot.lane.b32.xlu0 %v4185_v8, %s8219_s6 }
0x177a   : > { %v4354_v11 = vpop.permute.xlu1 %4353 }
0x177b   : > { %v4356_v12 = vmul.f32 %v7875_v9, %v4354_v11 }
0x177d   : > { %4358 = vrot.lane.b32.xlu1 %v4356_v12, %s8219_s6 }
0x17e7   : > { %v4188_v14 = vpop.permute.xlu0 %4187 }
0x17e8   : > { %v4190_v19 = vadd.f32 %v6054_v52, %v4188_v14 }
0x17ea   : > { %7876 = vtanh.f32 %v4190_v19 }
0x17ef   : > { %v4359_v20 = vpop.permute.xlu1 %4358 }
0x17f0   : > { %v4361_v24 = vadd.f32 %v4359_v20, %v3919_v56 }
0x17f2   : > { %7878 = vtanh.f32 %v4361_v24 }
0x17f4   : > { %v7877_v22 = vpop.eup %7876 }
0x17f5   : > { %4194 = vrot.lane.b32.xlu0 %v7877_v22, %s8216_s28 }
0x17fc   : > { %v7879_v31 = vpop.eup %7878 }
0x17fd   : > { %4365 = vrot.lane.b32.xlu1 %v7879_v31, %s8216_s28 }
0x1867   : > { %v4195_v35 = vpop.permute.xlu0 %4194 }
0x1868   : > { %v4197_v37 = vmul.f32 %v4195_v35, %v4192_v15 }
0x186a   : > { %v9921_v38 = vadd.f32 %v4198_v23, %v4197_v37 }
0x186c   : > { %4201 = vrot.lane.b32.xlu0 %v9921_v38, %s8216_s28 }
0x186f   : > { %v4366_v39 = vpop.permute.xlu1 %4365 }
0x1870   : > { %v4368_v13 = vmul.f32 %v4366_v39, %v4363_v10 }
0x1872   : > { %v9926_v33 = vadd.f32 %v4369_v40, %v4368_v13 }
0x1874   : > { %4378 = vrot.lane.b32.xlu1 %v9926_v33, %s8216_s28 }
0x18de   : > { %v4202_v44 = vpop.permute.xlu0 %4201 }
0x18df   : > { %7254 = vmatmul.mubr.msk.f32.vlgmr.msra.gmra.mrb[14].mxu1 %vm1786_vm2, %v4202_v44  ;;  %7287 = vmatmul.mubr.msk.f32.vlgmr.msra.gmra.mrb[28].mxu0 %vm1786_vm2, %v4202_v44  ;;  %v6075_v44 = vld [vmem:[%s9628_s9 + $0xe8] sm:$0xff] }
0x18e0   : > { %7614 = vmatpush3.bf16.msra.mxu1 %v7613_v16  ;;  %7632 = vmatpush3.bf16.msra.mxu0 %v9583_v30 }
0x18e1   : > { %7615 = vmatprep.subr.bf16.mxu1 %v8215_v60  ;;  %7633 = vmatprep.subr.bf16.mxu0 %v8215_v60 }
0x18e2   : > { %7275 = vmatprep.mubr.msk.f32.mxu1 %vm8217_vm3, %v8218_v28  ;;  %7308 = vmatprep.mubr.msk.f32.mxu0 %vm8217_vm3, %v8218_v28 }
0x18e4   : > { %7617 = vmatpush3.bf16.msra.mxu1 %v7616_v25  ;;  %7635 = vmatpush3.bf16.msra.mxu0 %v9589_v32  ;;  %v7637_v25 = vpack.c.bf16 %v6075_v44, %v6074_v43 }
0x18e5   : > { %7624 = vmatprep.subr.bf16.mxu1 %v8215_v60  ;;  %7642 = vmatprep.subr.bf16.mxu0 %v8215_v60 }
0x18e6   : > { %v4379_v45 = vpop.permute.xlu1 %4378 }
0x18e7   : > { %7276 = vmatmul.mubr.msk.f32.vlgmr.msra.gmra.mrb[2].mxu1 %vm1786_vm2, %v4379_v45  ;;  %7309 = vmatmul.mubr.msk.f32.vlgmr.msra.gmra.mrb[30].mxu0 %vm1786_vm2, %v4379_v45  ;;  %v6077_v45 = vld [vmem:[%s9628_s9 + $0xf8] sm:$0xff] }
0x18e8   : > { %7626 = vmatpush3.bf16.msra.mxu1 %v9298_v29  ;;  %7644 = vmatpush3.bf16.msra.mxu0 %v8438_v17 }
0x18e9   : > { %7627 = vmatprep.subr.bf16.mxu1 %v8215_v60  ;;  %7645 = vmatprep.subr.bf16.mxu0 %v8215_v60 }
0x18ea   : > { %7297 = vmatprep.mubr.msk.f32.mxu1 %vm8217_vm3, %v8218_v28  ;;  %7330 = vmatprep.mubr.msk.f32.mxu0 %vm8217_vm3, %v8218_v28 }
0x18ec   : > { %7629 = vmatpush3.bf16.msra.mxu1 %v9303_v34  ;;  %7647 = vmatpush3.bf16.msra.mxu0 %v8479_v26 }
0x18ed   : > { %7636 = vmatprep.subr.bf16.mxu1 %v8215_v60  ;;  %7654 = vmatprep.subr.bf16.mxu0 %v8215_v60 }
0x19b2   : > { %v4271_v46 = vpop.f32.mrb[14].mxu1  ;;  %v4523_v47 = vpop.f32.mrb[28].mxu0 }
0x19b3   : > { %v4524_v48 = vadd.f32 %v8987_v53, %v4523_v47  ;;  %v7255_v49 = vpop.f32.mrb[15].mxu1  ;;  %v7288_v50 = vpop.f32.mrb[29].mxu0  ;;  %v4272_v18 = vadd.f32 %v9534_v21, %v4271_v46 }
0x19b5   : > { %4535 = vrot.lane.b32.xlu0 %v4524_v48, %s8219_s6  ;;  %v4527_v56 = vadd.f32 %v6067_v55, %v4524_v48 }
0x19b7   : > { %v6069_v57 = vmul.f32 -1.442695, %v4527_v56 }
0x19b9   : > { %7880 = vpow2.f32 %v6069_v57  ;;  %v6080_v57 = vld [vmem:[%s9608_s12 + $0x48] sm:$0xff] }
0x19ba   : > { %v4694_v51 = vpop.f32.mrb[30].mxu0 }
0x19bb   : > { %v4695_v52 = vadd.f32 %v8429_v6, %v4694_v51  ;;  %v7310_v54 = vpop.f32.mrb[31].mxu0 }
0x19bd   : > { %4706 = vrot.lane.b32.xlu1 %v4695_v52, %s8219_s6  ;;  %v4698_v59 = vadd.f32 %v4695_v52, %v4272_v18 }
0x19bf   : > { %v6072_v58 = vmul.f32 -1.442695, %v4698_v59 }
0x19c1   : > { %7882 = vpow2.f32 %v6072_v58 }
0x19c3   : > { %v7881_v61 = vpop.eup %7880 }
0x19c4   : > { %v4531_v62 = vadd.f32 1.0, %v7881_v61 }
0x19c6   : > { %7884 = vrcp.f32 %v4531_v62 }
0x19cb   : > { %v7883_v63 = vpop.eup %7882 }
0x19cc   : > { %v4702_v7 = vadd.f32 1.0, %v7883_v63 }
0x19ce   : > { %7886 = vrcp.f32 %v4702_v7 }
0x19d0   : > { %v7885_v8 = vpop.eup %7884 }
0x19d1   : > { %v4545_v23 = vsub.f32 1.0, %v7885_v8  ;;  %v4551_v10 = vmul.f32 %v7885_v8, %v9921_v38  ;;  %v6076_v38 = vld [vmem:[%s9628_s9 + $0xf0] sm:$0xff] }
0x19d8   : > { %v7887_v12 = vpop.eup %7886 }
0x19d9   : > { %v4716_v13 = vsub.f32 1.0, %v7887_v12  ;;  %v4722_v42 = vmul.f32 %v7887_v12, %v9926_v33  ;;  %v7640_v33 = vpack.c.bf16 %v6077_v45, %v6076_v38  ;;  %v6087_v45 = vld [vmem:[%s9628_s9 + $0x100] sm:$0xff] }
0x1a27   : > { %v4536_v9 = vpop.permute.xlu0 %4535 }
0x1a28   : > { %v4538_v11 = vmul.f32 %v7885_v8, %v4536_v9 }
0x1a2a   : > { %4540 = vrot.lane.b32.xlu0 %v4538_v11, %s8219_s6 }
0x1a2f   : > { %v4707_v14 = vpop.permute.xlu1 %4706 }
0x1a30   : > { %v4709_v19 = vmul.f32 %v7887_v12, %v4707_v14 }
0x1a32   : > { %4711 = vrot.lane.b32.xlu1 %v4709_v19, %s8219_s6 }
0x1a9c   : > { %v4541_v20 = vpop.permute.xlu0 %4540 }
0x1a9d   : > { %v4543_v24 = vadd.f32 %v6067_v55, %v4541_v20 }
0x1a9f   : > { %7888 = vtanh.f32 %v4543_v24 }
0x1aa4   : > { %v4712_v22 = vpop.permute.xlu1 %4711 }
0x1aa5   : > { %v4714_v31 = vadd.f32 %v4712_v22, %v4272_v18 }
0x1aa7   : > { %7890 = vtanh.f32 %v4714_v31 }
0x1aa9   : > { %v7889_v15 = vpop.eup %7888 }
0x1aaa   : > { %4547 = vrot.lane.b32.xlu0 %v7889_v15, %s8216_s28 }
0x1ab1   : > { %v7891_v35 = vpop.eup %7890 }
0x1ab2   : > { %4718 = vrot.lane.b32.xlu1 %v7891_v35, %s8216_s28 }
0x1b1c   : > { %v4548_v37 = vpop.permute.xlu0 %4547 }
0x1b1d   : > { %v4550_v39 = vmul.f32 %v4548_v37, %v4545_v23 }
0x1b1f   : > { %v9971_v40 = vadd.f32 %v4551_v10, %v4550_v39 }
0x1b21   : > { %4554 = vrot.lane.b32.xlu0 %v9971_v40, %s8216_s28 }
0x1b24   : > { %v4719_v41 = vpop.permute.xlu1 %4718 }
0x1b25   : > { %v4721_v16 = vmul.f32 %v4719_v41, %v4716_v13 }
0x1b27   : > { %v9976_v36 = vadd.f32 %v4722_v42, %v4721_v16 }
0x1b29   : > { %4731 = vrot.lane.b32.xlu1 %v9976_v36, %s8216_s28 }
0x1b93   : > { %v4555_v46 = vpop.permute.xlu0 %4554 }
0x1b94   : > { %7298 = vmatmul.mubr.msk.f32.vlgmr.msra.gmra.mrb[16].mxu1 %vm1786_vm2, %v4555_v46  ;;  %7331 = vmatmul.mubr.msk.f32.vlgmr.msra.gmra.mrb[32].mxu0 %vm1786_vm2, %v4555_v46  ;;  %v6088_v46 = vld [vmem:[%s9628_s9 + $0x108] sm:$0xff] }
0x1b95   : > { %7638 = vmatpush3.bf16.msra.mxu1 %v7637_v25  ;;  %7656 = vmatpush3.bf16.msra.mxu0 %v9583_v30 }
0x1b96   : > { %7639 = vmatprep.subr.bf16.mxu1 %v8215_v60  ;;  %7657 = vmatprep.subr.bf16.mxu0 %v8215_v60 }
0x1b97   : > { %7319 = vmatprep.mubr.msk.f32.mxu1 %vm8217_vm3, %v8218_v28  ;;  %7352 = vmatprep.mubr.msk.f32.mxu0 %vm8217_vm3, %v8218_v28 }
0x1b99   : > { %7641 = vmatpush3.bf16.msra.mxu1 %v7640_v33  ;;  %7659 = vmatpush3.bf16.msra.mxu0 %v9589_v32  ;;  %v7661_v33 = vpack.c.bf16 %v6088_v46, %v6087_v45 }
0x1b9a   : > { %7648 = vmatprep.subr.bf16.mxu1 %v8215_v60  ;;  %7666 = vmatprep.subr.bf16.mxu0 %v8215_v60 }
0x1b9b   : > { %v4732_v47 = vpop.permute.xlu1 %4731 }
0x1b9c   : > { %7320 = vmatmul.mubr.msk.f32.vlgmr.msra.gmra.mrb[2].mxu1 %vm1786_vm2, %v4732_v47  ;;  %7353 = vmatmul.mubr.msk.f32.vlgmr.msra.gmra.mrb[34].mxu0 %vm1786_vm2, %v4732_v47  ;;  %v6090_v47 = vld [vmem:[%s9628_s9 + $0x118] sm:$0xff] }
0x1b9d   : > { %7650 = vmatpush3.bf16.msra.mxu1 %v9298_v29  ;;  %7668 = vmatpush3.bf16.msra.mxu0 %v8438_v17 }
0x1b9e   : > { %7651 = vmatprep.subr.bf16.mxu1 %v8215_v60  ;;  %7669 = vmatprep.subr.bf16.mxu0 %v8215_v60 }
0x1b9f   : > { %7341 = vmatprep.mubr.msk.f32.mxu1 %vm8217_vm3, %v8218_v28  ;;  %7374 = vmatprep.mubr.msk.f32.mxu0 %vm8217_vm3, %v8218_v28 }
0x1ba1   : > { %7653 = vmatpush3.bf16.msra.mxu1 %v9303_v34  ;;  %7671 = vmatpush3.bf16.msra.mxu0 %v8479_v26 }
0x1ba2   : > { %7660 = vmatprep.subr.bf16.mxu1 %v8215_v60  ;;  %7678 = vmatprep.subr.bf16.mxu0 %v8215_v60 }
0x1c67   : > { %v4624_v48 = vpop.f32.mrb[16].mxu1  ;;  %v4876_v49 = vpop.f32.mrb[32].mxu0 }
0x1c68   : > { %v4877_v50 = vadd.f32 %v8987_v53, %v4876_v49  ;;  %v7299_v51 = vpop.f32.mrb[17].mxu1  ;;  %v7332_v52 = vpop.f32.mrb[33].mxu0  ;;  %v4625_v58 = vadd.f32 %v9534_v21, %v4624_v48 }
0x1c6a   : > { %4888 = vrot.lane.b32.xlu0 %v4877_v50, %s8219_s6  ;;  %v4880_v18 = vadd.f32 %v6080_v57, %v4877_v50 }
0x1c6c   : > { %v6082_v59 = vmul.f32 -1.442695, %v4880_v18 }
0x1c6e   : > { %7892 = vpow2.f32 %v6082_v59  ;;  %v6093_v59 = vld [vmem:[%s9608_s12 + $0x50] sm:$0xff] }
0x1c6f   : > { %v5047_v54 = vpop.f32.mrb[34].mxu0 }
0x1c70   : > { %v5048_v55 = vadd.f32 %v8429_v6, %v5047_v54  ;;  %v7354_v56 = vpop.f32.mrb[35].mxu0 }
0x1c72   : > { %5059 = vrot.lane.b32.xlu1 %v5048_v55, %s8219_s6  ;;  %v5051_v61 = vadd.f32 %v5048_v55, %v4625_v58 }
0x1c74   : > { %v6085_v62 = vmul.f32 -1.442695, %v5051_v61 }
0x1c76   : > { %7894 = vpow2.f32 %v6085_v62 }
0x1c78   : > { %v7893_v63 = vpop.eup %7892 }
0x1c79   : > { %v4884_v7 = vadd.f32 1.0, %v7893_v63 }
0x1c7b   : > { %7896 = vrcp.f32 %v4884_v7 }
0x1c80   : > { %v7895_v8 = vpop.eup %7894 }
0x1c81   : > { %v5055_v9 = vadd.f32 1.0, %v7895_v8 }
0x1c83   : > { %7898 = vrcp.f32 %v5055_v9 }
0x1c85   : > { %v7897_v11 = vpop.eup %7896 }
0x1c86   : > { %v4898_v10 = vsub.f32 1.0, %v7897_v11  ;;  %v4904_v13 = vmul.f32 %v7897_v11, %v9971_v40  ;;  %v6089_v40 = vld [vmem:[%s9628_s9 + $0x110] sm:$0xff] }
0x1c8d   : > { %v7899_v19 = vpop.eup %7898 }
0x1c8e   : > { %v5069_v16 = vsub.f32 1.0, %v7899_v19  ;;  %v5075_v44 = vmul.f32 %v7899_v19, %v9976_v36  ;;  %v7664_v36 = vpack.c.bf16 %v6090_v47, %v6089_v40  ;;  %v6100_v40 = vld [vmem:[%s9628_s9 + $0x120] sm:$0xff]  ;;  %v6101_v47 = vld [vmem:[%s9628_s9 + $0x128] sm:$0xff] }
0x1cdc   : > { %v4889_v12 = vpop.permute.xlu0 %4888 }
0x1cdd   : > { %v4891_v14 = vmul.f32 %v7897_v11, %v4889_v12 }
0x1cdf   : > { %4893 = vrot.lane.b32.xlu0 %v4891_v14, %s8219_s6 }
0x1ce4   : > { %v5060_v20 = vpop.permute.xlu1 %5059 }
0x1ce5   : > { %v5062_v24 = vmul.f32 %v7899_v19, %v5060_v20 }
0x1ce7   : > { %5064 = vrot.lane.b32.xlu1 %v5062_v24, %s8219_s6 }
0x1d51   : > { %v4894_v22 = vpop.permute.xlu0 %4893 }
0x1d52   : > { %v4896_v31 = vadd.f32 %v6080_v57, %v4894_v22 }
0x1d54   : > { %7900 = vtanh.f32 %v4896_v31 }
0x1d59   : > { %v5065_v15 = vpop.permute.xlu1 %5064 }
0x1d5a   : > { %v5067_v35 = vadd.f32 %v5065_v15, %v4625_v58 }
0x1d5c   : > { %7902 = vtanh.f32 %v5067_v35 }
0x1d5e   : > { %v7901_v23 = vpop.eup %7900 }
0x1d5f   : > { %4900 = vrot.lane.b32.xlu0 %v7901_v23, %s8216_s28 }
0x1d66   : > { %v7903_v37 = vpop.eup %7902 }
0x1d67   : > { %5071 = vrot.lane.b32.xlu1 %v7903_v37, %s8216_s28 }
0x1dd1   : > { %v4901_v39 = vpop.permute.xlu0 %4900 }
0x1dd2   : > { %v4903_v41 = vmul.f32 %v4901_v39, %v4898_v10 }
0x1dd4   : > { %v10021_v42 = vadd.f32 %v4904_v13, %v4903_v41 }
0x1dd6   : > { %4907 = vrot.lane.b32.xlu0 %v10021_v42, %s8216_s28 }
0x1dd9   : > { %v5072_v43 = vpop.permute.xlu1 %5071 }
0x1dda   : > { %v5074_v25 = vmul.f32 %v5072_v43, %v5069_v16 }
0x1ddc   : > { %v10026_v38 = vadd.f32 %v5075_v44, %v5074_v25 }
0x1dde   : > { %5084 = vrot.lane.b32.xlu1 %v10026_v38, %s8216_s28 }
0x1e48   : > { %v4908_v48 = vpop.permute.xlu0 %4907 }
0x1e49   : > { %7342 = vmatmul.mubr.msk.f32.vlgmr.msra.gmra.mrb[18].mxu1 %vm1786_vm2, %v4908_v48  ;;  %7375 = vmatmul.mubr.msk.f32.vlgmr.msra.gmra.mrb[36].mxu0 %vm1786_vm2, %v4908_v48  ;;  %v7685_v48 = vpack.c.bf16 %v6101_v47, %v6100_v40 }
0x1e4a   : > { %7662 = vmatpush3.bf16.msra.mxu1 %v7661_v33  ;;  %7680 = vmatpush3.bf16.msra.mxu0 %v9583_v30 }
0x1e4b   : > { %7663 = vmatprep.subr.bf16.mxu1 %v8215_v60  ;;  %7681 = vmatprep.subr.bf16.mxu0 %v8215_v60 }
0x1e4c   : > { %7363 = vmatprep.mubr.msk.f32.mxu1 %vm8217_vm3, %v8218_v28  ;;  %7396 = vmatprep.mubr.msk.f32.mxu0 %vm8217_vm3, %v8218_v28 }
0x1e4e   : > { %7665 = vmatpush3.bf16.msra.mxu1 %v7664_v36  ;;  %7683 = vmatpush3.bf16.msra.mxu0 %v9589_v32  ;;  %v6102_v36 = vld [vmem:[%s9628_s9 + $0x130] sm:$0xff] }
0x1e4f   : > { %7672 = vmatprep.subr.bf16.mxu1 %v8215_v60  ;;  %7690 = vmatprep.subr.bf16.mxu0 (%p1963_p10), %v8210_v0 }
0x1e50   : > { %v5085_v49 = vpop.permute.xlu1 %5084 }
0x1e51   : > { %7364 = vmatmul.mubr.msk.f32.vlgmr.msra.gmra.mrb[2].mxu1 %vm1786_vm2, %v5085_v49  ;;  %7397 = vmatmul.mubr.msk.f32.vlgmr.msra.gmra.mrb[38].mxu0 %vm1786_vm2, %v5085_v49  ;;  %v6103_v49 = vld [vmem:[%s9628_s9 + $0x138] sm:$0xff] }
0x1e52   : > { %7674 = vmatpush3.bf16.msra.mxu1 %v9298_v29  ;;  %7385 = vmatprep.mubr.msk.f32.mxu1 %vm8217_vm3, %v8218_v28 }
0x1e53   : > { %7675 = vmatprep.subr.bf16.mxu1 %v8215_v60  ;;  %7692 = vmatpush3.bf16.msra.mxu0 (%p1963_p10), %v9583_v30  ;;  %v5615_v30 = vld [vmem:[#allocation16 + $0x12c8] sm:$0xff] (%p1963_p10) }
0x1e54   :  { %7418 = vmatprep.mubr.msk.f32.mxu0 (%p1963_p10), %vm8211_vm0, %v8212_v1  ;;  %7693 = vmatprep.subr.bf16.mxu0 (%p1963_p10), %v8210_v0 }
0x1e56   : > { %7677 = vmatpush3.bf16.msra.mxu1 %v9303_v34 }
0x1e57   : > { %7684 = vmatprep.subr.bf16.mxu1 %v8215_v60  ;;  %7695 = vmatpush3.bf16.msra.mxu0 (%p1963_p10), %v9589_v32 }
0x1f1c   : > { %v4977_v50 = vpop.f32.mrb[18].mxu1  ;;  %v5229_v51 = vpop.f32.mrb[36].mxu0 }
0x1f1d   : > { %v5230_v52 = vadd.f32 %v8987_v53, %v5229_v51  ;;  %v7343_v54 = vpop.f32.mrb[19].mxu1  ;;  %v7376_v55 = vpop.f32.mrb[37].mxu0  ;;  %v4978_v62 = vadd.f32 %v9534_v21, %v4977_v50  ;;  %v7688_v50 = vpack.c.bf16 %v6103_v49, %v6102_v36 }
0x1f1f   : > { %5241 = vrot.lane.b32.xlu0 %v5230_v52, %s8219_s6  ;;  %v5233_v58 = vadd.f32 %v6093_v59, %v5230_v52 }
0x1f21   : > { %v6095_v61 = vmul.f32 -1.442695, %v5233_v58 }
0x1f23   : > { %7904 = vpow2.f32 %v6095_v61 }
0x1f24   : > { %v5400_v56 = vpop.f32.mrb[38].mxu0 }
0x1f25   : > { %v5401_v57 = vadd.f32 %v8429_v6, %v5400_v56  ;;  %v7398_v18 = vpop.f32.mrb[39].mxu0 }
0x1f26   :  { %v5617_v18 = vld [vmem:[#allocation16 + $0x12d8] sm:$0xff] (%p1963_p10) }
0x1f27   : > { %5412 = vrot.lane.b32.xlu1 %v5401_v57, %s8219_s6  ;;  %v5404_v63 = vadd.f32 %v5401_v57, %v4978_v62 }
0x1f29   : > { %v6098_v7 = vmul.f32 -1.442695, %v5404_v63 }
0x1f2b   : > { %7906 = vpow2.f32 %v6098_v7 }
0x1f2d   : > { %v7905_v8 = vpop.eup %7904 }
0x1f2e   : > { %v5237_v9 = vadd.f32 1.0, %v7905_v8 }
0x1f30   : > { %7908 = vrcp.f32 %v5237_v9 }
0x1f35   : > { %v7907_v11 = vpop.eup %7906 }
0x1f36   : > { %v5408_v12 = vadd.f32 1.0, %v7907_v11 }
0x1f38   : > { %7910 = vrcp.f32 %v5408_v12  ;;  %v6108_v12 = vld [vmem:[#allocation17] ss:$0 sm:$0xff] (%p1963_p10) }
0x1f3a   : > { %v7909_v14 = vpop.eup %7908 }
0x1f3b   : > { %v5251_v13 = vsub.f32 1.0, %v7909_v14  ;;  %v5257_v16 = vmul.f32 %v7909_v14, %v10021_v42 }
0x1f42   : > { %v7911_v24 = vpop.eup %7910 }
0x1f43   : > { %v5422_v44 = vsub.f32 1.0, %v7911_v24  ;;  %v5428_v45 = vmul.f32 %v7911_v24, %v10026_v38 }
0x1f91   : > { %v5242_v19 = vpop.permute.xlu0 %5241 }
0x1f92   : > { %v5244_v20 = vmul.f32 %v7909_v14, %v5242_v19 }
0x1f94   : > { %5246 = vrot.lane.b32.xlu0 %v5244_v20, %s8219_s6 }
0x1f99   : > { %v5413_v22 = vpop.permute.xlu1 %5412 }
0x1f9a   : > { %v5415_v31 = vmul.f32 %v7911_v24, %v5413_v22 }
0x1f9c   : > { %5417 = vrot.lane.b32.xlu1 %v5415_v31, %s8219_s6 }
0x2006   : > { %v5247_v15 = vpop.permute.xlu0 %5246 }
0x2007   : > { %v5249_v35 = vadd.f32 %v6093_v59, %v5247_v15 }
0x2009   : > { %7912 = vtanh.f32 %v5249_v35 }
0x200e   : > { %v5418_v23 = vpop.permute.xlu1 %5417 }
0x200f   : > { %v5420_v37 = vadd.f32 %v5418_v23, %v4978_v62 }
0x2011   : > { %7914 = vtanh.f32 %v5420_v37 }
0x2013   : > { %v7913_v10 = vpop.eup %7912 }
0x2014   : > { %5253 = vrot.lane.b32.xlu0 %v7913_v10, %s8216_s28 }
0x201b   : > { %v7915_v39 = vpop.eup %7914 }
0x201c   : > { %5424 = vrot.lane.b32.xlu1 %v7915_v39, %s8216_s28 }
0x2086   : > { %v5254_v41 = vpop.permute.xlu0 %5253 }
0x2087   : > { %v5256_v43 = vmul.f32 %v5254_v41, %v5251_v13 }
0x2089   : > { %v5258_v19 = vadd.f32 %v5257_v16, %v5256_v43  }
0x208b   : > { %5260 = vrot.lane.b32.xlu0 %v5258_v19, %s8216_s28 }
0x208e   : > { %v5425_v25 = vpop.permute.xlu1 %5424 }
0x208f   : > { %v5427_v46 = vmul.f32 %v5425_v25, %v5422_v44 }
0x2091   : > { %v10066_v22 = vadd.f32 %v5428_v45, %v5427_v46  }
0x2093   : > { %v10131_v33 = vmov %v10066_v22 }
0x2094   : > { %5437 = vrot.lane.b32.xlu1 %v10131_v33, %s8216_s28  ;;  %v10134_v22 = vmov %v10131_v33  ;;  %5513 = vrot.lane.b32.xlu0 (%p1963_p10), %v10131_v33, %s8214_s25 }
0x20fd   : > { %v5261_v42 = vpop.permute.xlu0 %5260 }
0x20fe   : > { %7386 = vmatmul.mubr.msk.f32.vlgmr.msra.gmra.mrb[20].mxu1 %vm1786_vm2, %v5261_v42 }
0x20ff   : > { %7686 = vmatpush3.bf16.msra.mxu1 %v7685_v48  ;;  %7407 = vmatprep.mubr.msk.f32.mxu1 %vm8217_vm3, %v8218_v28  ;;  %v5614_v28 = vld [vmem:[#allocation16 + $0x12c0] sm:$0xff] (%p1963_p10) }
0x2100   : > { %7687 = vmatprep.subr.bf16.mxu1 %v8215_v60  ;;  %v7697_v32 = vpack.c.bf16 (%p1963_p10), %v5615_v30, %v5614_v28 }
0x2103   : > { %7689 = vmatpush3.bf16.msra.mxu1 %v7688_v50 }
0x2104   :  { %7696 = vmatprep.subr.bf16.mxu1 (%p1963_p10), %v8210_v0 }
0x2106   : > { %v5438_v38 = vpop.permute.xlu1 %5437  ;;  %v5514_v60 = vpop.permute.xlu0 (%p1963_p10), %5513 }
0x2107   : > { %7408 = vmatmul.mubr.msk.f32.vlgmr.msra.gmra.mrb[2].mxu1 %vm1786_vm2, %v5438_v38  ;;  %7419 = vmatmul.mubr.msk.f32.vlgmr.msra.gmra.mrb[0].mxu0 (%p1963_p10), %vm1786_vm2, %v5514_v60 }
0x2108   :  { %7429 = vmatprep.mubr.msk.f32.mxu1 (%p1963_p10), %vm8211_vm0, %v8212_v1  ;;  %7698 = vmatpush3.bf16.msra.mxu1 (%p1963_p10), %v7697_v32 }
0x2109   :  { %7699 = vmatprep.subr.bf16.mxu1 (%p1963_p10), %v8210_v0 }
0x21d1   : > { %v5330_v51 = vpop.f32.mrb[20].mxu1 }
0x21d2   : > { %v5331_v52 = vadd.f32 %v9534_v21, %v5330_v51   ;;  %v7387_v54 = vpop.f32.mrb[21].mxu1 }
0x21d4   : > { %v10133_v24 = vmov %v5331_v52 }
0x21d7   :  { %1965 = sbr.rel (!%p1963_p10) target bundleno = 1399 (0x577), region = 132 }
0x21da   : > { %v5507_v55 = vpop.f32.mrb[2].mxu1  ;;  %v5583_v2 = vpop.f32.mrb[0].mxu0 (%p1963_p10) }
0x21db   : > { %v7708_v56 = vadd.f32 %v8180_v27, %v5507_v55   ;;  %v7409_v57 = vpop.f32.mrb[3].mxu1  ;;  %v5584_v3 = vadd.f32 (%p1963_p10), %v8429_v6, %v5583_v2  ;;  %v7420_v4 = vpop.f32.mrb[1].mxu0 (%p1963_p10)  ;;  %v5616_v6 = vld [vmem:[#allocation16 + $0x12d0] sm:$0xff] (%p1963_p10) }
0x21dc   :  { %v7700_v59 = vpack.c.bf16 (%p1963_p10), %v5617_v18, %v5616_v6 }
0x21dd   : > { %v10132_v27 = vmov %v7708_v56  ;;  %5595 = vrot.lane.b32.xlu0 (%p1963_p10), %v5584_v3, %s8213_s21  ;;  %v5587_v5 = vadd.f32 (%p1963_p10), %v5584_v3, %v5331_v52 }
0x21de   :  { %7701 = vmatpush3.bf16.msra.mxu1 %v7700_v59 }
0x21df   :  { %v6106_v17 = vmul.f32 -1.442695, %v5587_v5 }
0x21e1   :  { %7916 = vpow2.f32 %v6106_v17 }
0x21eb   :  { %v7917_v26 = vpop.eup %7916 }
0x21ec   :  { %v5591_v53 = vadd.f32 1.0, %v7917_v26 }
0x21ee   :  { %7918 = vrcp.f32 %v5591_v53 }
0x21f8   :  { %v7919_v29 = vpop.eup %7918 }
0x21f9   :  { %v5605_v61 = vsub.f32 1.0, %v7919_v29  ;;  %v5611_v7 = vmul.f32 %v7919_v29, %v10131_v33 }
0x224f   :  { %v5596_v34 = vpop.permute.xlu0 %5595 }
0x2250   :  { %v5598_v1 = vmul.f32 %v7919_v29, %v5596_v34 }
0x2252   :  { %5600 = vrot.lane.b32.xlu1 %v5598_v1, %s8213_s21 }
0x22c4   :  { %v5601_v21 = vpop.permute.xlu1 %5600 }
0x22c5   :  { %v5603_v27 = vadd.f32 %v5601_v21, %v5331_v52 }
0x22c7   :  { %7920 = vtanh.f32 %v5603_v27 }
0x22d1   :  { %v7921_v58 = vpop.eup %7920 }
0x22d2   :  { %5607 = vrot.lane.b32.xlu1 %v7921_v58, %s8214_s25 }
0x2344   :  { %v5608_v62 = vpop.permute.xlu1 %5607 }
0x2345   :  { %v5610_v63 = vmul.f32 %v5608_v62, %v5605_v61 }
0x2347   :  { %v5612_v8 = vadd.f32 %v5611_v7, %v5610_v63 }
0x2349   :  { %5619 = vrot.lane.b32.xlu0 %v5612_v8, %s8214_s25 }
0x23bb   :  { %v5620_v9 = vpop.permute.xlu0 %5619 }
0x23bc   :  { %7430 = vmatmul.mubr.msk.f32.vlgmr.msra.gmra.mrb[0].mxu1 %vm1786_vm2, %v5620_v9 }
0x248f   :  { %v5689_v11 = vpop.f32.mrb[0].mxu1 }
0x2490   :  { %v5693_v14 = vadd.f32 %v7708_v56, %v5689_v11  ;;  %v7431_v19 = vpop.f32.mrb[1].mxu1 }
0x2492   :  { %v5701_v0 = vadd.f32 %v6108_v12, %v5693_v14 }
0x2494   :  { %v5703_v20 = vsel %vm5702_vm4, %v5701_v0, -inf }
0x2495   :  { %5704 = vmax.xlane.f32.xlu1 %v5703_v20 }
0x2522   :  { %v5705_v24 = vpop.xlane.xlu1 %5704 }
0x2523   :  { %v5706_v22 = vsub.f32 %v5701_v0, %v5705_v24 }
0x2525   :  { %v5707_v31 = vmul.f32 1.442695, %v5706_v22 }
0x2527   :  { %7922 = vpow2.f32 %v5707_v31 }
0x2531   :  { %v7923_v15 = vpop.eup %7922 }
0x2532   :  { %v5709_v35 = vsel %vm5702_vm4, %v7923_v15, 0.0 }
0x2533   :  { %5710 = vadd.xlane.f32.xlu0 %v5709_v35 }
0x25c0   :  { %v5711_v23 = vpop.xlane.xlu0 %5710 }
0x25c1   :  { %7924 = vlog2.f32 %v5711_v23 }
0x25cb   :  { %v7925_v37 = vpop.eup %7924 }
0x25cc   :  { %v5713_v10 = vmul.f32 0.6931472, %v7925_v37 }
0x25ce   :  { %v5714_v39 = vadd.f32 %v5713_v10, %v5705_v24 }
0x25d0   :  { %v5715_v13 = vsub.f32 %v5701_v0, %v5714_v39 }
0x25d2   :  { %5716 = vst.msk [vmem:[%s10130_s11] sm:$0xff] %vm5702_vm4, %v5715_v13 }
0x25d3   :  { %5721 = vsyncpa [#allocation4], 1 }
0x25d4   :  { %5722 = vsyncpa [#allocation6], 1 }
0x25d5   :  { %5723 = vsyncpa [#allocation9], 1 }
0x25d6   :  { %5724 = vsyncpa [#allocation12], 1 }
0x25d7   :  { %5725 = vsyncpa [#allocation15], 1 }
0x25d8   :  { %5726 = vsyncpa [#allocation18], 1 }

</bundles_post_ra>
